<compile_context>
chip_gen: v5e
topology: v5e:2x2
jax: 0.10.0
libtpu: 0.0.40
codegen_flags: <defaults>
</compile_context>

<pallas_src>
import numpy as np
import jax
import jax.numpy as jnp
from jax import lax
from jax.experimental import pallas as pl
from jax.experimental.pallas import tpu as pltpu


def _round_up(x, m):
    return ((x + m - 1) // m) * m


def _pick_tile(n_pad, cap):
    """Largest multiple of 8 that divides n_pad and is <= cap."""
    t = max(8, min(n_pad, (cap // 8) * 8))
    while n_pad % t:
        t -= 8
    return t


# ----------------------------------------------------------------------------
# Kernel 1: fused GraphConv layer (GATConv + concat-with-center + Linear + PReLU)
#   feat   = x @ fc_w                      (GATConv fc, no bias)
#   e[i,j] = LeakyReLU(attn_r.feat[i] + attn_l.feat[j])   masked by adj[i, j]
#   alpha  = edge_softmax over incoming edges of dst i
#   gat[i] = sum_j alpha[i,j] feat[j] + gat_b
#   out    = PReLU(gat @ w_g + x @ w_x + mlp_b, mlp_a)    (== Linear([gat, x]))
# Grid is over dst-row tiles; per tile the kernel recomputes feat for all src
# nodes (tiny matmul) so the grid axis is fully parallel.
# ----------------------------------------------------------------------------
def _graphconv_kernel(xf_ref, xt_ref, adj_ref, fcw_ref, al_ref, ar_ref, gb_ref,
                      wg_ref, wx_ref, mb_ref, ma_ref, o_ref):
    fcw = fcw_ref[...]
    feat = jnp.dot(xf_ref[...], fcw, preferred_element_type=jnp.float32)  # (N, din)
    # el_row[0, j] = attn_l . feat[j]  (contract last dims; no explicit transpose)
    el_row = lax.dot_general(al_ref[...], feat, (((1,), (1,)), ((), ())),
                             preferred_element_type=jnp.float32)          # (1, N)

    x_dst = xt_ref[...]                                                   # (tm, din)
    feat_dst = jnp.dot(x_dst, fcw, preferred_element_type=jnp.float32)
    er_col = jnp.sum(feat_dst * ar_ref[...], axis=-1, keepdims=True)      # (tm, 1)

    e = er_col + el_row                                                   # (tm, N)
    e = jnp.where(e > 0, e, 0.2 * e)                                      # LeakyReLU(0.2)
    adj = adj_ref[...]
    e = jnp.where(adj > 0, e, jnp.float32(-1e30))
    m = jnp.max(e, axis=-1, keepdims=True)
    p = jnp.exp(e - m) * adj
    s = jnp.sum(p, axis=-1, keepdims=True)
    # zero in-degree row -> alpha = 0 -> bias-only path (only affects padded rows
    # since real rows always have a self-loop).
    alpha = p / jnp.maximum(s, jnp.float32(1e-30))

    gat = jnp.dot(alpha, feat, preferred_element_type=jnp.float32) + gb_ref[...]
    y = (jnp.dot(gat, wg_ref[...], preferred_element_type=jnp.float32)
         + jnp.dot(x_dst, wx_ref[...], preferred_element_type=jnp.float32)
         + mb_ref[...])
    o_ref[...] = jnp.maximum(y, 0.0) + ma_ref[...] * jnp.minimum(y, 0.0)


def graph_conv_layer(x, adj, fc_w, attn_l, attn_r, gat_b, w_g, w_x,
                     mlp_b, mlp_a, tm):
    n, din = x.shape
    dout = w_g.shape[1]
    cost = pl.CostEstimate(
        flops=2 * n * (n * din * (n // tm) + 2 * n * din + n * din
                       + din * dout * 2),
        transcendentals=n * n,
        bytes_accessed=4 * (n * din * (1 + n // tm) + n * n + n * dout))
    return pl.pallas_call(
        _graphconv_kernel,
        out_shape=jax.ShapeDtypeStruct((n, dout), jnp.float32),
        grid=(n // tm,),
        in_specs=[
            pl.BlockSpec((n, din), lambda i: (0, 0)),      # x, full (src view)
            pl.BlockSpec((tm, din), lambda i: (i, 0)),     # x, dst tile
            pl.BlockSpec((tm, n), lambda i: (i, 0)),       # adj rows of dst tile
            pl.BlockSpec((din, din), lambda i: (0, 0)),    # fc_w
            pl.BlockSpec((1, din), lambda i: (0, 0)),      # attn_l
            pl.BlockSpec((1, din), lambda i: (0, 0)),      # attn_r
            pl.BlockSpec((1, din), lambda i: (0, 0)),      # gat bias
            pl.BlockSpec((din, dout), lambda i: (0, 0)),   # mlp_w (gat half)
            pl.BlockSpec((din, dout), lambda i: (0, 0)),   # mlp_w (center half)
            pl.BlockSpec((1, dout), lambda i: (0, 0)),     # mlp bias
            pl.BlockSpec((1, dout), lambda i: (0, 0)),     # PReLU alpha
        ],
        out_specs=pl.BlockSpec((tm, dout), lambda i: (i, 0)),
        compiler_params=pltpu.CompilerParams(
            dimension_semantics=("parallel",),
            vmem_limit_bytes=64 * 1024 * 1024),
        cost_estimate=cost,
    )(x, x, adj, fc_w, attn_l, attn_r, gat_b, w_g, w_x, mlp_b, mlp_a)


# ----------------------------------------------------------------------------
# Kernel 2: src_mlp + dst_mlp fused (two Linear layers sharing the same input).
# ----------------------------------------------------------------------------
def _dual_linear_kernel(x_ref, ws_ref, bs_ref, wd_ref, bd_ref, s_ref, d_ref):
    x = x_ref[...]
    s_ref[...] = jnp.dot(x, ws_ref[...],
                         preferred_element_type=jnp.float32) + bs_ref[...]
    d_ref[...] = jnp.dot(x, wd_ref[...],
                         preferred_element_type=jnp.float32) + bd_ref[...]


def dual_linear(x, w_src, b_src, w_dst, b_dst, tm):
    n, din = x.shape
    dout = w_src.shape[1]
    return pl.pallas_call(
        _dual_linear_kernel,
        out_shape=(jax.ShapeDtypeStruct((n, dout), jnp.float32),
                   jax.ShapeDtypeStruct((n, dout), jnp.float32)),
        grid=(n // tm,),
        in_specs=[
            pl.BlockSpec((tm, din), lambda i: (i, 0)),
            pl.BlockSpec((din, dout), lambda i: (0, 0)),
            pl.BlockSpec((1, dout), lambda i: (0, 0)),
            pl.BlockSpec((din, dout), lambda i: (0, 0)),
            pl.BlockSpec((1, dout), lambda i: (0, 0)),
        ],
        out_specs=(pl.BlockSpec((tm, dout), lambda i: (i, 0)),
                   pl.BlockSpec((tm, dout), lambda i: (i, 0))),
        compiler_params=pltpu.CompilerParams(dimension_semantics=("parallel",)),
    )(x, w_src, b_src, w_dst, b_dst)


# ----------------------------------------------------------------------------
# Kernel 3: per-edge connection classifier + density aggregation (batched).
# Transposed layout: for a dst tile, X[t, c, n] = dst_h[t, c] + src_h[n, c]
# (shape (tm, h, N), src index on lanes).  The MLP runs as batched matmuls
#   y      = W1^T @ PReLU_a1(X) + b1 ;  logits = W2^T @ PReLU_a2(y) + b2
# so every intermediate and the (tm, 2, N) logits store are lane-dense.
# Density: softmax over 2 classes gives p1 - p0 = tanh((l1 - l0)/2), so
#   pred_den[t] = rowsum(adj*raw * tanh(0.5*(l1-l0))) / in_degree(t)
# computed with a masked lane reduction (no per-row dots, no per-row loop).
# ----------------------------------------------------------------------------
def _edge_kernel(dst_ref, src_ref, wgt_ref, deg_ref,
                 a1_ref, w1t_ref, b1_ref, a2_ref, w2t_ref, b2_ref,
                 logit_ref, den_ref):
    tm = dst_ref.shape[0]
    h = dst_ref.shape[1]

    x = dst_ref[...] + src_ref[...]                           # (tm, h, N)
    a1 = a1_ref[...]                                          # (1, h, 1)
    x = jnp.maximum(x, 0.0) + a1 * jnp.minimum(x, 0.0)

    w1b = jnp.broadcast_to(w1t_ref[...], (tm, h, h))          # hoisted broadcast
    y = jnp.einsum('toi,tin->ton', w1b, x,
                   preferred_element_type=jnp.float32) + b1_ref[...]
    a2 = a2_ref[...]
    y = jnp.maximum(y, 0.0) + a2 * jnp.minimum(y, 0.0)

    w2b = jnp.broadcast_to(w2t_ref[...], (tm, 2, h))
    logits = jnp.einsum('tco,ton->tcn', w2b, y,
                        preferred_element_type=jnp.float32) + b2_ref[...]
    logit_ref[...] = logits                                   # (tm, 2, N) lane-dense

    diff = jnp.tanh(0.5 * (logits[:, 1:2, :] - logits[:, 0:1, :]))  # (tm, 1, N)
    num = jnp.sum(wgt_ref[...] * diff, axis=-1, keepdims=True)      # (tm, 1, 1)
    deg = deg_ref[...]
    safe = jnp.where(deg > 0, deg, 1.0)
    den_ref[...] = jnp.where(deg > 0, num / safe, 0.0)


def edge_pred_den(dst_h, src_h, adj, raw_affine, a1, w1, b1, a2, w2, b2, tm):
    n, h = dst_h.shape
    # XLA-side (cheap) relayouts so the kernel never reshapes/transposes.
    dst3 = dst_h.reshape(n, h, 1)
    src3 = src_h.T.reshape(1, h, n)
    wgt3 = (adj * raw_affine).reshape(n, 1, n)       # pre-masked edge weights
    deg3 = jnp.sum(adj, axis=1).reshape(n, 1, 1)     # in-degree per dst
    w1t = w1.T.reshape(1, h, h)
    w2t = w2.T.reshape(1, 2, h)
    a1_3 = a1.reshape(1, h, 1)
    b1_3 = b1.reshape(1, h, 1)
    a2_3 = a2.reshape(1, h, 1)
    b2_3 = b2.reshape(1, 2, 1)

    cost = pl.CostEstimate(
        flops=int(n) * int(n) * (2 * h * h + 4 * h + 16),
        transcendentals=int(n) * int(n),
        bytes_accessed=4 * (3 * n * n + 4 * n * h + 2 * n))

    return pl.pallas_call(
        _edge_kernel,
        out_shape=(jax.ShapeDtypeStruct((n, 2, n), jnp.float32),
                   jax.ShapeDtypeStruct((n, 1, 1), jnp.float32)),
        grid=(n // tm,),
        in_specs=[
            pl.BlockSpec((tm, h, 1), lambda i: (i, 0, 0)),   # dst_h tile
            pl.BlockSpec((1, h, n), lambda i: (0, 0, 0)),    # src_h^T (full)
            pl.BlockSpec((tm, 1, n), lambda i: (i, 0, 0)),   # adj*raw rows
            pl.BlockSpec((tm, 1, 1), lambda i: (i, 0, 0)),   # in-degree
            pl.BlockSpec((1, h, 1), lambda i: (0, 0, 0)),    # PReLU alpha1
            pl.BlockSpec((1, h, h), lambda i: (0, 0, 0)),    # W1^T
            pl.BlockSpec((1, h, 1), lambda i: (0, 0, 0)),    # b1
            pl.BlockSpec((1, h, 1), lambda i: (0, 0, 0)),    # PReLU alpha2
            pl.BlockSpec((1, 2, h), lambda i: (0, 0, 0)),    # W2^T
            pl.BlockSpec((1, 2, 1), lambda i: (0, 0, 0)),    # b2
        ],
        out_specs=(pl.BlockSpec((tm, 2, n), lambda i: (i, 0, 0)),
                   pl.BlockSpec((tm, 1, 1), lambda i: (i, 0, 0))),
        compiler_params=pltpu.CompilerParams(
            dimension_semantics=("parallel",),
            vmem_limit_bytes=64 * 1024 * 1024),
        cost_estimate=cost,
    )(dst3, src3, wgt3, deg3, a1_3, w1t, b1_3, a2_3, w2t, b2_3)


# ----------------------------------------------------------------------------
# Parameter construction (deterministic, synthetic).
# ----------------------------------------------------------------------------
def init_lander_params(key, feature_dim, nhid, num_conv=4):
    nhid_half = nhid // 2
    fdim = feature_dim * 2                                   # use_cluster_feat=True
    in_dims = (fdim, nhid, nhid, nhid_half)
    out_dims = (nhid, nhid, nhid_half, nhid_half)

    keys = iter(jax.random.split(key, 32))

    def nrm(shape, scale=0.1):
        return (scale * jax.random.normal(next(keys), shape)).astype(jnp.float32)

    params = {'conv': []}
    for i in range(num_conv):
        din, dout = in_dims[i], out_dims[i]
        params['conv'].append({
            'fc_w':   nrm((din, din)),                       # GATConv fc (no bias)
            'attn_l': nrm((1, din)),
            'attn_r': nrm((1, din)),
            'gat_b':  jnp.zeros((1, din), jnp.float32),      # GATConv output bias
            'mlp_w':  nrm((2 * din, dout)),                  # Linear(2*in, out)
            'mlp_b':  nrm((1, dout)),
            'mlp_a':  jnp.full((1, dout), 0.25, jnp.float32),
        })
    h = nhid_half
    params['src_w'] = nrm((h, h)); params['src_b'] = nrm((1, h))
    params['dst_w'] = nrm((h, h)); params['dst_b'] = nrm((1, h))
    params['cls_a1'] = jnp.full((1, h), 0.25, jnp.float32)
    params['cls_w1'] = nrm((h, h)); params['cls_b1'] = nrm((1, h))
    params['cls_a2'] = jnp.full((1, h), 0.25, jnp.float32)
    params['cls_w2'] = nrm((h, 2)); params['cls_b2'] = nrm((1, 2))
    return params


# ----------------------------------------------------------------------------
# LANDER forward (single homogeneous-DGLGraph branch of the PyTorch module).
# ----------------------------------------------------------------------------
def lander_forward(params, features, cluster_features, adj, raw_affine,
                   src_idx, dst_idx):
    n = features.shape[0]
    # use_cluster_feat=True -> concat node features with cluster features
    x = jnp.concatenate([features, cluster_features], axis=1).astype(jnp.float32)
    adj = adj.astype(jnp.float32)
    raw_affine = raw_affine.astype(jnp.float32)

    # pad node count to a multiple of 8 so tiles divide evenly (padded rows are
    # isolated: adj rows/cols of padding are zero and outputs are sliced off).
    n_pad = _round_up(max(n, 8), 8)
    pad = n_pad - n
    if pad:
        x = jnp.pad(x, ((0, pad), (0, 0)))
        adj = jnp.pad(adj, ((0, pad), (0, pad)))
        raw_affine = jnp.pad(raw_affine, ((0, pad), (0, pad)))

    tm_conv = _pick_tile(n_pad, 256)

    # 4 x fused GraphConv layers
    for layer in params['conv']:
        din = layer['fc_w'].shape[0]
        w_g = layer['mlp_w'][:din]
        w_x = layer['mlp_w'][din:]
        x = graph_conv_layer(x, adj, layer['fc_w'], layer['attn_l'],
                             layer['attn_r'], layer['gat_b'], w_g, w_x,
                             layer['mlp_b'], layer['mlp_a'], tm_conv)

    conv_features = x                                        # (n_pad, nhid//2)
    h = conv_features.shape[1]
    src_h, dst_h = dual_linear(conv_features, params['src_w'], params['src_b'],
                               params['dst_w'], params['dst_b'], tm_conv)

    # dst-tile size for the edge kernel: keep each (tm, h, N) intermediate ~4 MiB.
    vmem_budget = 4 * 1024 * 1024
    cap = max(8, min(128, (vmem_budget // (h * n_pad * 4)) // 8 * 8))
    tm_edge = _pick_tile(n_pad, cap)

    logits_dense, pred_den3 = edge_pred_den(
        dst_h, src_h, adj, raw_affine,
        params['cls_a1'], params['cls_w1'], params['cls_b1'],
        params['cls_a2'], params['cls_w2'], params['cls_b2'], tm_edge)
    # logits_dense: (n_pad, 2, n_pad); pred_den3: (n_pad, 1, 1)

    # per-edge views (DGL edata): gather dense pairwise results at real edges
    pred_conn = logits_dense[dst_idx, :, src_idx]            # (E, 2)
    prob_conn = jax.nn.softmax(pred_conn, axis=1)            # (E, 2)
    pred_den = pred_den3.reshape(n_pad)[:n]
    return conv_features[:n], pred_conn, prob_conn, pred_den


# ----------------------------------------------------------------------------
if __name__ == "__main__":
    N = 32            # nodes
    feature_dim = 16
    nhid = 32

    key = jax.random.PRNGKey(0)
    k1, k2, k3, k4, kp = jax.random.split(key, 5)

    features = jax.random.normal(k1, (N, feature_dim), jnp.float32)
    cluster_features = jax.random.normal(k2, (N, feature_dim), jnp.float32)

    # random kNN-like graph; adj[dst, src] = 1, self loops ensure in-degree >= 1
    adj = (jax.random.uniform(k3, (N, N)) < 0.25).astype(jnp.float32)
    adj = jnp.maximum(adj, jnp.eye(N, dtype=jnp.float32))
    raw_affine = jax.random.normal(k4, (N, N), jnp.float32)   # edge attribute

    dst_np, src_np = np.nonzero(np.asarray(adj))              # edge list
    dst_idx = jnp.asarray(dst_np, jnp.int32)
    src_idx = jnp.asarray(src_np, jnp.int32)

    params = init_lander_params(kp, feature_dim, nhid)

    fwd = jax.jit(lander_forward)
    conv_features, pred_conn, prob_conn, pred_den = fwd(
        params, features, cluster_features, adj, raw_affine, src_idx, dst_idx)
    jax.block_until_ready((conv_features, pred_conn, prob_conn, pred_den))

    E = dst_idx.shape[0]
    assert conv_features.shape == (N, nhid // 2)
    assert pred_conn.shape == (E, 2) and prob_conn.shape == (E, 2)
    assert pred_den.shape == (N,)
    assert bool(jnp.all(jnp.isfinite(conv_features)))
    assert bool(jnp.all(jnp.isfinite(pred_conn)))
    assert bool(jnp.all(jnp.isfinite(pred_den)))
    assert bool(jnp.allclose(jnp.sum(prob_conn, axis=1), 1.0, atol=1e-5))
    print("KERNEL_OK")
</pallas_src>

<mosaic_0001>
module attributes {stable_mosaic.version = 11 : i64} {
  func.func @_graphconv_kernel(%arg0: i32, %arg1: memref<32x32xf32, #tpu.memory_space<vmem>>, %arg2: memref<32x32xf32, #tpu.memory_space<vmem>>, %arg3: memref<32x32xf32, #tpu.memory_space<vmem>>, %arg4: memref<32x32xf32, #tpu.memory_space<vmem>>, %arg5: memref<1x32xf32, #tpu.memory_space<vmem>>, %arg6: memref<1x32xf32, #tpu.memory_space<vmem>>, %arg7: memref<1x32xf32, #tpu.memory_space<vmem>>, %arg8: memref<32x32xf32, #tpu.memory_space<vmem>>, %arg9: memref<32x32xf32, #tpu.memory_space<vmem>>, %arg10: memref<1x32xf32, #tpu.memory_space<vmem>>, %arg11: memref<1x32xf32, #tpu.memory_space<vmem>>, %arg12: memref<32x32xf32, #tpu.memory_space<vmem>>) attributes {dimension_semantics = [#tpu.dimension_semantics<parallel>], iteration_bounds = array<i64: 1>, scalar_prefetch = 0 : i64, scratch_operands = 0 : i64, tpu.core_type = #tpu.core_type<tc>, window_params = [{pipeline_mode = #tpu.pipeline_mode<synchronous>, transform_indices = @transform_0, window_bounds = array<i64: 32, 32>}, {transform_indices = @transform_1, window_bounds = array<i64: 32, 32>}, {transform_indices = @transform_2, window_bounds = array<i64: 32, 32>}, {pipeline_mode = #tpu.pipeline_mode<synchronous>, transform_indices = @transform_3, window_bounds = array<i64: 32, 32>}, {pipeline_mode = #tpu.pipeline_mode<synchronous>, transform_indices = @transform_4, window_bounds = array<i64: 1, 32>}, {pipeline_mode = #tpu.pipeline_mode<synchronous>, transform_indices = @transform_5, window_bounds = array<i64: 1, 32>}, {pipeline_mode = #tpu.pipeline_mode<synchronous>, transform_indices = @transform_6, window_bounds = array<i64: 1, 32>}, {pipeline_mode = #tpu.pipeline_mode<synchronous>, transform_indices = @transform_7, window_bounds = array<i64: 32, 32>}, {pipeline_mode = #tpu.pipeline_mode<synchronous>, transform_indices = @transform_8, window_bounds = array<i64: 32, 32>}, {pipeline_mode = #tpu.pipeline_mode<synchronous>, transform_indices = @transform_9, window_bounds = array<i64: 1, 32>}, {pipeline_mode = #tpu.pipeline_mode<synchronous>, transform_indices = @transform_10, window_bounds = array<i64: 1, 32>}, {transform_indices = @transform_11, window_bounds = array<i64: 32, 32>}]} {
    %c0 = arith.constant 0 : index
    %c0_0 = arith.constant 0 : index
    %0 = vector.load %arg4[%c0, %c0_0] : memref<32x32xf32, #tpu.memory_space<vmem>>, vector<32x32xf32>
    %c0_1 = arith.constant 0 : index
    %c0_2 = arith.constant 0 : index
    %1 = vector.load %arg1[%c0_1, %c0_2] : memref<32x32xf32, #tpu.memory_space<vmem>>, vector<32x32xf32>
    %cst = arith.constant dense<0.000000e+00> : vector<32x32xf32>
    %2 = tpu.matmul %1, %0, %cst {dimension_numbers = #tpu.dot_dimension_numbers<[1], [0], [0], [1], [0, 0, 1, 1], [], []>} : vector<32x32xf32>, vector<32x32xf32>, vector<32x32xf32> -> vector<32x32xf32>
    %c0_3 = arith.constant 0 : index
    %c0_4 = arith.constant 0 : index
    %3 = vector.load %arg5[%c0_3, %c0_4] : memref<1x32xf32, #tpu.memory_space<vmem>>, vector<1x32xf32>
    %cst_5 = arith.constant dense<0.000000e+00> : vector<1x32xf32>
    %4 = tpu.matmul %3, %2, %cst_5 {dimension_numbers = #tpu.dot_dimension_numbers<[1], [1], [0], [0], [0, 0, 1, 0], [], []>} : vector<1x32xf32>, vector<32x32xf32>, vector<1x32xf32> -> vector<1x32xf32>
    %c0_6 = arith.constant 0 : index
    %c0_7 = arith.constant 0 : index
    %5 = vector.load %arg2[%c0_6, %c0_7] : memref<32x32xf32, #tpu.memory_space<vmem>>, vector<32x32xf32>
    %cst_8 = arith.constant dense<0.000000e+00> : vector<32x32xf32>
    %6 = tpu.matmul %5, %0, %cst_8 {dimension_numbers = #tpu.dot_dimension_numbers<[1], [0], [0], [1], [0, 0, 1, 1], [], []>} : vector<32x32xf32>, vector<32x32xf32>, vector<32x32xf32> -> vector<32x32xf32>
    %c0_9 = arith.constant 0 : index
    %c0_10 = arith.constant 0 : index
    %7 = vector.load %arg6[%c0_9, %c0_10] : memref<1x32xf32, #tpu.memory_space<vmem>>, vector<1x32xf32>
    %8 = vector.broadcast %7 : vector<1x32xf32> to vector<32x32xf32>
    %9 = arith.mulf %6, %8 : vector<32x32xf32>
    %cst_11 = arith.constant dense<0.000000e+00> : vector<32xf32>
    %10 = vector.multi_reduction <add>, %9, %cst_11 [1] : vector<32x32xf32> to vector<32xf32>
    %11 = vector.shape_cast %10 : vector<32xf32> to vector<32x1xf32>
    %12 = vector.broadcast %11 : vector<32x1xf32> to vector<32x32xf32>
    %13 = vector.broadcast %4 : vector<1x32xf32> to vector<32x32xf32>
    %14 = arith.addf %12, %13 : vector<32x32xf32>
    %cst_12 = arith.constant 0.000000e+00 : f32
    %15 = vector.broadcast %cst_12 : f32 to vector<32x32xf32>
    %16 = arith.cmpf ogt, %14, %15 : vector<32x32xf32>
    %cst_13 = arith.constant 2.000000e-01 : f32
    %17 = vector.broadcast %cst_13 : f32 to vector<32x32xf32>
    %18 = arith.mulf %17, %14 : vector<32x32xf32>
    %19 = arith.select %16, %14, %18 : vector<32x32xi1>, vector<32x32xf32>
    %c0_14 = arith.constant 0 : index
    %c0_15 = arith.constant 0 : index
    %20 = vector.load %arg3[%c0_14, %c0_15] : memref<32x32xf32, #tpu.memory_space<vmem>>, vector<32x32xf32>
    %cst_16 = arith.constant 0.000000e+00 : f32
    %21 = vector.broadcast %cst_16 : f32 to vector<32x32xf32>
    %22 = arith.cmpf ogt, %20, %21 : vector<32x32xf32>
    %cst_17 = arith.constant -1.000000e+30 : f32
    %23 = vector.broadcast %cst_17 : f32 to vector<32x32xf32>
    %24 = arith.select %22, %19, %23 : vector<32x32xi1>, vector<32x32xf32>
    %cst_18 = arith.constant dense<0xFF800000> : vector<32xf32>
    %25 = vector.multi_reduction <maximumf>, %24, %cst_18 [1] : vector<32x32xf32> to vector<32xf32>
    %26 = vector.shape_cast %25 : vector<32xf32> to vector<32x1xf32>
    %27 = vector.broadcast %26 : vector<32x1xf32> to vector<32x32xf32>
    %28 = arith.subf %24, %27 : vector<32x32xf32>
    %29 = math.exp %28 : vector<32x32xf32>
    %30 = arith.mulf %29, %20 : vector<32x32xf32>
    %cst_19 = arith.constant dense<0.000000e+00> : vector<32xf32>
    %31 = vector.multi_reduction <add>, %30, %cst_19 [1] : vector<32x32xf32> to vector<32xf32>
    %32 = vector.shape_cast %31 : vector<32xf32> to vector<32x1xf32>
    %cst_20 = arith.constant 1.000000e-30 : f32
    %33 = vector.broadcast %cst_20 : f32 to vector<32x1xf32>
    %34 = arith.maximumf %32, %33 : vector<32x1xf32>
    %35 = vector.broadcast %34 : vector<32x1xf32> to vector<32x32xf32>
    %36 = arith.divf %30, %35 : vector<32x32xf32>
    %cst_21 = arith.constant dense<0.000000e+00> : vector<32x32xf32>
    %37 = tpu.matmul %36, %2, %cst_21 {dimension_numbers = #tpu.dot_dimension_numbers<[1], [0], [0], [1], [0, 0, 1, 1], [], []>} : vector<32x32xf32>, vector<32x32xf32>, vector<32x32xf32> -> vector<32x32xf32>
    %c0_22 = arith.constant 0 : index
    %c0_23 = arith.constant 0 : index
    %38 = vector.load %arg7[%c0_22, %c0_23] : memref<1x32xf32, #tpu.memory_space<vmem>>, vector<1x32xf32>
    %39 = vector.broadcast %38 : vector<1x32xf32> to vector<32x32xf32>
    %40 = arith.addf %37, %39 : vector<32x32xf32>
    %c0_24 = arith.constant 0 : index
    %c0_25 = arith.constant 0 : index
    %41 = vector.load %arg8[%c0_24, %c0_25] : memref<32x32xf32, #tpu.memory_space<vmem>>, vector<32x32xf32>
    %cst_26 = arith.constant dense<0.000000e+00> : vector<32x32xf32>
    %42 = tpu.matmul %40, %41, %cst_26 {dimension_numbers = #tpu.dot_dimension_numbers<[1], [0], [0], [1], [0, 0, 1, 1], [], []>} : vector<32x32xf32>, vector<32x32xf32>, vector<32x32xf32> -> vector<32x32xf32>
    %c0_27 = arith.constant 0 : index
    %c0_28 = arith.constant 0 : index
    %43 = vector.load %arg9[%c0_27, %c0_28] : memref<32x32xf32, #tpu.memory_space<vmem>>, vector<32x32xf32>
    %cst_29 = arith.constant dense<0.000000e+00> : vector<32x32xf32>
    %44 = tpu.matmul %5, %43, %cst_29 {dimension_numbers = #tpu.dot_dimension_numbers<[1], [0], [0], [1], [0, 0, 1, 1], [], []>} : vector<32x32xf32>, vector<32x32xf32>, vector<32x32xf32> -> vector<32x32xf32>
    %45 = arith.addf %42, %44 : vector<32x32xf32>
    %c0_30 = arith.constant 0 : index
    %c0_31 = arith.constant 0 : index
    %46 = vector.load %arg10[%c0_30, %c0_31] : memref<1x32xf32, #tpu.memory_space<vmem>>, vector<1x32xf32>
    %47 = vector.broadcast %46 : vector<1x32xf32> to vector<32x32xf32>
    %48 = arith.addf %45, %47 : vector<32x32xf32>
    %cst_32 = arith.constant 0.000000e+00 : f32
    %49 = vector.broadcast %cst_32 : f32 to vector<32x32xf32>
    %50 = arith.maximumf %48, %49 : vector<32x32xf32>
    %c0_33 = arith.constant 0 : index
    %c0_34 = arith.constant 0 : index
    %51 = vector.load %arg11[%c0_33, %c0_34] : memref<1x32xf32, #tpu.memory_space<vmem>>, vector<1x32xf32>
    %cst_35 = arith.constant 0.000000e+00 : f32
    %52 = vector.broadcast %cst_35 : f32 to vector<32x32xf32>
    %53 = arith.minimumf %48, %52 : vector<32x32xf32>
    %54 = vector.broadcast %51 : vector<1x32xf32> to vector<32x32xf32>
    %55 = arith.mulf %54, %53 : vector<32x32xf32>
    %56 = arith.addf %50, %55 : vector<32x32xf32>
    %c0_36 = arith.constant 0 : index
    %c0_37 = arith.constant 0 : index
    %57 = vector.load %arg12[%c0_36, %c0_37] : memref<32x32xf32, #tpu.memory_space<vmem>>, vector<32x32xf32>
    tpu.vector_store %arg12[%c0_36, %c0_37], %56 {strides = array<i32>} : memref<32x32xf32, #tpu.memory_space<vmem>>, vector<32x32xf32>,
    return
  }
  func.func @transform_0(%arg0: i32) -> (i32, i32) {
    %c0_i32 = arith.constant 0 : i32
    %c0_i32_0 = arith.constant 0 : i32
    %c0_i32_1 = arith.constant 0 : i32
    return %c0_i32, %c0_i32_0 : i32, i32
  }
  func.func @transform_1(%arg0: i32) -> (i32, i32) {
    %c0_i32 = arith.constant 0 : i32
    %c0_i32_0 = arith.constant 0 : i32
    return %arg0, %c0_i32 : i32, i32
  }
  func.func @transform_2(%arg0: i32) -> (i32, i32) {
    %c0_i32 = arith.constant 0 : i32
    %c0_i32_0 = arith.constant 0 : i32
    return %arg0, %c0_i32 : i32, i32
  }
  func.func @transform_3(%arg0: i32) -> (i32, i32) {
    %c0_i32 = arith.constant 0 : i32
    %c0_i32_0 = arith.constant 0 : i32
    %c0_i32_1 = arith.constant 0 : i32
    return %c0_i32, %c0_i32_0 : i32, i32
  }
  func.func @transform_4(%arg0: i32) -> (i32, i32) {
    %c0_i32 = arith.constant 0 : i32
    %c0_i32_0 = arith.constant 0 : i32
    %c0_i32_1 = arith.constant 0 : i32
    return %c0_i32, %c0_i32_0 : i32, i32
  }
  func.func @transform_5(%arg0: i32) -> (i32, i32) {
    %c0_i32 = arith.constant 0 : i32
    %c0_i32_0 = arith.constant 0 : i32
    %c0_i32_1 = arith.constant 0 : i32
    return %c0_i32, %c0_i32_0 : i32, i32
  }
  func.func @transform_6(%arg0: i32) -> (i32, i32) {
    %c0_i32 = arith.constant 0 : i32
    %c0_i32_0 = arith.constant 0 : i32
    %c0_i32_1 = arith.constant 0 : i32
    return %c0_i32, %c0_i32_0 : i32, i32
  }
  func.func @transform_7(%arg0: i32) -> (i32, i32) {
    %c0_i32 = arith.constant 0 : i32
    %c0_i32_0 = arith.constant 0 : i32
    %c0_i32_1 = arith.constant 0 : i32
    return %c0_i32, %c0_i32_0 : i32, i32
  }
  func.func @transform_8(%arg0: i32) -> (i32, i32) {
    %c0_i32 = arith.constant 0 : i32
    %c0_i32_0 = arith.constant 0 : i32
    %c0_i32_1 = arith.constant 0 : i32
    return %c0_i32, %c0_i32_0 : i32, i32
  }
  func.func @transform_9(%arg0: i32) -> (i32, i32) {
    %c0_i32 = arith.constant 0 : i32
    %c0_i32_0 = arith.constant 0 : i32
    %c0_i32_1 = arith.constant 0 : i32
    return %c0_i32, %c0_i32_0 : i32, i32
  }
  func.func @transform_10(%arg0: i32) -> (i32, i32) {
    %c0_i32 = arith.constant 0 : i32
    %c0_i32_0 = arith.constant 0 : i32
    %c0_i32_1 = arith.constant 0 : i32
    return %c0_i32, %c0_i32_0 : i32, i32
  }
  func.func @transform_11(%arg0: i32) -> (i32, i32) {
    %c0_i32 = arith.constant 0 : i32
    %c0_i32_0 = arith.constant 0 : i32
    return %arg0, %c0_i32 : i32, i32
  }
}

module attributes {stable_mosaic.version = 11 : i64} {
  func.func @_graphconv_kernel(%arg0: i32, %arg1: memref<32x32xf32, #tpu.memory_space<vmem>>, %arg2: memref<32x32xf32, #tpu.memory_space<vmem>>, %arg3: memref<32x32xf32, #tpu.memory_space<vmem>>, %arg4: memref<32x32xf32, #tpu.memory_space<vmem>>, %arg5: memref<1x32xf32, #tpu.memory_space<vmem>>, %arg6: memref<1x32xf32, #tpu.memory_space<vmem>>, %arg7: memref<1x32xf32, #tpu.memory_space<vmem>>, %arg8: memref<32x16xf32, #tpu.memory_space<vmem>>, %arg9: memref<32x16xf32, #tpu.memory_space<vmem>>, %arg10: memref<1x16xf32, #tpu.memory_space<vmem>>, %arg11: memref<1x16xf32, #tpu.memory_space<vmem>>, %arg12: memref<32x16xf32, #tpu.memory_space<vmem>>) attributes {dimension_semantics = [#tpu.dimension_semantics<parallel>], iteration_bounds = array<i64: 1>, scalar_prefetch = 0 : i64, scratch_operands = 0 : i64, tpu.core_type = #tpu.core_type<tc>, window_params = [{pipeline_mode = #tpu.pipeline_mode<synchronous>, transform_indices = @transform_0, window_bounds = array<i64: 32, 32>}, {transform_indices = @transform_1, window_bounds = array<i64: 32, 32>}, {transform_indices = @transform_2, window_bounds = array<i64: 32, 32>}, {pipeline_mode = #tpu.pipeline_mode<synchronous>, transform_indices = @transform_3, window_bounds = array<i64: 32, 32>}, {pipeline_mode = #tpu.pipeline_mode<synchronous>, transform_indices = @transform_4, window_bounds = array<i64: 1, 32>}, {pipeline_mode = #tpu.pipeline_mode<synchronous>, transform_indices = @transform_5, window_bounds = array<i64: 1, 32>}, {pipeline_mode = #tpu.pipeline_mode<synchronous>, transform_indices = @transform_6, window_bounds = array<i64: 1, 32>}, {pipeline_mode = #tpu.pipeline_mode<synchronous>, transform_indices = @transform_7, window_bounds = array<i64: 32, 16>}, {pipeline_mode = #tpu.pipeline_mode<synchronous>, transform_indices = @transform_8, window_bounds = array<i64: 32, 16>}, {pipeline_mode = #tpu.pipeline_mode<synchronous>, transform_indices = @transform_9, window_bounds = array<i64: 1, 16>}, {pipeline_mode = #tpu.pipeline_mode<synchronous>, transform_indices = @transform_10, window_bounds = array<i64: 1, 16>}, {transform_indices = @transform_11, window_bounds = array<i64: 32, 16>}]} {
    %c0 = arith.constant 0 : index
    %c0_0 = arith.constant 0 : index
    %0 = vector.load %arg4[%c0, %c0_0] : memref<32x32xf32, #tpu.memory_space<vmem>>, vector<32x32xf32>
    %c0_1 = arith.constant 0 : index
    %c0_2 = arith.constant 0 : index
    %1 = vector.load %arg1[%c0_1, %c0_2] : memref<32x32xf32, #tpu.memory_space<vmem>>, vector<32x32xf32>
    %cst = arith.constant dense<0.000000e+00> : vector<32x32xf32>
    %2 = tpu.matmul %1, %0, %cst {dimension_numbers = #tpu.dot_dimension_numbers<[1], [0], [0], [1], [0, 0, 1, 1], [], []>} : vector<32x32xf32>, vector<32x32xf32>, vector<32x32xf32> -> vector<32x32xf32>
    %c0_3 = arith.constant 0 : index
    %c0_4 = arith.constant 0 : index
    %3 = vector.load %arg5[%c0_3, %c0_4] : memref<1x32xf32, #tpu.memory_space<vmem>>, vector<1x32xf32>
    %cst_5 = arith.constant dense<0.000000e+00> : vector<1x32xf32>
    %4 = tpu.matmul %3, %2, %cst_5 {dimension_numbers = #tpu.dot_dimension_numbers<[1], [1], [0], [0], [0, 0, 1, 0], [], []>} : vector<1x32xf32>, vector<32x32xf32>, vector<1x32xf32> -> vector<1x32xf32>
    %c0_6 = arith.constant 0 : index
    %c0_7 = arith.constant 0 : index
    %5 = vector.load %arg2[%c0_6, %c0_7] : memref<32x32xf32, #tpu.memory_space<vmem>>, vector<32x32xf32>
    %cst_8 = arith.constant dense<0.000000e+00> : vector<32x32xf32>
    %6 = tpu.matmul %5, %0, %cst_8 {dimension_numbers = #tpu.dot_dimension_numbers<[1], [0], [0], [1], [0, 0, 1, 1], [], []>} : vector<32x32xf32>, vector<32x32xf32>, vector<32x32xf32> -> vector<32x32xf32>
    %c0_9 = arith.constant 0 : index
    %c0_10 = arith.constant 0 : index
    %7 = vector.load %arg6[%c0_9, %c0_10] : memref<1x32xf32, #tpu.memory_space<vmem>>, vector<1x32xf32>
    %8 = vector.broadcast %7 : vector<1x32xf32> to vector<32x32xf32>
    %9 = arith.mulf %6, %8 : vector<32x32xf32>
    %cst_11 = arith.constant dense<0.000000e+00> : vector<32xf32>
    %10 = vector.multi_reduction <add>, %9, %cst_11 [1] : vector<32x32xf32> to vector<32xf32>
    %11 = vector.shape_cast %10 : vector<32xf32> to vector<32x1xf32>
    %12 = vector.broadcast %11 : vector<32x1xf32> to vector<32x32xf32>
    %13 = vector.broadcast %4 : vector<1x32xf32> to vector<32x32xf32>
    %14 = arith.addf %12, %13 : vector<32x32xf32>
    %cst_12 = arith.constant 0.000000e+00 : f32
    %15 = vector.broadcast %cst_12 : f32 to vector<32x32xf32>
    %16 = arith.cmpf ogt, %14, %15 : vector<32x32xf32>
    %cst_13 = arith.constant 2.000000e-01 : f32
    %17 = vector.broadcast %cst_13 : f32 to vector<32x32xf32>
    %18 = arith.mulf %17, %14 : vector<32x32xf32>
    %19 = arith.select %16, %14, %18 : vector<32x32xi1>, vector<32x32xf32>
    %c0_14 = arith.constant 0 : index
    %c0_15 = arith.constant 0 : index
    %20 = vector.load %arg3[%c0_14, %c0_15] : memref<32x32xf32, #tpu.memory_space<vmem>>, vector<32x32xf32>
    %cst_16 = arith.constant 0.000000e+00 : f32
    %21 = vector.broadcast %cst_16 : f32 to vector<32x32xf32>
    %22 = arith.cmpf ogt, %20, %21 : vector<32x32xf32>
    %cst_17 = arith.constant -1.000000e+30 : f32
    %23 = vector.broadcast %cst_17 : f32 to vector<32x32xf32>
    %24 = arith.select %22, %19, %23 : vector<32x32xi1>, vector<32x32xf32>
    %cst_18 = arith.constant dense<0xFF800000> : vector<32xf32>
    %25 = vector.multi_reduction <maximumf>, %24, %cst_18 [1] : vector<32x32xf32> to vector<32xf32>
    %26 = vector.shape_cast %25 : vector<32xf32> to vector<32x1xf32>
    %27 = vector.broadcast %26 : vector<32x1xf32> to vector<32x32xf32>
    %28 = arith.subf %24, %27 : vector<32x32xf32>
    %29 = math.exp %28 : vector<32x32xf32>
    %30 = arith.mulf %29, %20 : vector<32x32xf32>
    %cst_19 = arith.constant dense<0.000000e+00> : vector<32xf32>
    %31 = vector.multi_reduction <add>, %30, %cst_19 [1] : vector<32x32xf32> to vector<32xf32>
    %32 = vector.shape_cast %31 : vector<32xf32> to vector<32x1xf32>
    %cst_20 = arith.constant 1.000000e-30 : f32
    %33 = vector.broadcast %cst_20 : f32 to vector<32x1xf32>
    %34 = arith.maximumf %32, %33 : vector<32x1xf32>
    %35 = vector.broadcast %34 : vector<32x1xf32> to vector<32x32xf32>
    %36 = arith.divf %30, %35 : vector<32x32xf32>
    %cst_21 = arith.constant dense<0.000000e+00> : vector<32x32xf32>
    %37 = tpu.matmul %36, %2, %cst_21 {dimension_numbers = #tpu.dot_dimension_numbers<[1], [0], [0], [1], [0, 0, 1, 1], [], []>} : vector<32x32xf32>, vector<32x32xf32>, vector<32x32xf32> -> vector<32x32xf32>
    %c0_22 = arith.constant 0 : index
    %c0_23 = arith.constant 0 : index
    %38 = vector.load %arg7[%c0_22, %c0_23] : memref<1x32xf32, #tpu.memory_space<vmem>>, vector<1x32xf32>
    %39 = vector.broadcast %38 : vector<1x32xf32> to vector<32x32xf32>
    %40 = arith.addf %37, %39 : vector<32x32xf32>
    %c0_24 = arith.constant 0 : index
    %c0_25 = arith.constant 0 : index
    %41 = vector.load %arg8[%c0_24, %c0_25] : memref<32x16xf32, #tpu.memory_space<vmem>>, vector<32x16xf32>
    %cst_26 = arith.constant dense<0.000000e+00> : vector<32x16xf32>
    %42 = tpu.matmul %40, %41, %cst_26 {dimension_numbers = #tpu.dot_dimension_numbers<[1], [0], [0], [1], [0, 0, 1, 1], [], []>} : vector<32x32xf32>, vector<32x16xf32>, vector<32x16xf32> -> vector<32x16xf32>
    %c0_27 = arith.constant 0 : index
    %c0_28 = arith.constant 0 : index
    %43 = vector.load %arg9[%c0_27, %c0_28] : memref<32x16xf32, #tpu.memory_space<vmem>>, vector<32x16xf32>
    %cst_29 = arith.constant dense<0.000000e+00> : vector<32x16xf32>
    %44 = tpu.matmul %5, %43, %cst_29 {dimension_numbers = #tpu.dot_dimension_numbers<[1], [0], [0], [1], [0, 0, 1, 1], [], []>} : vector<32x32xf32>, vector<32x16xf32>, vector<32x16xf32> -> vector<32x16xf32>
    %45 = arith.addf %42, %44 : vector<32x16xf32>
    %c0_30 = arith.constant 0 : index
    %c0_31 = arith.constant 0 : index
    %46 = vector.load %arg10[%c0_30, %c0_31] : memref<1x16xf32, #tpu.memory_space<vmem>>, vector<1x16xf32>
    %47 = vector.broadcast %46 : vector<1x16xf32> to vector<32x16xf32>
    %48 = arith.addf %45, %47 : vector<32x16xf32>
    %cst_32 = arith.constant 0.000000e+00 : f32
    %49 = vector.broadcast %cst_32 : f32 to vector<32x16xf32>
    %50 = arith.maximumf %48, %49 : vector<32x16xf32>
    %c0_33 = arith.constant 0 : index
    %c0_34 = arith.constant 0 : index
    %51 = vector.load %arg11[%c0_33, %c0_34] : memref<1x16xf32, #tpu.memory_space<vmem>>, vector<1x16xf32>
    %cst_35 = arith.constant 0.000000e+00 : f32
    %52 = vector.broadcast %cst_35 : f32 to vector<32x16xf32>
    %53 = arith.minimumf %48, %52 : vector<32x16xf32>
    %54 = vector.broadcast %51 : vector<1x16xf32> to vector<32x16xf32>
    %55 = arith.mulf %54, %53 : vector<32x16xf32>
    %56 = arith.addf %50, %55 : vector<32x16xf32>
    %c0_36 = arith.constant 0 : index
    %c0_37 = arith.constant 0 : index
    %57 = vector.load %arg12[%c0_36, %c0_37] : memref<32x16xf32, #tpu.memory_space<vmem>>, vector<32x16xf32>
    tpu.vector_store %arg12[%c0_36, %c0_37], %56 {strides = array<i32>} : memref<32x16xf32, #tpu.memory_space<vmem>>, vector<32x16xf32>,
    return
  }
  func.func @transform_0(%arg0: i32) -> (i32, i32) {
    %c0_i32 = arith.constant 0 : i32
    %c0_i32_0 = arith.constant 0 : i32
    %c0_i32_1 = arith.constant 0 : i32
    return %c0_i32, %c0_i32_0 : i32, i32
  }
  func.func @transform_1(%arg0: i32) -> (i32, i32) {
    %c0_i32 = arith.constant 0 : i32
    %c0_i32_0 = arith.constant 0 : i32
    return %arg0, %c0_i32 : i32, i32
  }
  func.func @transform_2(%arg0: i32) -> (i32, i32) {
    %c0_i32 = arith.constant 0 : i32
    %c0_i32_0 = arith.constant 0 : i32
    return %arg0, %c0_i32 : i32, i32
  }
  func.func @transform_3(%arg0: i32) -> (i32, i32) {
    %c0_i32 = arith.constant 0 : i32
    %c0_i32_0 = arith.constant 0 : i32
    %c0_i32_1 = arith.constant 0 : i32
    return %c0_i32, %c0_i32_0 : i32, i32
  }
  func.func @transform_4(%arg0: i32) -> (i32, i32) {
    %c0_i32 = arith.constant 0 : i32
    %c0_i32_0 = arith.constant 0 : i32
    %c0_i32_1 = arith.constant 0 : i32
    return %c0_i32, %c0_i32_0 : i32, i32
  }
  func.func @transform_5(%arg0: i32) -> (i32, i32) {
    %c0_i32 = arith.constant 0 : i32
    %c0_i32_0 = arith.constant 0 : i32
    %c0_i32_1 = arith.constant 0 : i32
    return %c0_i32, %c0_i32_0 : i32, i32
  }
  func.func @transform_6(%arg0: i32) -> (i32, i32) {
    %c0_i32 = arith.constant 0 : i32
    %c0_i32_0 = arith.constant 0 : i32
    %c0_i32_1 = arith.constant 0 : i32
    return %c0_i32, %c0_i32_0 : i32, i32
  }
  func.func @transform_7(%arg0: i32) -> (i32, i32) {
    %c0_i32 = arith.constant 0 : i32
    %c0_i32_0 = arith.constant 0 : i32
    %c0_i32_1 = arith.constant 0 : i32
    return %c0_i32, %c0_i32_0 : i32, i32
  }
  func.func @transform_8(%arg0: i32) -> (i32, i32) {
    %c0_i32 = arith.constant 0 : i32
    %c0_i32_0 = arith.constant 0 : i32
    %c0_i32_1 = arith.constant 0 : i32
    return %c0_i32, %c0_i32_0 : i32, i32
  }
  func.func @transform_9(%arg0: i32) -> (i32, i32) {
    %c0_i32 = arith.constant 0 : i32
    %c0_i32_0 = arith.constant 0 : i32
    %c0_i32_1 = arith.constant 0 : i32
    return %c0_i32, %c0_i32_0 : i32, i32
  }
  func.func @transform_10(%arg0: i32) -> (i32, i32) {
    %c0_i32 = arith.constant 0 : i32
    %c0_i32_0 = arith.constant 0 : i32
    %c0_i32_1 = arith.constant 0 : i32
    return %c0_i32, %c0_i32_0 : i32, i32
  }
  func.func @transform_11(%arg0: i32) -> (i32, i32) {
    %c0_i32 = arith.constant 0 : i32
    %c0_i32_0 = arith.constant 0 : i32
    return %arg0, %c0_i32 : i32, i32
  }
}

module attributes {stable_mosaic.version = 11 : i64} {
  func.func @_graphconv_kernel(%arg0: i32, %arg1: memref<32x16xf32, #tpu.memory_space<vmem>>, %arg2: memref<32x16xf32, #tpu.memory_space<vmem>>, %arg3: memref<32x32xf32, #tpu.memory_space<vmem>>, %arg4: memref<16x16xf32, #tpu.memory_space<vmem>>, %arg5: memref<1x16xf32, #tpu.memory_space<vmem>>, %arg6: memref<1x16xf32, #tpu.memory_space<vmem>>, %arg7: memref<1x16xf32, #tpu.memory_space<vmem>>, %arg8: memref<16x16xf32, #tpu.memory_space<vmem>>, %arg9: memref<16x16xf32, #tpu.memory_space<vmem>>, %arg10: memref<1x16xf32, #tpu.memory_space<vmem>>, %arg11: memref<1x16xf32, #tpu.memory_space<vmem>>, %arg12: memref<32x16xf32, #tpu.memory_space<vmem>>) attributes {dimension_semantics = [#tpu.dimension_semantics<parallel>], iteration_bounds = array<i64: 1>, scalar_prefetch = 0 : i64, scratch_operands = 0 : i64, tpu.core_type = #tpu.core_type<tc>, window_params = [{pipeline_mode = #tpu.pipeline_mode<synchronous>, transform_indices = @transform_0, window_bounds = array<i64: 32, 16>}, {transform_indices = @transform_1, window_bounds = array<i64: 32, 16>}, {transform_indices = @transform_2, window_bounds = array<i64: 32, 32>}, {pipeline_mode = #tpu.pipeline_mode<synchronous>, transform_indices = @transform_3, window_bounds = array<i64: 16, 16>}, {pipeline_mode = #tpu.pipeline_mode<synchronous>, transform_indices = @transform_4, window_bounds = array<i64: 1, 16>}, {pipeline_mode = #tpu.pipeline_mode<synchronous>, transform_indices = @transform_5, window_bounds = array<i64: 1, 16>}, {pipeline_mode = #tpu.pipeline_mode<synchronous>, transform_indices = @transform_6, window_bounds = array<i64: 1, 16>}, {pipeline_mode = #tpu.pipeline_mode<synchronous>, transform_indices = @transform_7, window_bounds = array<i64: 16, 16>}, {pipeline_mode = #tpu.pipeline_mode<synchronous>, transform_indices = @transform_8, window_bounds = array<i64: 16, 16>}, {pipeline_mode = #tpu.pipeline_mode<synchronous>, transform_indices = @transform_9, window_bounds = array<i64: 1, 16>}, {pipeline_mode = #tpu.pipeline_mode<synchronous>, transform_indices = @transform_10, window_bounds = array<i64: 1, 16>}, {transform_indices = @transform_11, window_bounds = array<i64: 32, 16>}]} {
    %c0 = arith.constant 0 : index
    %c0_0 = arith.constant 0 : index
    %0 = vector.load %arg4[%c0, %c0_0] : memref<16x16xf32, #tpu.memory_space<vmem>>, vector<16x16xf32>
    %c0_1 = arith.constant 0 : index
    %c0_2 = arith.constant 0 : index
    %1 = vector.load %arg1[%c0_1, %c0_2] : memref<32x16xf32, #tpu.memory_space<vmem>>, vector<32x16xf32>
    %cst = arith.constant dense<0.000000e+00> : vector<32x16xf32>
    %2 = tpu.matmul %1, %0, %cst {dimension_numbers = #tpu.dot_dimension_numbers<[1], [0], [0], [1], [0, 0, 1, 1], [], []>} : vector<32x16xf32>, vector<16x16xf32>, vector<32x16xf32> -> vector<32x16xf32>
    %c0_3 = arith.constant 0 : index
    %c0_4 = arith.constant 0 : index
    %3 = vector.load %arg5[%c0_3, %c0_4] : memref<1x16xf32, #tpu.memory_space<vmem>>, vector<1x16xf32>
    %cst_5 = arith.constant dense<0.000000e+00> : vector<1x32xf32>
    %4 = tpu.matmul %3, %2, %cst_5 {dimension_numbers = #tpu.dot_dimension_numbers<[1], [1], [0], [0], [0, 0, 1, 0], [], []>} : vector<1x16xf32>, vector<32x16xf32>, vector<1x32xf32> -> vector<1x32xf32>
    %c0_6 = arith.constant 0 : index
    %c0_7 = arith.constant 0 : index
    %5 = vector.load %arg2[%c0_6, %c0_7] : memref<32x16xf32, #tpu.memory_space<vmem>>, vector<32x16xf32>
    %cst_8 = arith.constant dense<0.000000e+00> : vector<32x16xf32>
    %6 = tpu.matmul %5, %0, %cst_8 {dimension_numbers = #tpu.dot_dimension_numbers<[1], [0], [0], [1], [0, 0, 1, 1], [], []>} : vector<32x16xf32>, vector<16x16xf32>, vector<32x16xf32> -> vector<32x16xf32>
    %c0_9 = arith.constant 0 : index
    %c0_10 = arith.constant 0 : index
    %7 = vector.load %arg6[%c0_9, %c0_10] : memref<1x16xf32, #tpu.memory_space<vmem>>, vector<1x16xf32>
    %8 = vector.broadcast %7 : vector<1x16xf32> to vector<32x16xf32>
    %9 = arith.mulf %6, %8 : vector<32x16xf32>
    %cst_11 = arith.constant dense<0.000000e+00> : vector<32xf32>
    %10 = vector.multi_reduction <add>, %9, %cst_11 [1] : vector<32x16xf32> to vector<32xf32>
    %11 = vector.shape_cast %10 : vector<32xf32> to vector<32x1xf32>
    %12 = vector.broadcast %11 : vector<32x1xf32> to vector<32x32xf32>
    %13 = vector.broadcast %4 : vector<1x32xf32> to vector<32x32xf32>
    %14 = arith.addf %12, %13 : vector<32x32xf32>
    %cst_12 = arith.constant 0.000000e+00 : f32
    %15 = vector.broadcast %cst_12 : f32 to vector<32x32xf32>
    %16 = arith.cmpf ogt, %14, %15 : vector<32x32xf32>
    %cst_13 = arith.constant 2.000000e-01 : f32
    %17 = vector.broadcast %cst_13 : f32 to vector<32x32xf32>
    %18 = arith.mulf %17, %14 : vector<32x32xf32>
    %19 = arith.select %16, %14, %18 : vector<32x32xi1>, vector<32x32xf32>
    %c0_14 = arith.constant 0 : index
    %c0_15 = arith.constant 0 : index
    %20 = vector.load %arg3[%c0_14, %c0_15] : memref<32x32xf32, #tpu.memory_space<vmem>>, vector<32x32xf32>
    %cst_16 = arith.constant 0.000000e+00 : f32
    %21 = vector.broadcast %cst_16 : f32 to vector<32x32xf32>
    %22 = arith.cmpf ogt, %20, %21 : vector<32x32xf32>
    %cst_17 = arith.constant -1.000000e+30 : f32
    %23 = vector.broadcast %cst_17 : f32 to vector<32x32xf32>
    %24 = arith.select %22, %19, %23 : vector<32x32xi1>, vector<32x32xf32>
    %cst_18 = arith.constant dense<0xFF800000> : vector<32xf32>
    %25 = vector.multi_reduction <maximumf>, %24, %cst_18 [1] : vector<32x32xf32> to vector<32xf32>
    %26 = vector.shape_cast %25 : vector<32xf32> to vector<32x1xf32>
    %27 = vector.broadcast %26 : vector<32x1xf32> to vector<32x32xf32>
    %28 = arith.subf %24, %27 : vector<32x32xf32>
    %29 = math.exp %28 : vector<32x32xf32>
    %30 = arith.mulf %29, %20 : vector<32x32xf32>
    %cst_19 = arith.constant dense<0.000000e+00> : vector<32xf32>
    %31 = vector.multi_reduction <add>, %30, %cst_19 [1] : vector<32x32xf32> to vector<32xf32>
    %32 = vector.shape_cast %31 : vector<32xf32> to vector<32x1xf32>
    %cst_20 = arith.constant 1.000000e-30 : f32
    %33 = vector.broadcast %cst_20 : f32 to vector<32x1xf32>
    %34 = arith.maximumf %32, %33 : vector<32x1xf32>
    %35 = vector.broadcast %34 : vector<32x1xf32> to vector<32x32xf32>
    %36 = arith.divf %30, %35 : vector<32x32xf32>
    %cst_21 = arith.constant dense<0.000000e+00> : vector<32x16xf32>
    %37 = tpu.matmul %36, %2, %cst_21 {dimension_numbers = #tpu.dot_dimension_numbers<[1], [0], [0], [1], [0, 0, 1, 1], [], []>} : vector<32x32xf32>, vector<32x16xf32>, vector<32x16xf32> -> vector<32x16xf32>
    %c0_22 = arith.constant 0 : index
    %c0_23 = arith.constant 0 : index
    %38 = vector.load %arg7[%c0_22, %c0_23] : memref<1x16xf32, #tpu.memory_space<vmem>>, vector<1x16xf32>
    %39 = vector.broadcast %38 : vector<1x16xf32> to vector<32x16xf32>
    %40 = arith.addf %37, %39 : vector<32x16xf32>
    %c0_24 = arith.constant 0 : index
    %c0_25 = arith.constant 0 : index
    %41 = vector.load %arg8[%c0_24, %c0_25] : memref<16x16xf32, #tpu.memory_space<vmem>>, vector<16x16xf32>
    %cst_26 = arith.constant dense<0.000000e+00> : vector<32x16xf32>
    %42 = tpu.matmul %40, %41, %cst_26 {dimension_numbers = #tpu.dot_dimension_numbers<[1], [0], [0], [1], [0, 0, 1, 1], [], []>} : vector<32x16xf32>, vector<16x16xf32>, vector<32x16xf32> -> vector<32x16xf32>
    %c0_27 = arith.constant 0 : index
    %c0_28 = arith.constant 0 : index
    %43 = vector.load %arg9[%c0_27, %c0_28] : memref<16x16xf32, #tpu.memory_space<vmem>>, vector<16x16xf32>
    %cst_29 = arith.constant dense<0.000000e+00> : vector<32x16xf32>
    %44 = tpu.matmul %5, %43, %cst_29 {dimension_numbers = #tpu.dot_dimension_numbers<[1], [0], [0], [1], [0, 0, 1, 1], [], []>} : vector<32x16xf32>, vector<16x16xf32>, vector<32x16xf32> -> vector<32x16xf32>
    %45 = arith.addf %42, %44 : vector<32x16xf32>
    %c0_30 = arith.constant 0 : index
    %c0_31 = arith.constant 0 : index
    %46 = vector.load %arg10[%c0_30, %c0_31] : memref<1x16xf32, #tpu.memory_space<vmem>>, vector<1x16xf32>
    %47 = vector.broadcast %46 : vector<1x16xf32> to vector<32x16xf32>
    %48 = arith.addf %45, %47 : vector<32x16xf32>
    %cst_32 = arith.constant 0.000000e+00 : f32
    %49 = vector.broadcast %cst_32 : f32 to vector<32x16xf32>
    %50 = arith.maximumf %48, %49 : vector<32x16xf32>
    %c0_33 = arith.constant 0 : index
    %c0_34 = arith.constant 0 : index
    %51 = vector.load %arg11[%c0_33, %c0_34] : memref<1x16xf32, #tpu.memory_space<vmem>>, vector<1x16xf32>
    %cst_35 = arith.constant 0.000000e+00 : f32
    %52 = vector.broadcast %cst_35 : f32 to vector<32x16xf32>
    %53 = arith.minimumf %48, %52 : vector<32x16xf32>
    %54 = vector.broadcast %51 : vector<1x16xf32> to vector<32x16xf32>
    %55 = arith.mulf %54, %53 : vector<32x16xf32>
    %56 = arith.addf %50, %55 : vector<32x16xf32>
    %c0_36 = arith.constant 0 : index
    %c0_37 = arith.constant 0 : index
    %57 = vector.load %arg12[%c0_36, %c0_37] : memref<32x16xf32, #tpu.memory_space<vmem>>, vector<32x16xf32>
    tpu.vector_store %arg12[%c0_36, %c0_37], %56 {strides = array<i32>} : memref<32x16xf32, #tpu.memory_space<vmem>>, vector<32x16xf32>,
    return
  }
  func.func @transform_0(%arg0: i32) -> (i32, i32) {
    %c0_i32 = arith.constant 0 : i32
    %c0_i32_0 = arith.constant 0 : i32
    %c0_i32_1 = arith.constant 0 : i32
    return %c0_i32, %c0_i32_0 : i32, i32
  }
  func.func @transform_1(%arg0: i32) -> (i32, i32) {
    %c0_i32 = arith.constant 0 : i32
    %c0_i32_0 = arith.constant 0 : i32
    return %arg0, %c0_i32 : i32, i32
  }
  func.func @transform_2(%arg0: i32) -> (i32, i32) {
    %c0_i32 = arith.constant 0 : i32
    %c0_i32_0 = arith.constant 0 : i32
    return %arg0, %c0_i32 : i32, i32
  }
  func.func @transform_3(%arg0: i32) -> (i32, i32) {
    %c0_i32 = arith.constant 0 : i32
    %c0_i32_0 = arith.constant 0 : i32
    %c0_i32_1 = arith.constant 0 : i32
    return %c0_i32, %c0_i32_0 : i32, i32
  }
  func.func @transform_4(%arg0: i32) -> (i32, i32) {
    %c0_i32 = arith.constant 0 : i32
    %c0_i32_0 = arith.constant 0 : i32
    %c0_i32_1 = arith.constant 0 : i32
    return %c0_i32, %c0_i32_0 : i32, i32
  }
  func.func @transform_5(%arg0: i32) -> (i32, i32) {
    %c0_i32 = arith.constant 0 : i32
    %c0_i32_0 = arith.constant 0 : i32
    %c0_i32_1 = arith.constant 0 : i32
    return %c0_i32, %c0_i32_0 : i32, i32
  }
  func.func @transform_6(%arg0: i32) -> (i32, i32) {
    %c0_i32 = arith.constant 0 : i32
    %c0_i32_0 = arith.constant 0 : i32
    %c0_i32_1 = arith.constant 0 : i32
    return %c0_i32, %c0_i32_0 : i32, i32
  }
  func.func @transform_7(%arg0: i32) -> (i32, i32) {
    %c0_i32 = arith.constant 0 : i32
    %c0_i32_0 = arith.constant 0 : i32
    %c0_i32_1 = arith.constant 0 : i32
    return %c0_i32, %c0_i32_0 : i32, i32
  }
  func.func @transform_8(%arg0: i32) -> (i32, i32) {
    %c0_i32 = arith.constant 0 : i32
    %c0_i32_0 = arith.constant 0 : i32
    %c0_i32_1 = arith.constant 0 : i32
    return %c0_i32, %c0_i32_0 : i32, i32
  }
  func.func @transform_9(%arg0: i32) -> (i32, i32) {
    %c0_i32 = arith.constant 0 : i32
    %c0_i32_0 = arith.constant 0 : i32
    %c0_i32_1 = arith.constant 0 : i32
    return %c0_i32, %c0_i32_0 : i32, i32
  }
  func.func @transform_10(%arg0: i32) -> (i32, i32) {
    %c0_i32 = arith.constant 0 : i32
    %c0_i32_0 = arith.constant 0 : i32
    %c0_i32_1 = arith.constant 0 : i32
    return %c0_i32, %c0_i32_0 : i32, i32
  }
  func.func @transform_11(%arg0: i32) -> (i32, i32) {
    %c0_i32 = arith.constant 0 : i32
    %c0_i32_0 = arith.constant 0 : i32
    return %arg0, %c0_i32 : i32, i32
  }
}

module attributes {stable_mosaic.version = 11 : i64} {
  func.func @_dual_linear_kernel(%arg0: i32, %arg1: memref<32x16xf32, #tpu.memory_space<vmem>>, %arg2: memref<16x16xf32, #tpu.memory_space<vmem>>, %arg3: memref<1x16xf32, #tpu.memory_space<vmem>>, %arg4: memref<16x16xf32, #tpu.memory_space<vmem>>, %arg5: memref<1x16xf32, #tpu.memory_space<vmem>>, %arg6: memref<32x16xf32, #tpu.memory_space<vmem>>, %arg7: memref<32x16xf32, #tpu.memory_space<vmem>>) attributes {dimension_semantics = [#tpu.dimension_semantics<parallel>], iteration_bounds = array<i64: 1>, scalar_prefetch = 0 : i64, scratch_operands = 0 : i64, tpu.core_type = #tpu.core_type<tc>, window_params = [{transform_indices = @transform_0, window_bounds = array<i64: 32, 16>}, {pipeline_mode = #tpu.pipeline_mode<synchronous>, transform_indices = @transform_1, window_bounds = array<i64: 16, 16>}, {pipeline_mode = #tpu.pipeline_mode<synchronous>, transform_indices = @transform_2, window_bounds = array<i64: 1, 16>}, {pipeline_mode = #tpu.pipeline_mode<synchronous>, transform_indices = @transform_3, window_bounds = array<i64: 16, 16>}, {pipeline_mode = #tpu.pipeline_mode<synchronous>, transform_indices = @transform_4, window_bounds = array<i64: 1, 16>}, {transform_indices = @transform_5, window_bounds = array<i64: 32, 16>}, {transform_indices = @transform_6, window_bounds = array<i64: 32, 16>}]} {
    %c0 = arith.constant 0 : index
    %c0_0 = arith.constant 0 : index
    %0 = vector.load %arg1[%c0, %c0_0] : memref<32x16xf32, #tpu.memory_space<vmem>>, vector<32x16xf32>
    %c0_1 = arith.constant 0 : index
    %c0_2 = arith.constant 0 : index
    %1 = vector.load %arg2[%c0_1, %c0_2] : memref<16x16xf32, #tpu.memory_space<vmem>>, vector<16x16xf32>
    %cst = arith.constant dense<0.000000e+00> : vector<32x16xf32>
    %2 = tpu.matmul %0, %1, %cst {dimension_numbers = #tpu.dot_dimension_numbers<[1], [0], [0], [1], [0, 0, 1, 1], [], []>} : vector<32x16xf32>, vector<16x16xf32>, vector<32x16xf32> -> vector<32x16xf32>
    %c0_3 = arith.constant 0 : index
    %c0_4 = arith.constant 0 : index
    %3 = vector.load %arg3[%c0_3, %c0_4] : memref<1x16xf32, #tpu.memory_space<vmem>>, vector<1x16xf32>
    %4 = vector.broadcast %3 : vector<1x16xf32> to vector<32x16xf32>
    %5 = arith.addf %2, %4 : vector<32x16xf32>
    %c0_5 = arith.constant 0 : index
    %c0_6 = arith.constant 0 : index
    %6 = vector.load %arg6[%c0_5, %c0_6] : memref<32x16xf32, #tpu.memory_space<vmem>>, vector<32x16xf32>
    tpu.vector_store %arg6[%c0_5, %c0_6], %5 {strides = array<i32>} : memref<32x16xf32, #tpu.memory_space<vmem>>, vector<32x16xf32>,
    %c0_7 = arith.constant 0 : index
    %c0_8 = arith.constant 0 : index
    %7 = vector.load %arg4[%c0_7, %c0_8] : memref<16x16xf32, #tpu.memory_space<vmem>>, vector<16x16xf32>
    %cst_9 = arith.constant dense<0.000000e+00> : vector<32x16xf32>
    %8 = tpu.matmul %0, %7, %cst_9 {dimension_numbers = #tpu.dot_dimension_numbers<[1], [0], [0], [1], [0, 0, 1, 1], [], []>} : vector<32x16xf32>, vector<16x16xf32>, vector<32x16xf32> -> vector<32x16xf32>
    %c0_10 = arith.constant 0 : index
    %c0_11 = arith.constant 0 : index
    %9 = vector.load %arg5[%c0_10, %c0_11] : memref<1x16xf32, #tpu.memory_space<vmem>>, vector<1x16xf32>
    %10 = vector.broadcast %9 : vector<1x16xf32> to vector<32x16xf32>
    %11 = arith.addf %8, %10 : vector<32x16xf32>
    %c0_12 = arith.constant 0 : index
    %c0_13 = arith.constant 0 : index
    %12 = vector.load %arg7[%c0_12, %c0_13] : memref<32x16xf32, #tpu.memory_space<vmem>>, vector<32x16xf32>
    tpu.vector_store %arg7[%c0_12, %c0_13], %11 {strides = array<i32>} : memref<32x16xf32, #tpu.memory_space<vmem>>, vector<32x16xf32>,
    return
  }
  func.func @transform_0(%arg0: i32) -> (i32, i32) {
    %c0_i32 = arith.constant 0 : i32
    %c0_i32_0 = arith.constant 0 : i32
    return %arg0, %c0_i32 : i32, i32
  }
  func.func @transform_1(%arg0: i32) -> (i32, i32) {
    %c0_i32 = arith.constant 0 : i32
    %c0_i32_0 = arith.constant 0 : i32
    %c0_i32_1 = arith.constant 0 : i32
    return %c0_i32, %c0_i32_0 : i32, i32
  }
  func.func @transform_2(%arg0: i32) -> (i32, i32) {
    %c0_i32 = arith.constant 0 : i32
    %c0_i32_0 = arith.constant 0 : i32
    %c0_i32_1 = arith.constant 0 : i32
    return %c0_i32, %c0_i32_0 : i32, i32
  }
  func.func @transform_3(%arg0: i32) -> (i32, i32) {
    %c0_i32 = arith.constant 0 : i32
    %c0_i32_0 = arith.constant 0 : i32
    %c0_i32_1 = arith.constant 0 : i32
    return %c0_i32, %c0_i32_0 : i32, i32
  }
  func.func @transform_4(%arg0: i32) -> (i32, i32) {
    %c0_i32 = arith.constant 0 : i32
    %c0_i32_0 = arith.constant 0 : i32
    %c0_i32_1 = arith.constant 0 : i32
    return %c0_i32, %c0_i32_0 : i32, i32
  }
  func.func @transform_5(%arg0: i32) -> (i32, i32) {
    %c0_i32 = arith.constant 0 : i32
    %c0_i32_0 = arith.constant 0 : i32
    return %arg0, %c0_i32 : i32, i32
  }
  func.func @transform_6(%arg0: i32) -> (i32, i32) {
    %c0_i32 = arith.constant 0 : i32
    %c0_i32_0 = arith.constant 0 : i32
    return %arg0, %c0_i32 : i32, i32
  }
}

module attributes {stable_mosaic.version = 11 : i64} {
  func.func @_edge_kernel(%arg0: i32, %arg1: memref<32x16x1xf32, #tpu.memory_space<vmem>>, %arg2: memref<1x16x32xf32, #tpu.memory_space<vmem>>, %arg3: memref<32x1x32xf32, #tpu.memory_space<vmem>>, %arg4: memref<32x1x1xf32, #tpu.memory_space<vmem>>, %arg5: memref<1x16x1xf32, #tpu.memory_space<vmem>>, %arg6: memref<1x16x16xf32, #tpu.memory_space<vmem>>, %arg7: memref<1x16x1xf32, #tpu.memory_space<vmem>>, %arg8: memref<1x16x1xf32, #tpu.memory_space<vmem>>, %arg9: memref<1x2x16xf32, #tpu.memory_space<vmem>>, %arg10: memref<1x2x1xf32, #tpu.memory_space<vmem>>, %arg11: memref<32x2x32xf32, #tpu.memory_space<vmem>>, %arg12: memref<32x1x1xf32, #tpu.memory_space<vmem>>) attributes {dimension_semantics = [#tpu.dimension_semantics<parallel>], iteration_bounds = array<i64: 1>, scalar_prefetch = 0 : i64, scratch_operands = 0 : i64, tpu.core_type = #tpu.core_type<tc>, window_params = [{transform_indices = @transform_0, window_bounds = array<i64: 32, 16, 1>}, {pipeline_mode = #tpu.pipeline_mode<synchronous>, transform_indices = @transform_1, window_bounds = array<i64: 1, 16, 32>}, {transform_indices = @transform_2, window_bounds = array<i64: 32, 1, 32>}, {transform_indices = @transform_3, window_bounds = array<i64: 32, 1, 1>}, {pipeline_mode = #tpu.pipeline_mode<synchronous>, transform_indices = @transform_4, window_bounds = array<i64: 1, 16, 1>}, {pipeline_mode = #tpu.pipeline_mode<synchronous>, transform_indices = @transform_5, window_bounds = array<i64: 1, 16, 16>}, {pipeline_mode = #tpu.pipeline_mode<synchronous>, transform_indices = @transform_6, window_bounds = array<i64: 1, 16, 1>}, {pipeline_mode = #tpu.pipeline_mode<synchronous>, transform_indices = @transform_7, window_bounds = array<i64: 1, 16, 1>}, {pipeline_mode = #tpu.pipeline_mode<synchronous>, transform_indices = @transform_8, window_bounds = array<i64: 1, 2, 16>}, {pipeline_mode = #tpu.pipeline_mode<synchronous>, transform_indices = @transform_9, window_bounds = array<i64: 1, 2, 1>}, {transform_indices = @transform_10, window_bounds = array<i64: 32, 2, 32>}, {transform_indices = @transform_11, window_bounds = array<i64: 32, 1, 1>}]} {
    %c0 = arith.constant 0 : index
    %c0_0 = arith.constant 0 : index
    %c0_1 = arith.constant 0 : index
    %0 = vector.load %arg1[%c0, %c0_0, %c0_1] : memref<32x16x1xf32, #tpu.memory_space<vmem>>, vector<32x16x1xf32>
    %c0_2 = arith.constant 0 : index
    %c0_3 = arith.constant 0 : index
    %c0_4 = arith.constant 0 : index
    %1 = vector.load %arg2[%c0_2, %c0_3, %c0_4] : memref<1x16x32xf32, #tpu.memory_space<vmem>>, vector<1x16x32xf32>
    %2 = vector.broadcast %0 : vector<32x16x1xf32> to vector<32x16x32xf32>
    %3 = vector.broadcast %1 : vector<1x16x32xf32> to vector<32x16x32xf32>
    %4 = arith.addf %2, %3 : vector<32x16x32xf32>
    %c0_5 = arith.constant 0 : index
    %c0_6 = arith.constant 0 : index
    %c0_7 = arith.constant 0 : index
    %5 = vector.load %arg5[%c0_5, %c0_6, %c0_7] : memref<1x16x1xf32, #tpu.memory_space<vmem>>, vector<1x16x1xf32>
    %cst = arith.constant 0.000000e+00 : f32
    %6 = vector.broadcast %cst : f32 to vector<32x16x32xf32>
    %7 = arith.maximumf %4, %6 : vector<32x16x32xf32>
    %cst_8 = arith.constant 0.000000e+00 : f32
    %8 = vector.broadcast %cst_8 : f32 to vector<32x16x32xf32>
    %9 = arith.minimumf %4, %8 : vector<32x16x32xf32>
    %10 = vector.broadcast %5 : vector<1x16x1xf32> to vector<32x16x32xf32>
    %11 = arith.mulf %10, %9 : vector<32x16x32xf32>
    %12 = arith.addf %7, %11 : vector<32x16x32xf32>
    %c0_9 = arith.constant 0 : index
    %c0_10 = arith.constant 0 : index
    %c0_11 = arith.constant 0 : index
    %13 = vector.load %arg6[%c0_9, %c0_10, %c0_11] : memref<1x16x16xf32, #tpu.memory_space<vmem>>, vector<1x16x16xf32>
    %14 = vector.shape_cast %13 : vector<1x16x16xf32> to vector<1x16x16xf32>
    %15 = vector.broadcast %14 : vector<1x16x16xf32> to vector<32x16x16xf32>
    "tpu.trace_start"() <{level = 10 : i32, message = "toi,tin->ton"}> : () -> ()
    %cst_12 = arith.constant dense<0.000000e+00> : vector<32x16x32xf32>
    %16 = tpu.matmul %15, %12, %cst_12 {dimension_numbers = #tpu.dot_dimension_numbers<[2], [1], [1], [2], [0, 0, 0, 1, 1, 2], [0], [0]>} : vector<32x16x16xf32>, vector<32x16x32xf32>, vector<32x16x32xf32> -> vector<32x16x32xf32>
    "tpu.trace_stop"() : () -> ()
    %c0_13 = arith.constant 0 : index
    %c0_14 = arith.constant 0 : index
    %c0_15 = arith.constant 0 : index
    %17 = vector.load %arg7[%c0_13, %c0_14, %c0_15] : memref<1x16x1xf32, #tpu.memory_space<vmem>>, vector<1x16x1xf32>
    %18 = vector.broadcast %17 : vector<1x16x1xf32> to vector<32x16x32xf32>
    %19 = arith.addf %16, %18 : vector<32x16x32xf32>
    %c0_16 = arith.constant 0 : index
    %c0_17 = arith.constant 0 : index
    %c0_18 = arith.constant 0 : index
    %20 = vector.load %arg8[%c0_16, %c0_17, %c0_18] : memref<1x16x1xf32, #tpu.memory_space<vmem>>, vector<1x16x1xf32>
    %cst_19 = arith.constant 0.000000e+00 : f32
    %21 = vector.broadcast %cst_19 : f32 to vector<32x16x32xf32>
    %22 = arith.maximumf %19, %21 : vector<32x16x32xf32>
    %cst_20 = arith.constant 0.000000e+00 : f32
    %23 = vector.broadcast %cst_20 : f32 to vector<32x16x32xf32>
    %24 = arith.minimumf %19, %23 : vector<32x16x32xf32>
    %25 = vector.broadcast %20 : vector<1x16x1xf32> to vector<32x16x32xf32>
    %26 = arith.mulf %25, %24 : vector<32x16x32xf32>
    %27 = arith.addf %22, %26 : vector<32x16x32xf32>
    %c0_21 = arith.constant 0 : index
    %c0_22 = arith.constant 0 : index
    %c0_23 = arith.constant 0 : index
    %28 = vector.load %arg9[%c0_21, %c0_22, %c0_23] : memref<1x2x16xf32, #tpu.memory_space<vmem>>, vector<1x2x16xf32>
    %29 = vector.shape_cast %28 : vector<1x2x16xf32> to vector<1x2x16xf32>
    %30 = vector.broadcast %29 : vector<1x2x16xf32> to vector<32x2x16xf32>
    "tpu.trace_start"() <{level = 10 : i32, message = "tco,ton->tcn"}> : () -> ()
    %cst_24 = arith.constant dense<0.000000e+00> : vector<32x2x32xf32>
    %31 = tpu.matmul %30, %27, %cst_24 {dimension_numbers = #tpu.dot_dimension_numbers<[2], [1], [1], [2], [0, 0, 0, 1, 1, 2], [0], [0]>} : vector<32x2x16xf32>, vector<32x16x32xf32>, vector<32x2x32xf32> -> vector<32x2x32xf32>
    "tpu.trace_stop"() : () -> ()
    %c0_25 = arith.constant 0 : index
    %c0_26 = arith.constant 0 : index
    %c0_27 = arith.constant 0 : index
    %32 = vector.load %arg10[%c0_25, %c0_26, %c0_27] : memref<1x2x1xf32, #tpu.memory_space<vmem>>, vector<1x2x1xf32>
    %33 = vector.broadcast %32 : vector<1x2x1xf32> to vector<32x2x32xf32>
    %34 = arith.addf %31, %33 : vector<32x2x32xf32>
    %c0_28 = arith.constant 0 : index
    %c0_29 = arith.constant 0 : index
    %c0_30 = arith.constant 0 : index
    %35 = vector.load %arg11[%c0_28, %c0_29, %c0_30] : memref<32x2x32xf32, #tpu.memory_space<vmem>>, vector<32x2x32xf32>
    tpu.vector_store %arg11[%c0_28, %c0_29, %c0_30], %34 {strides = array<i32>} : memref<32x2x32xf32, #tpu.memory_space<vmem>>, vector<32x2x32xf32>,
    %36 = vector.extract_strided_slice %34 {offsets = [0, 1, 0], sizes = [32, 1, 32], strides = [1, 1, 1]} : vector<32x2x32xf32> to vector<32x1x32xf32>
    %37 = vector.extract_strided_slice %34 {offsets = [0, 0, 0], sizes = [32, 1, 32], strides = [1, 1, 1]} : vector<32x2x32xf32> to vector<32x1x32xf32>
    %38 = arith.subf %36, %37 : vector<32x1x32xf32>
    %cst_31 = arith.constant 5.000000e-01 : f32
    %39 = vector.broadcast %cst_31 : f32 to vector<32x1x32xf32>
    %40 = arith.mulf %39, %38 : vector<32x1x32xf32>
    %41 = math.tanh %40 : vector<32x1x32xf32>
    %c0_32 = arith.constant 0 : index
    %c0_33 = arith.constant 0 : index
    %c0_34 = arith.constant 0 : index
    %42 = vector.load %arg3[%c0_32, %c0_33, %c0_34] : memref<32x1x32xf32, #tpu.memory_space<vmem>>, vector<32x1x32xf32>
    %43 = arith.mulf %42, %41 : vector<32x1x32xf32>
    %cst_35 = arith.constant dense<0.000000e+00> : vector<32x1xf32>
    %44 = vector.multi_reduction <add>, %43, %cst_35 [2] : vector<32x1x32xf32> to vector<32x1xf32>
    %45 = vector.shape_cast %44 : vector<32x1xf32> to vector<32x1x1xf32>
    %c0_36 = arith.constant 0 : index
    %c0_37 = arith.constant 0 : index
    %c0_38 = arith.constant 0 : index
    %46 = vector.load %arg4[%c0_36, %c0_37, %c0_38] : memref<32x1x1xf32, #tpu.memory_space<vmem>>, vector<32x1x1xf32>
    %cst_39 = arith.constant 0.000000e+00 : f32
    %47 = vector.broadcast %cst_39 : f32 to vector<32x1x1xf32>
    %48 = arith.cmpf ogt, %46, %47 : vector<32x1x1xf32>
    %cst_40 = arith.constant 1.000000e+00 : f32
    %49 = vector.broadcast %cst_40 : f32 to vector<32x1x1xf32>
    %50 = arith.select %48, %46, %49 : vector<32x1x1xi1>, vector<32x1x1xf32>
    %cst_41 = arith.constant 0.000000e+00 : f32
    %51 = vector.broadcast %cst_41 : f32 to vector<32x1x1xf32>
    %52 = arith.cmpf ogt, %46, %51 : vector<32x1x1xf32>
    %53 = arith.divf %45, %50 : vector<32x1x1xf32>
    %cst_42 = arith.constant 0.000000e+00 : f32
    %54 = vector.broadcast %cst_42 : f32 to vector<32x1x1xf32>
    %55 = arith.select %52, %53, %54 : vector<32x1x1xi1>, vector<32x1x1xf32>
    %c0_43 = arith.constant 0 : index
    %c0_44 = arith.constant 0 : index
    %c0_45 = arith.constant 0 : index
    %56 = vector.load %arg12[%c0_43, %c0_44, %c0_45] : memref<32x1x1xf32, #tpu.memory_space<vmem>>, vector<32x1x1xf32>
    tpu.vector_store %arg12[%c0_43, %c0_44, %c0_45], %55 {strides = array<i32>} : memref<32x1x1xf32, #tpu.memory_space<vmem>>, vector<32x1x1xf32>,
    return
  }
  func.func @transform_0(%arg0: i32) -> (i32, i32, i32) {
    %c0_i32 = arith.constant 0 : i32
    %c0_i32_0 = arith.constant 0 : i32
    %c0_i32_1 = arith.constant 0 : i32
    return %arg0, %c0_i32, %c0_i32_0 : i32, i32, i32
  }
  func.func @transform_1(%arg0: i32) -> (i32, i32, i32) {
    %c0_i32 = arith.constant 0 : i32
    %c0_i32_0 = arith.constant 0 : i32
    %c0_i32_1 = arith.constant 0 : i32
    %c0_i32_2 = arith.constant 0 : i32
    return %c0_i32, %c0_i32_0, %c0_i32_1 : i32, i32, i32
  }
  func.func @transform_2(%arg0: i32) -> (i32, i32, i32) {
    %c0_i32 = arith.constant 0 : i32
    %c0_i32_0 = arith.constant 0 : i32
    %c0_i32_1 = arith.constant 0 : i32
    return %arg0, %c0_i32, %c0_i32_0 : i32, i32, i32
  }
  func.func @transform_3(%arg0: i32) -> (i32, i32, i32) {
    %c0_i32 = arith.constant 0 : i32
    %c0_i32_0 = arith.constant 0 : i32
    %c0_i32_1 = arith.constant 0 : i32
    return %arg0, %c0_i32, %c0_i32_0 : i32, i32, i32
  }
  func.func @transform_4(%arg0: i32) -> (i32, i32, i32) {
    %c0_i32 = arith.constant 0 : i32
    %c0_i32_0 = arith.constant 0 : i32
    %c0_i32_1 = arith.constant 0 : i32
    %c0_i32_2 = arith.constant 0 : i32
    return %c0_i32, %c0_i32_0, %c0_i32_1 : i32, i32, i32
  }
  func.func @transform_5(%arg0: i32) -> (i32, i32, i32) {
    %c0_i32 = arith.constant 0 : i32
    %c0_i32_0 = arith.constant 0 : i32
    %c0_i32_1 = arith.constant 0 : i32
    %c0_i32_2 = arith.constant 0 : i32
    return %c0_i32, %c0_i32_0, %c0_i32_1 : i32, i32, i32
  }
  func.func @transform_6(%arg0: i32) -> (i32, i32, i32) {
    %c0_i32 = arith.constant 0 : i32
    %c0_i32_0 = arith.constant 0 : i32
    %c0_i32_1 = arith.constant 0 : i32
    %c0_i32_2 = arith.constant 0 : i32
    return %c0_i32, %c0_i32_0, %c0_i32_1 : i32, i32, i32
  }
  func.func @transform_7(%arg0: i32) -> (i32, i32, i32) {
    %c0_i32 = arith.constant 0 : i32
    %c0_i32_0 = arith.constant 0 : i32
    %c0_i32_1 = arith.constant 0 : i32
    %c0_i32_2 = arith.constant 0 : i32
    return %c0_i32, %c0_i32_0, %c0_i32_1 : i32, i32, i32
  }
  func.func @transform_8(%arg0: i32) -> (i32, i32, i32) {
    %c0_i32 = arith.constant 0 : i32
    %c0_i32_0 = arith.constant 0 : i32
    %c0_i32_1 = arith.constant 0 : i32
    %c0_i32_2 = arith.constant 0 : i32
    return %c0_i32, %c0_i32_0, %c0_i32_1 : i32, i32, i32
  }
  func.func @transform_9(%arg0: i32) -> (i32, i32, i32) {
    %c0_i32 = arith.constant 0 : i32
    %c0_i32_0 = arith.constant 0 : i32
    %c0_i32_1 = arith.constant 0 : i32
    %c0_i32_2 = arith.constant 0 : i32
    return %c0_i32, %c0_i32_0, %c0_i32_1 : i32, i32, i32
  }
  func.func @transform_10(%arg0: i32) -> (i32, i32, i32) {
    %c0_i32 = arith.constant 0 : i32
    %c0_i32_0 = arith.constant 0 : i32
    %c0_i32_1 = arith.constant 0 : i32
    return %arg0, %c0_i32, %c0_i32_0 : i32, i32, i32
  }
  func.func @transform_11(%arg0: i32) -> (i32, i32, i32) {
    %c0_i32 = arith.constant 0 : i32
    %c0_i32_0 = arith.constant 0 : i32
    %c0_i32_1 = arith.constant 0 : i32
    return %arg0, %c0_i32, %c0_i32_0 : i32, i32, i32
  }
}

</mosaic_0001>

<bundles_post_ra>
// kernel: lander_forward.10
= control target key start
LH: loop header
LB: loop body
LE: loop exit
PB: predicated region body
PF: predicated region fallthrough
CT: control target
= control target key end

     0   :  { %vm32_vm0 = vcmask 130048   ;;  %s244_s1 = inlined_call_operand.vmem [shape: f32[16,16], index: 1, kind: input, shape index: {}]   ;;  %s245_s3 = inlined_call_operand.vmem [shape: f32[16,16], index: 3, kind: input, shape index: {}]   ;;  %s246_s0 = inlined_call_operand.vmem [shape: f32[32,16], index: 0, kind: input, shape index: {}]   ;;  %s247_s2 = inlined_call_operand.vmem [shape: f32[1,16], index: 2, kind: input, shape index: {}]   ;;  %s248_s4 = inlined_call_operand.vmem [shape: f32[1,16], index: 4, kind: input, shape index: {}]   ;;  %s249_s5 = inlined_call_operand.vmem [shape: f32[32,16], index: 5, kind: output, shape index: {0}]   ;;  %s250_s6 = inlined_call_operand.vmem [shape: f32[32,16], index: 6, kind: output, shape index: {1}]  }
   0x1   :  { %v27_v0 = vld [vmem:[%s244_s1 + $0x8] sm:$0xff]  ;;  %v26_v2 = vld [vmem:[%s244_s1] sm:$0xff]  ;;  %v24_v4 = vld [vmem:[%s246_s0 + $0x10] sm:$0xff] }
   0x2   :  { %v79_v1 = vld [vmem:[%s245_s3 + $0x8] sm:$0xff]  ;;  %133 = vmatpush.msra.mxu2 %v27_v0  ;;  %v78_v3 = vld [vmem:[%s245_s3] sm:$0xff]  ;;  %59 = vmatpush.msra.mxu0 %v27_v0  ;;  %v25_v6 = vld [vmem:[%s246_s0 + $0x18] sm:$0xff] }
   0x3   :  { %135 = vmatpush.msra.mxu3 %v79_v1  ;;  %98 = vmatpush.msra.mxu1 %v79_v1  ;;  %v22_v5 = vld [vmem:[%s246_s0] sm:$0xff]  ;;  %v23_v7 = vld [vmem:[%s246_s0 + $0x8] sm:$0xff] }
   0x4   :  { %134 = vmatpush.msra.mxu2 %v26_v2  ;;  %60 = vmatpush.msra.mxu0 %v26_v2  ;;  %v137_v8 = vld [vmem:[%s247_s2] ss:$0 sm:$0xff] }
   0x5   :  { %136 = vmatpush.msra.mxu3 %v78_v3  ;;  %127 = vmatmul.msk.f32.vlgmr.msra.gmra.mxu2 %vm32_vm0, %v24_v4  ;;  %v138_v9 = vld [vmem:[%s248_s4] ss:$0 sm:$0xff] }
   0x6   :  { %131 = vmatmul.msk.f32.vlgmr.msra.gmra.mxu3 %vm32_vm0, %v24_v4  ;;  %99 = vmatpush.msra.mxu1 %v78_v3 }
   0x7   :  { %125 = vmatmul.msk.f32.vlgmr.msra.gmra.mxu0 %vm32_vm0, %v22_v5  ;;  %129 = vmatmul.msk.f32.vlgmr.msra.gmra.mxu1 %vm32_vm0, %v22_v5 }
   0xd   :  { %128 = vmatmul.msk.f32.gmra.mxu2 %vm32_vm0, %v25_v6 }
   0xe   :  { %132 = vmatmul.msk.f32.gmra.mxu3 %vm32_vm0, %v25_v6 }
   0xf   :  { %126 = vmatmul.msk.f32.gmra.mxu0 %vm32_vm0, %v23_v7  ;;  %130 = vmatmul.msk.f32.gmra.mxu1 %vm32_vm0, %v23_v7 }
  0x84   :  { %v62_v10 = vpop.f32.mrf.mxu0  ;;  %v101_v11 = vpop.f32.mrf.mxu1 }
  0x85   :  { %v63_v12 = vadd.f32 %v137_v8, %v62_v10  ;;  %v102_v13 = vadd.f32 %v138_v9, %v101_v11 }
  0x87   :  { %74 = vst.msk [vmem:[%s249_s5] sm:$0xff] %vm32_vm0, %v63_v12 }
  0x88   :  { %v68_v14 = vpop.f32.mrf.mxu2  ;;  %113 = vst.msk [vmem:[%s250_s6] sm:$0xff] %vm32_vm0, %v102_v13 }
  0x89   :  { %v107_v15 = vpop.f32.mrf.mxu3  ;;  %v69_v16 = vadd.f32 %v137_v8, %v68_v14 }
  0x8a   :  { %v108_v17 = vadd.f32 %v138_v9, %v107_v15 }
  0x8b   :  { %76 = vst.msk [vmem:[%s249_s5 + $0x10] sm:$0xff] %vm32_vm0, %v69_v16 }
  0x8c   :  { %115 = vst.msk [vmem:[%s250_s6 + $0x10] sm:$0xff] %vm32_vm0, %v108_v17  ;;  %v65_v18 = vpop.f32.mrf.mxu0  ;;  %v104_v19 = vpop.f32.mrf.mxu1 }
  0x8d   :  { %v66_v20 = vadd.f32 %v137_v8, %v65_v18  ;;  %v105_v21 = vadd.f32 %v138_v9, %v104_v19 }
  0x8f   :  { %75 = vst.msk [vmem:[%s249_s5 + $0x8] sm:$0xff] %vm32_vm0, %v66_v20 }
  0x90   :  { %v71_v22 = vpop.f32.mrf.mxu2  ;;  %114 = vst.msk [vmem:[%s250_s6 + $0x8] sm:$0xff] %vm32_vm0, %v105_v21 }
  0x91   :  { %v110_v23 = vpop.f32.mrf.mxu3  ;;  %v72_v24 = vadd.f32 %v137_v8, %v71_v22 }
  0x92   :  { %v111_v25 = vadd.f32 %v138_v9, %v110_v23 }
  0x93   :  { %77 = vst.msk [vmem:[%s249_s5 + $0x18] sm:$0xff] %vm32_vm0, %v72_v24 }
  0x94   :  { %116 = vst.msk [vmem:[%s250_s6 + $0x18] sm:$0xff] %vm32_vm0, %v111_v25 }

// kernel: lander_forward.9
= control target key start
LH: loop header
LB: loop body
LE: loop exit
PB: predicated region body
PF: predicated region fallthrough
CT: control target
= control target key end

     0   :  { %vm44_vm0 = vcmask 130048   ;;  %vm216_vm4 = vcmask 261120   ;;  %s754_s3 = inlined_call_operand.vmem [shape: f32[16,16], index: 3, kind: input, shape index: {}]   ;;  %s755_s0 = inlined_call_operand.vmem [shape: f32[32,16], index: 0, kind: input, shape index: {}, may-alias: {0,1}]   ;;  %s756_s1 = inlined_call_operand.vmem [shape: f32[32,16], index: 1, kind: input, shape index: {}, may-alias: {0,1}]   ;;  %s757_s5 = inlined_call_operand.vmem [shape: f32[1,16], index: 5, kind: input, shape index: {}]   ;;  %s758_s4 = inlined_call_operand.vmem [shape: f32[1,16], index: 4, kind: input, shape index: {}]   ;;  %s759_s2 = inlined_call_operand.vmem [shape: f32[32,32], index: 2, kind: input, shape index: {}]   ;;  %s760_s6 = inlined_call_operand.vmem [shape: f32[1,16], index: 6, kind: input, shape index: {}]   ;;  %s761_s7 = inlined_call_operand.vmem [shape: f32[16,16], index: 7, kind: input, shape index: {}]   ;;  %s762_s8 = inlined_call_operand.vmem [shape: f32[16,16], index: 8, kind: input, shape index: {}]   ;;  %s763_s9 = inlined_call_operand.vmem [shape: f32[1,16], index: 9, kind: input, shape index: {}]   ;;  %s764_s10 = inlined_call_operand.vmem [shape: f32[1,16], index: 10, kind: input, shape index: {}]   ;;  %s765_s11 = inlined_call_operand.vmem [shape: f32[32,16], index: 11, kind: output, shape index: {}]  }
   0x1   :  { %v39_v0 = vld [vmem:[%s754_s3 + $0x8] sm:$0xff]  ;;  %v38_v1 = vld [vmem:[%s754_s3] sm:$0xff]  ;;  %v42_v2 = vld [vmem:[%s755_s0 + $0x10] sm:$0xff] }
   0x2   :  { %501 = vmatpush.msra.mxu2 %v39_v0  ;;  %71 = vmatpush.msra.mxu0 %v39_v0  ;;  %v40_v3 = vld [vmem:[%s755_s0] sm:$0xff]  ;;  %v43_v4 = vld [vmem:[%s755_s0 + $0x18] sm:$0xff]  ;;  %v41_v5 = vld [vmem:[%s755_s0 + $0x8] sm:$0xff] }
   0x3   :  { %v608_v6 = vld [vmem:[%s756_s1] sm:$0xff]  ;;  %v615_v7 = vld [vmem:[%s756_s1 + $0x8] sm:$0xff]  ;;  %v622_v8 = vld [vmem:[%s756_s1 + $0x10] sm:$0xff] }
   0x4   :  { %502 = vmatpush.msra.mxu2 %v38_v1  ;;  %72 = vmatpush.msra.mxu0 %v38_v1  ;;  %v629_v9 = vld [vmem:[%s756_s1 + $0x18] sm:$0xff]  ;;  %v503_v14 = vld [vmem:[%s757_s5] ss:$0 sm:$0xff]  ;;  %v206_v33 = vld [vmem:[%s759_s2 + $0x10] sm:$0xff] }
   0x5   :  { %478 = vmatmul.msk.f32.vlgmr.msra.gmra.mxu2 %vm44_vm0, %v42_v2  ;;  %476 = vmatmul.msk.f32.vlgmr.msra.gmra.mxu0 %vm44_vm0, %v40_v3  ;;  %v86_v18 = vld [vmem:[%s758_s4] sm:$0x1]  ;;  %vm210_vm2 = vcmp.gt.f32.partialorder %v206_v33, 0.0  ;;  %v205_v46 = vld [vmem:[%s759_s2 + $0x8] sm:$0xff]  ;;  %v207_v49 = vld [vmem:[%s759_s2 + $0x18] sm:$0xff] }
   0x6   :  { %152 = vmatpush.msrb.mxu2 %v39_v0  ;;  %v204_v36 = vld [vmem:[%s759_s2] sm:$0xff]  ;;  %vm209_vm7 = vcmp.gt.f32.partialorder %v205_v46, 0.0  ;;  %vm211_vm9 = vcmp.gt.f32.partialorder %v207_v49, 0.0 }
   0x7   :  { %vm208_vm5 = vcmp.gt.f32.partialorder %v204_v36, 0.0 }
   0x8   :  { %153 = vmatpush.msrb.mxu2 %v38_v1 }
   0xd   :  { %479 = vmatmul.msk.f32.gmra.mxu2 %vm44_vm0, %v43_v4  ;;  %477 = vmatmul.msk.f32.gmra.mxu0 %vm44_vm0, %v41_v5 }
  0x15   :  { %485 = vmatmul.msk.f32.vlgmr.msrb.gmra.mxu2 %vm44_vm0, %v608_v6 }
  0x1d   :  { %486 = vmatmul.msk.f32.gmra.mxu2 %vm44_vm0, %v615_v7 }
  0x25   :  { %487 = vmatmul.msk.f32.gmra.mxu2 %vm44_vm0, %v622_v8 }
  0x2d   :  { %488 = vmatmul.msk.f32.gmra.mxu2 %vm44_vm0, %v629_v9 }
  0x82   :  { %v74_v11 = vpop.f32.mrf.mxu0 }
  0x88   :  { %v80_v10 = vpop.f32.mrf.mxu2 }
  0x8a   :  { %v77_v13 = vpop.f32.mrf.mxu0 }
  0x90   :  { %v83_v12 = vpop.f32.mrf.mxu2 }
  0x91   :  { %480 = vmatpush.xpose.msk.msra.mxu1 %vm44_vm0, %v83_v12  ;;  %349 = vmatpush.msra.mxu3 %v83_v12 }
  0x93   :  { %350 = vmatpush.msra.mxu3 %v80_v10 }
  0x95   :  { %481 = vmatpush.xpose.msk.msra.mxu1 %vm44_vm0, %v80_v10  ;;  %351 = vmatpush.msra.mxu3 %v77_v13 }
  0x97   :  { %352 = vmatpush.msra.mxu3 %v74_v11 }
  0x98   :  { %v155_v15 = vpop.f32.mrf.mxu2 }
  0x99   :  { %v171_v16 = vmul.f32 %v503_v14, %v155_v15  ;;  %482 = vmatpush.xpose.msk.msra.mxu1 %vm44_vm0, %v77_v13 }
  0x9b   :  { %v175_v17 = vsel %vm44_vm0, %v171_v16, 0.0 }
  0x9c   :  { %176 = vadd.xlane.f32.xlu0 %v175_v17 }
  0x9d   :  { %483 = vmatpush.xpose.msk.msra.mxu1 %vm44_vm0, %v74_v11 }
  0xa0   :  { %484 = vmatmul.msk.f32.vlgmr.msra.gmra.mxu1 %vm44_vm0, %v86_v18  ;;  %v158_v19 = vpop.f32.mrf.mxu2 }
  0xa1   :  { %v172_v20 = vmul.f32 %v503_v14, %v158_v19 }
  0xa3   :  { %v178_v21 = vsel %vm44_vm0, %v172_v20, 0.0 }
  0xa4   :  { %179 = vadd.xlane.f32.xlu0 %v178_v21 }
  0xa8   :  { %v161_v22 = vpop.f32.mrf.mxu2 }
  0xa9   :  { %v173_v23 = vmul.f32 %v503_v14, %v161_v22 }
  0xab   :  { %v181_v24 = vsel %vm44_vm0, %v173_v23, 0.0 }
  0xac   :  { %182 = vadd.xlane.f32.xlu1 %v181_v24 }
  0xb0   :  { %v164_v25 = vpop.f32.mrf.mxu2 }
  0xb1   :  { %v174_v26 = vmul.f32 %v503_v14, %v164_v25 }
  0xb3   :  { %v184_v27 = vsel %vm44_vm0, %v174_v26, 0.0 }
  0xb4   :  { %185 = vadd.xlane.f32.xlu1 %v184_v27 }
 0x10f   :  { %v177_v28 = vpop.xlane.xlu0 %176 }
 0x117   :  { %v180_v31 = vpop.xlane.xlu0 %179 }
 0x11d   :  { %v119_v29 = vpop.f32.mrf.mxu1 }
 0x11e   :  { %v187_v30 = vperm.slane %v119_v29, 0 }
 0x11f   :  { %v183_v32 = vpop.xlane.xlu1 %182 }
 0x120   :  { %v190_v34 = vadd.f32 %v187_v30, %v183_v32  ;;  %v188_v35 = vadd.f32 %v187_v30, %v177_v28  ;;  %v189_v37 = vadd.f32 %v187_v30, %v180_v31 }
 0x122   :  { %v198_v38 = vmul.f32 0.2, %v190_v34  ;;  %vm194_vm1 = vcmp.gt.f32.partialorder %v190_v34, 0.0  ;;  %vm192_vm3 = vcmp.gt.f32.partialorder %v188_v35, 0.0  ;;  %v196_v39 = vmul.f32 0.2, %v188_v35 }
 0x123   :  { %v197_v41 = vmul.f32 0.2, %v189_v37  ;;  %vm193_vm6 = vcmp.gt.f32.partialorder %v189_v37, 0.0 }
 0x124   :  { %v202_v40 = vsel %vm194_vm1, %v190_v34, %v198_v38  ;;  %v200_v43 = vsel %vm192_vm3, %v188_v35, %v196_v39  ;;  %v367_v38 = vld [vmem:[%s761_s7 + $0x8] sm:$0xff] }
 0x125   :  { %v214_v42 = vsel %vm210_vm2, %v202_v40, -1e+30  ;;  %v212_v45 = vsel %vm208_vm5, %v200_v43, -1e+30  ;;  %v201_v51 = vsel %vm193_vm6, %v189_v37, %v197_v41  ;;  %v369_v39 = vld [vmem:[%s762_s8 + $0x8] sm:$0xff]  ;;  %v366_v40 = vld [vmem:[%s761_s7] sm:$0xff]  ;;  %425 = vmatpush.msrb.mxu0 %v367_v38 }
 0x126   :  { %v223_v44 = vsel %vm216_vm4, %v214_v42, -inf  ;;  %v217_v48 = vsel %vm216_vm4, %v212_v45, -inf  ;;  %v213_v54 = vsel %vm209_vm7, %v201_v51, -1e+30  ;;  %384 = vmatpush.msrb.mxu1 %v369_v39  ;;  %v368_v41 = vld [vmem:[%s762_s8] sm:$0xff] }
 0x127   :  { %v186_v47 = vpop.xlane.xlu1 %185  ;;  %224 = vmax.xlane.f32.xlu0 %v223_v44  ;;  %218 = vmax.xlane.f32.xlu2 %v217_v48  ;;  %v220_v57 = vsel %vm216_vm4, %v213_v54, -inf }
 0x128   :  { %v191_v50 = vadd.f32 %v187_v30, %v186_v47  ;;  %426 = vmatpush.msrb.mxu0 %v366_v40  ;;  %385 = vmatpush.msrb.mxu1 %v368_v41 }
 0x129   :  { %493 = vmatmul.msk.f32.vlgmr.msrb.gmra.mxu1 %vm44_vm0, %v608_v6 }
 0x12a   :  { %v199_v52 = vmul.f32 0.2, %v191_v50  ;;  %vm195_vm8 = vcmp.gt.f32.partialorder %v191_v50, 0.0 }
 0x12c   :  { %v203_v53 = vsel %vm195_vm8, %v191_v50, %v199_v52 }
 0x12d   :  { %v215_v55 = vsel %vm211_vm9, %v203_v53, -1e+30 }
 0x12e   :  { %v226_v56 = vsel %vm216_vm4, %v215_v55, -inf }
 0x12f   :  { %227 = vmax.xlane.f32.xlu1 %v226_v56  ;;  %221 = vmax.xlane.f32.xlu2 %v220_v57 }
 0x131   :  { %494 = vmatmul.msk.f32.gmra.mxu1 %vm44_vm0, %v615_v7 }
 0x139   :  { %495 = vmatmul.msk.f32.gmra.mxu1 %vm44_vm0, %v622_v8 }
 0x141   :  { %496 = vmatmul.msk.f32.gmra.mxu1 %vm44_vm0, %v629_v9 }
 0x19a   :  { %v225_v58 = vpop.xlane.xlu0 %224  ;;  %v219_v60 = vpop.xlane.xlu2 %218 }
 0x19b   :  { %v231_v59 = vsub.f32 %v214_v42, %v225_v58  ;;  %v229_v61 = vsub.f32 %v212_v45, %v219_v60 }
 0x19d   :  { %v237_v62 = vmul.f32 1.442695, %v231_v59  ;;  %v233_v63 = vmul.f32 1.442695, %v229_v61 }
 0x19f   :  { %507 = vpow2.f32 %v237_v62 }
 0x1a0   :  { %509 = vpow2.f32 %v233_v63 }
 0x1a2   :  { %v228_v0 = vpop.xlane.xlu1 %227  ;;  %v222_v2 = vpop.xlane.xlu2 %221 }
 0x1a3   :  { %v232_v1 = vsub.f32 %v215_v55, %v228_v0  ;;  %v230_v3 = vsub.f32 %v213_v54, %v222_v2 }
 0x1a5   :  { %v508_v4 = vpop.eup %507  ;;  %v239_v5 = vmul.f32 1.442695, %v232_v1  ;;  %v235_v11 = vmul.f32 1.442695, %v230_v3 }
 0x1a6   :  { %v510_v10 = vpop.eup %509  ;;  %v664_v12 = vmul.f32 %v508_v4, %v206_v33 }
 0x1a7   :  { %511 = vpow2.f32 %v239_v5  ;;  %v241_v13 = vmul.f32 %v510_v10, %v204_v36 }
 0x1a8   :  { %513 = vpow2.f32 %v235_v11  ;;  %v251_v14 = vsel %vm216_vm4, %v664_v12, 0.0 }
 0x1a9   :  { %252 = vadd.xlane.f32.xlu1 %v251_v14  ;;  %v245_v15 = vsel %vm216_vm4, %v241_v13, 0.0 }
 0x1aa   :  { %246 = vadd.xlane.f32.xlu2 %v245_v15 }
 0x1ad   :  { %v512_v16 = vpop.eup %511 }
 0x1ae   :  { %v514_v17 = vpop.eup %513  ;;  %v669_v18 = vmul.f32 %v512_v16, %v207_v49 }
 0x1af   :  { %v671_v19 = vmul.f32 %v514_v17, %v205_v46 }
 0x1b0   :  { %v254_v20 = vsel %vm216_vm4, %v669_v18, 0.0 }
 0x1b1   :  { %v248_v21 = vsel %vm216_vm4, %v671_v19, 0.0 }
 0x1b2   :  { %255 = vadd.xlane.f32.xlu2 %v254_v20  ;;  %249 = vadd.xlane.f32.xlu0 %v248_v21 }
 0x21c   :  { %v253_v22 = vpop.xlane.xlu1 %252 }
 0x21d   :  { %v247_v23 = vpop.xlane.xlu2 %246  ;;  %v677_v24 = vmax.f32 %v253_v22, 1e-30 }
 0x21e   :  { %v257_v25 = vmax.f32 %v247_v23, 1e-30  ;;  %v387_v23 = vpop.f32.mrf.mxu1 }
 0x21f   :  { %v302_v62 = vand.u32 2147483648, %v677_v24  ;;  %vm296_vm5 = vweird.f32 %v677_v24  ;;  %v300_v0 = vand.u32 2147483647, %v677_v24 }
 0x220   :  { %515 = vrcp.f32 %v257_v25  ;;  %v272_v34 = vand.u32 2147483648, %v257_v25  ;;  %v270_v37 = vand.u32 2147483647, %v257_v25  ;;  %vm266_vm11 = vweird.f32 %v257_v25 }
 0x221   :  { %517 = vrcp.f32 %v677_v24  ;;  %v303_v3 = vor.u32 1.1754944e-38, %v302_v62  ;;  %vm301_vm7 = vcmp.eq.f32.partialorder %v300_v0, 8.507059e+37 }
 0x222   :  { %v273_v44 = vor.u32 1.1754944e-38, %v272_v34  ;;  %vm271_vm13 = vcmp.eq.f32.partialorder %v270_v37, 8.507059e+37 }
 0x225   :  { %v250_v26 = vpop.xlane.xlu0 %249  ;;  %v256_v27 = vpop.xlane.xlu2 %255 }
 0x226   :  { %v516_v28 = vpop.eup %515  ;;  %v258_v29 = vmax.f32 %v250_v26, 1e-30  ;;  %v680_v30 = vmax.f32 %v256_v27, 1e-30  ;;  %v390_v27 = vpop.f32.mrf.mxu1 }
 0x227   :  { %v262_v31 = vmul.f32 %v516_v28, %v257_v25  ;;  %v682_v32 = vpop.eup %517  ;;  %vm267_vm10 = vweird.f32 %v516_v28 }
 0x228   :  { %519 = vrcp.f32 %v258_v29  ;;  %v292_v35 = vmul.f32 %v682_v32, %v677_v24  ;;  %vm268_vm12 = vmor %vm266_vm11, %vm267_vm10  ;;  %v285_v52 = vand.u32 2147483647, %v258_v29  ;;  %v287_v53 = vand.u32 2147483648, %v258_v29  ;;  %v505_v24 = vld [vmem:[%s763_s9] ss:$0 sm:$0xff] }
 0x229   :  { %v263_v33 = vsub.f32 1.0, %v262_v31  ;;  %521 = vrcp.f32 %v680_v30  ;;  %vm281_vm15 = vweird.f32 %v258_v29  ;;  %vm297_vm2 = vweird.f32 %v682_v32 }
 0x22a   :  { %v293_v45 = vsub.f32 1.0, %v292_v35  ;;  %v288_v58 = vor.u32 1.1754944e-38, %v287_v53  ;;  %vm286_vm3 = vcmp.eq.f32.partialorder %v285_v52, 8.507059e+37  ;;  %vm298_vm6 = vmor %vm296_vm5, %vm297_vm2  ;;  %v317_v7 = vand.u32 2147483648, %v680_v30 }
 0x22b   :  { %v264_v36 = vmul.f32 %v516_v28, %v263_v33  ;;  %vm311_vm9 = vweird.f32 %v680_v30  ;;  %v315_v11 = vand.u32 2147483647, %v680_v30 }
 0x22c   :  { %v294_v56 = vmul.f32 %v682_v32, %v293_v45  ;;  %v318_v14 = vor.u32 1.1754944e-38, %v317_v7 }
 0x22d   :  { %v265_v42 = vadd.f32 %v516_v28, %v264_v36  ;;  %vm316_vm11 = vcmp.eq.f32.partialorder %v315_v11, 8.507059e+37 }
 0x22e   :  { %v520_v43 = vpop.eup %519  ;;  %v295_v60 = vadd.f32 %v682_v32, %v294_v56  ;;  %v393_v37 = vpop.f32.mrf.mxu1 }
 0x22f   :  { %v277_v46 = vmul.f32 %v520_v43, %v258_v29  ;;  %v269_v47 = vsel %vm268_vm12, %v516_v28, %v265_v42  ;;  %v522_v48 = vpop.eup %521  ;;  %vm282_vm14 = vweird.f32 %v520_v43  ;;  %v506_v29 = vld [vmem:[%s764_s10] ss:$0 sm:$0xff] }
 0x230   :  { %v274_v49 = vsel %vm271_vm13, %v273_v44, %v269_v47  ;;  %v307_v54 = vmul.f32 %v522_v48, %v680_v30  ;;  %vm283_vm1 = vmor %vm281_vm15, %vm282_vm14  ;;  %v299_v1 = vsel %vm298_vm6, %v682_v32, %v295_v60  ;;  %vm312_vm8 = vweird.f32 %v522_v48 }
 0x231   :  { %v278_v50 = vsub.f32 1.0, %v277_v46  ;;  %v275_v51 = vmul.f32 %v274_v49, %v241_v13  ;;  %v304_v4 = vsel %vm301_vm7, %v303_v3, %v299_v1  ;;  %vm313_vm10 = vmor %vm311_vm9, %vm312_vm8 }
 0x232   :  { %v308_v6 = vsub.f32 1.0, %v307_v54  ;;  %v305_v10 = vmul.f32 %v304_v4, %v664_v12  ;;  %v504_v12 = vld [vmem:[%s760_s6] ss:$0 sm:$0xff] }
 0x233   :  { %489 = vmatmul.msk.f32.vlgmr.msra.gmra.mxu3 %vm216_vm4, %v275_v51  ;;  %v279_v55 = vmul.f32 %v520_v43, %v278_v50 }
 0x234   :  { %v309_v2 = vmul.f32 %v522_v48, %v308_v6 }
 0x235   :  { %v280_v57 = vadd.f32 %v520_v43, %v279_v55 }
 0x236   :  { %v310_v5 = vadd.f32 %v522_v48, %v309_v2  ;;  %v396_v46 = vpop.f32.mrf.mxu1 }
 0x237   :  { %v284_v59 = vsel %vm283_vm1, %v520_v43, %v280_v57 }
 0x238   :  { %v289_v61 = vsel %vm286_vm3, %v288_v58, %v284_v59  ;;  %v314_v13 = vsel %vm313_vm10, %v522_v48, %v310_v5 }
 0x239   :  { %v290_v63 = vmul.f32 %v289_v61, %v671_v19  ;;  %v319_v15 = vsel %vm316_vm11, %v318_v14, %v314_v13 }
 0x23a   :  { %v320_v8 = vmul.f32 %v319_v15, %v669_v18 }
 0x23b   :  { %490 = vmatmul.msk.f32.gmra.mxu3 %vm216_vm4, %v290_v63 }
 0x243   :  { %491 = vmatmul.msk.f32.gmra.mxu3 %vm216_vm4, %v305_v10 }
 0x24b   :  { %492 = vmatmul.msk.f32.gmra.mxu3 %vm216_vm4, %v320_v8 }
 0x2b6   :  { %v354_v16 = vpop.f32.mrf.mxu3 }
 0x2b7   :  { %v355_v17 = vadd.f32 %v504_v12, %v354_v16 }
 0x2b9   :  { %497 = vmatmul.msk.f32.vlgmr.msrb.gmra.mxu0 %vm44_vm0, %v355_v17 }
 0x2be   :  { %v357_v19 = vpop.f32.mrf.mxu3 }
 0x2bf   :  { %v358_v20 = vadd.f32 %v504_v12, %v357_v19 }
 0x2c1   :  { %498 = vmatmul.msk.f32.gmra.mxu0 %vm44_vm0, %v358_v20 }
 0x2c6   :  { %v360_v21 = vpop.f32.mrf.mxu3 }
 0x2c7   :  { %v361_v22 = vadd.f32 %v504_v12, %v360_v21 }
 0x2c9   :  { %499 = vmatmul.msk.f32.gmra.mxu0 %vm44_vm0, %v361_v22 }
 0x2ce   :  { %v363_v9 = vpop.f32.mrf.mxu3 }
 0x2cf   :  { %v364_v18 = vadd.f32 %v504_v12, %v363_v9 }
 0x2d1   :  { %500 = vmatmul.msk.f32.gmra.mxu0 %vm44_vm0, %v364_v18 }
 0x336   :  { %v428_v25 = vpop.f32.mrf.mxu0 }
 0x337   :  { %v429_v26 = vadd.f32 %v428_v25, %v387_v23 }
 0x339   :  { %v444_v28 = vadd.f32 %v505_v24, %v429_v26 }
 0x33b   :  { %v453_v30 = vmin.f32 %v444_v28, 0.0  ;;  %v448_v31 = vmax.f32 %v444_v28, 0.0 }
 0x33d   :  { %v460_v32 = vmul.f32 %v506_v29, %v453_v30 }
 0x33e   :  { %v431_v33 = vpop.f32.mrf.mxu0 }
 0x33f   :  { %v464_v34 = vadd.f32 %v460_v32, %v448_v31  ;;  %v432_v35 = vadd.f32 %v431_v33, %v390_v27 }
 0x341   :  { %468 = vst.msk [vmem:[%s765_s11] sm:$0xff] %vm44_vm0, %v464_v34  ;;  %v445_v36 = vadd.f32 %v505_v24, %v432_v35 }
 0x343   :  { %v454_v38 = vmin.f32 %v445_v36, 0.0  ;;  %v449_v39 = vmax.f32 %v445_v36, 0.0 }
 0x345   :  { %v461_v40 = vmul.f32 %v506_v29, %v454_v38 }
 0x346   :  { %v434_v41 = vpop.f32.mrf.mxu0 }
 0x347   :  { %v465_v42 = vadd.f32 %v461_v40, %v449_v39  ;;  %v435_v43 = vadd.f32 %v434_v41, %v393_v37 }
 0x349   :  { %469 = vst.msk [vmem:[%s765_s11 + $0x8] sm:$0xff] %vm44_vm0, %v465_v42  ;;  %v446_v44 = vadd.f32 %v505_v24, %v435_v43 }
 0x34b   :  { %v455_v45 = vmin.f32 %v446_v44, 0.0  ;;  %v450_v47 = vmax.f32 %v446_v44, 0.0 }
 0x34d   :  { %v462_v48 = vmul.f32 %v506_v29, %v455_v45 }
 0x34e   :  { %v437_v49 = vpop.f32.mrf.mxu0 }
 0x34f   :  { %v466_v50 = vadd.f32 %v462_v48, %v450_v47  ;;  %v438_v51 = vadd.f32 %v437_v49, %v396_v46 }
 0x351   :  { %470 = vst.msk [vmem:[%s765_s11 + $0x10] sm:$0xff] %vm44_vm0, %v466_v50  ;;  %v447_v52 = vadd.f32 %v505_v24, %v438_v51 }
 0x353   :  { %v456_v53 = vmin.f32 %v447_v52, 0.0  ;;  %v451_v54 = vmax.f32 %v447_v52, 0.0 }
 0x355   :  { %v463_v55 = vmul.f32 %v506_v29, %v456_v53 }
 0x357   :  { %v467_v56 = vadd.f32 %v463_v55, %v451_v54 }
 0x359   :  { %471 = vst.msk [vmem:[%s765_s11 + $0x18] sm:$0xff] %vm44_vm0, %v467_v56 }

// kernel: lander_forward.6
= control target key start
LH: loop header
LB: loop body
LE: loop exit
PB: predicated region body
PF: predicated region fallthrough
CT: control target
= control target key end

     0   :  { %vm46_vm0 = vcmask 261120   ;;  %s780_s3 = inlined_call_operand.vmem [shape: f32[32,32], index: 3, kind: input, shape index: {}]   ;;  %s781_s0 = inlined_call_operand.vmem [shape: f32[32,32], index: 0, kind: input, shape index: {}, may-alias: {0,1}]   ;;  %s782_s1 = inlined_call_operand.vmem [shape: f32[32,32], index: 1, kind: input, shape index: {}, may-alias: {0,1}]   ;;  %s783_s5 = inlined_call_operand.vmem [shape: f32[1,32], index: 5, kind: input, shape index: {}]   ;;  %s784_s4 = inlined_call_operand.vmem [shape: f32[1,32], index: 4, kind: input, shape index: {}]   ;;  %s785_s2 = inlined_call_operand.vmem [shape: f32[32,32], index: 2, kind: input, shape index: {}]   ;;  %s786_s6 = inlined_call_operand.vmem [shape: f32[1,32], index: 6, kind: input, shape index: {}]   ;;  %s787_s8 = inlined_call_operand.vmem [shape: f32[32,32], index: 8, kind: input, shape index: {}]   ;;  %s788_s7 = inlined_call_operand.vmem [shape: f32[32,32], index: 7, kind: input, shape index: {}]   ;;  %s789_s9 = inlined_call_operand.vmem [shape: f32[1,32], index: 9, kind: input, shape index: {}]   ;;  %s790_s10 = inlined_call_operand.vmem [shape: f32[1,32], index: 10, kind: input, shape index: {}]   ;;  %s791_s11 = inlined_call_operand.vmem [shape: f32[32,32], index: 11, kind: output, shape index: {}]  }
   0x1   :  { %v41_v0 = vld [vmem:[%s780_s3 + $0x18] sm:$0xff]  ;;  %v40_v1 = vld [vmem:[%s780_s3 + $0x10] sm:$0xff]  ;;  %v39_v2 = vld [vmem:[%s780_s3 + $0x8] sm:$0xff] }
   0x2   :  { %506 = vmatpush.msra.mxu2 %v41_v0  ;;  %507 = vmatpush.msra.mxu3 %v41_v0  ;;  %v38_v3 = vld [vmem:[%s780_s3] sm:$0xff]  ;;  %v43_v4 = vld [vmem:[%s781_s0 + $0x8] sm:$0xff]  ;;  %v45_v5 = vld [vmem:[%s781_s0 + $0x18] sm:$0xff] }
   0x3   :  { %71 = vmatpush.msra.mxu0 %v41_v0  ;;  %v42_v6 = vld [vmem:[%s781_s0] sm:$0xff]  ;;  %v44_v7 = vld [vmem:[%s781_s0 + $0x10] sm:$0xff]  ;;  %v632_v9 = vld [vmem:[%s782_s1 + $0x8] sm:$0xff] }
   0x4   :  { %508 = vmatpush.msra.mxu2 %v40_v1  ;;  %509 = vmatpush.msra.mxu3 %v40_v1  ;;  %v625_v8 = vld [vmem:[%s782_s1] sm:$0xff]  ;;  %v639_v10 = vld [vmem:[%s782_s1 + $0x10] sm:$0xff]  ;;  %v646_v11 = vld [vmem:[%s782_s1 + $0x18] sm:$0xff] }
   0x5   :  { %72 = vmatpush.msra.mxu0 %v40_v1  ;;  %v514_v16 = vld [vmem:[%s783_s5] ss:$0 sm:$0xff]  ;;  %v208_v39 = vld [vmem:[%s785_s2 + $0x10] sm:$0xff]  ;;  %v207_v44 = vld [vmem:[%s785_s2 + $0x8] sm:$0xff] }
   0x6   :  { %510 = vmatpush.msra.mxu2 %v39_v2  ;;  %511 = vmatpush.msra.mxu3 %v39_v2  ;;  %v88_v19 = vld [vmem:[%s784_s4] sm:$0x1]  ;;  %vm212_vm5 = vcmp.gt.f32.partialorder %v208_v39, 0.0  ;;  %vm211_vm6 = vcmp.gt.f32.partialorder %v207_v44, 0.0  ;;  %v209_v53 = vld [vmem:[%s785_s2 + $0x18] sm:$0xff] }
   0x7   :  { %73 = vmatpush.msra.mxu0 %v39_v2  ;;  %v206_v34 = vld [vmem:[%s785_s2] sm:$0xff]  ;;  %vm213_vm8 = vcmp.gt.f32.partialorder %v209_v53, 0.0 }
   0x8   :  { %512 = vmatpush.msra.mxu2 %v38_v3  ;;  %513 = vmatpush.msra.mxu3 %v38_v3  ;;  %vm210_vm2 = vcmp.gt.f32.partialorder %v206_v34, 0.0 }
   0x9   :  { %482 = vmatmul.msk.f32.vlgmr.msra.gmra.mxu2 %vm46_vm0, %v43_v4  ;;  %484 = vmatmul.msk.f32.vlgmr.msra.gmra.mxu3 %vm46_vm0, %v45_v5 }
   0xa   :  { %152 = vmatpush.msrb.mxu2 %v41_v0  ;;  %74 = vmatpush.msra.mxu0 %v38_v3 }
   0xb   :  { %481 = vmatmul.msk.f32.vlgmr.msra.gmra.mxu0 %vm46_vm0, %v42_v6 }
   0xc   :  { %153 = vmatpush.msrb.mxu2 %v40_v1 }
   0xe   :  { %154 = vmatpush.msrb.mxu2 %v39_v2 }
  0x10   :  { %155 = vmatpush.msrb.mxu2 %v38_v3 }
  0x11   :  { %483 = vmatmul.msk.f32.gmra.mxu2 %vm46_vm0, %v44_v7 }
  0x19   :  { %490 = vmatmul.msk.f32.vlgmr.msrb.gmra.mxu2 %vm46_vm0, %v625_v8 }
  0x21   :  { %491 = vmatmul.msk.f32.gmra.mxu2 %vm46_vm0, %v632_v9 }
  0x29   :  { %492 = vmatmul.msk.f32.gmra.mxu2 %vm46_vm0, %v639_v10 }
  0x31   :  { %493 = vmatmul.msk.f32.gmra.mxu2 %vm46_vm0, %v646_v11 }
  0x88   :  { %v76_v15 = vpop.f32.mrf.mxu0 }
  0x8c   :  { %v79_v12 = vpop.f32.mrf.mxu2  ;;  %v85_v13 = vpop.f32.mrf.mxu3 }
  0x8d   :  { %485 = vmatpush.xpose.msk.msra.mxu1 %vm46_vm0, %v85_v13  ;;  %350 = vmatpush.msrb.mxu3 %v85_v13 }
  0x94   :  { %v82_v14 = vpop.f32.mrf.mxu2 }
  0x95   :  { %486 = vmatpush.xpose.msk.msra.mxu1 %vm46_vm0, %v82_v14  ;;  %351 = vmatpush.msrb.mxu3 %v82_v14 }
  0x97   :  { %352 = vmatpush.msrb.mxu3 %v79_v12 }
  0x99   :  { %487 = vmatpush.xpose.msk.msra.mxu1 %vm46_vm0, %v79_v12  ;;  %353 = vmatpush.msrb.mxu3 %v76_v15 }
  0x9c   :  { %v157_v17 = vpop.f32.mrf.mxu2 }
  0x9d   :  { %v173_v18 = vmul.f32 %v514_v16, %v157_v17  ;;  %488 = vmatpush.xpose.msk.msra.mxu1 %vm46_vm0, %v76_v15 }
  0x9f   :  { %v177_v20 = vsel %vm46_vm0, %v173_v18, 0.0 }
  0xa0   :  { %489 = vmatmul.msk.f32.vlgmr.msra.gmra.mxu1 %vm46_vm0, %v88_v19  ;;  %178 = vadd.xlane.f32.xlu0 %v177_v20 }
  0xa4   :  { %v160_v21 = vpop.f32.mrf.mxu2 }
  0xa5   :  { %v174_v22 = vmul.f32 %v514_v16, %v160_v21 }
  0xa7   :  { %v180_v23 = vsel %vm46_vm0, %v174_v22, 0.0 }
  0xa8   :  { %181 = vadd.xlane.f32.xlu0 %v180_v23 }
  0xac   :  { %v163_v24 = vpop.f32.mrf.mxu2 }
  0xad   :  { %v175_v25 = vmul.f32 %v514_v16, %v163_v24 }
  0xaf   :  { %v183_v26 = vsel %vm46_vm0, %v175_v25, 0.0 }
  0xb0   :  { %184 = vadd.xlane.f32.xlu1 %v183_v26 }
  0xb4   :  { %v166_v27 = vpop.f32.mrf.mxu2 }
  0xb5   :  { %v176_v28 = vmul.f32 %v514_v16, %v166_v27 }
  0xb7   :  { %v186_v29 = vsel %vm46_vm0, %v176_v28, 0.0 }
  0xb8   :  { %187 = vadd.xlane.f32.xlu1 %v186_v29 }
 0x113   :  { %v179_v30 = vpop.xlane.xlu0 %178 }
 0x11b   :  { %v182_v32 = vpop.xlane.xlu0 %181 }
 0x11d   :  { %v121_v31 = vpop.f32.mrf.mxu1 }
 0x11e   :  { %v189_v33 = vperm.slane %v121_v31, 0 }
 0x120   :  { %v191_v35 = vadd.f32 %v189_v33, %v182_v32  ;;  %v190_v36 = vadd.f32 %v189_v33, %v179_v30 }
 0x122   :  { %vm194_vm1 = vcmp.gt.f32.partialorder %v190_v36, 0.0  ;;  %v198_v37 = vmul.f32 0.2, %v190_v36  ;;  %v199_v40 = vmul.f32 0.2, %v191_v35  ;;  %vm195_vm3 = vcmp.gt.f32.partialorder %v191_v35, 0.0 }
 0x123   :  { %v185_v38 = vpop.xlane.xlu1 %184 }
 0x124   :  { %v192_v41 = vadd.f32 %v189_v33, %v185_v38  ;;  %v202_v42 = vsel %vm194_vm1, %v190_v36, %v198_v37  ;;  %v203_v48 = vsel %vm195_vm3, %v191_v35, %v199_v40  ;;  %v374_v40 = vld [vmem:[%s787_s8 + $0x18] sm:$0xff] }
 0x125   :  { %v214_v43 = vsel %vm210_vm2, %v202_v42, -1e+30  ;;  %v215_v52 = vsel %vm211_vm6, %v203_v48, -1e+30  ;;  %v373_v42 = vld [vmem:[%s787_s8 + $0x10] sm:$0xff]  ;;  %387 = vmatpush.msrb.mxu1 %v374_v40 }
 0x126   :  { %v200_v45 = vmul.f32 0.2, %v192_v41  ;;  %v218_v46 = vsel %vm46_vm0, %v214_v43, -inf  ;;  %vm196_vm4 = vcmp.gt.f32.partialorder %v192_v41, 0.0  ;;  %v221_v56 = vsel %vm46_vm0, %v215_v52, -inf }
 0x127   :  { %219 = vmax.xlane.f32.xlu2 %v218_v46  ;;  %v368_v46 = vld [vmem:[%s788_s7 + $0x8] sm:$0xff]  ;;  %388 = vmatpush.msrb.mxu1 %v373_v42 }
 0x128   :  { %v204_v47 = vsel %vm196_vm4, %v192_v41, %v200_v45  ;;  %v370_v41 = vld [vmem:[%s788_s7 + $0x18] sm:$0xff]  ;;  %v372_v45 = vld [vmem:[%s787_s8 + $0x8] sm:$0xff] }
 0x129   :  { %v216_v49 = vsel %vm212_vm5, %v204_v47, -1e+30  ;;  %428 = vmatpush.msrb.mxu0 %v370_v41  ;;  %389 = vmatpush.msrb.mxu1 %v372_v45 }
 0x12a   :  { %v224_v50 = vsel %vm46_vm0, %v216_v49, -inf }
 0x12b   :  { %v188_v51 = vpop.xlane.xlu1 %187  ;;  %225 = vmax.xlane.f32.xlu0 %v224_v50 }
 0x12c   :  { %v193_v54 = vadd.f32 %v189_v33, %v188_v51 }
 0x12e   :  { %v201_v55 = vmul.f32 0.2, %v193_v54  ;;  %vm197_vm7 = vcmp.gt.f32.partialorder %v193_v54, 0.0 }
 0x12f   :  { %222 = vmax.xlane.f32.xlu2 %v221_v56 }
 0x130   :  { %v205_v57 = vsel %vm197_vm7, %v193_v54, %v201_v55 }
 0x131   :  { %v217_v58 = vsel %vm213_vm8, %v205_v57, -1e+30 }
 0x132   :  { %v227_v59 = vsel %vm46_vm0, %v217_v58, -inf }
 0x133   :  { %228 = vmax.xlane.f32.xlu1 %v227_v59 }
 0x19a   :  { %v220_v60 = vpop.xlane.xlu2 %219 }
 0x19b   :  { %v230_v61 = vsub.f32 %v214_v43, %v220_v60  ;;  %v369_v43 = vld [vmem:[%s788_s7 + $0x10] sm:$0xff] }
 0x19c   :  { %429 = vmatpush.msrb.mxu0 %v369_v43 }
 0x19d   :  { %v234_v62 = vmul.f32 1.442695, %v230_v61 }
 0x19e   :  { %v226_v63 = vpop.xlane.xlu0 %225  ;;  %430 = vmatpush.msrb.mxu0 %v368_v46 }
 0x19f   :  { %518 = vpow2.f32 %v234_v62  ;;  %v232_v0 = vsub.f32 %v216_v49, %v226_v63 }
 0x1a1   :  { %v238_v1 = vmul.f32 1.442695, %v232_v0 }
 0x1a2   :  { %v223_v2 = vpop.xlane.xlu2 %222 }
 0x1a3   :  { %520 = vpow2.f32 %v238_v1  ;;  %v231_v3 = vsub.f32 %v215_v52, %v223_v2 }
 0x1a5   :  { %v519_v4 = vpop.eup %518  ;;  %v236_v5 = vmul.f32 1.442695, %v231_v3 }
 0x1a6   :  { %v229_v6 = vpop.xlane.xlu1 %228  ;;  %v681_v7 = vmul.f32 %v519_v4, %v206_v34 }
 0x1a7   :  { %522 = vpow2.f32 %v236_v5  ;;  %v233_v12 = vsub.f32 %v217_v58, %v229_v6 }
 0x1a8   :  { %v246_v13 = vsel %vm46_vm0, %v681_v7, 0.0 }
 0x1a9   :  { %v521_v14 = vpop.eup %520  ;;  %v240_v15 = vmul.f32 1.442695, %v233_v12  ;;  %247 = vadd.xlane.f32.xlu2 %v246_v13 }
 0x1aa   :  { %v685_v16 = vmul.f32 %v521_v14, %v208_v39 }
 0x1ab   :  { %524 = vpow2.f32 %v240_v15 }
 0x1ac   :  { %v252_v17 = vsel %vm46_vm0, %v685_v16, 0.0 }
 0x1ad   :  { %v523_v18 = vpop.eup %522  ;;  %253 = vadd.xlane.f32.xlu1 %v252_v17 }
 0x1ae   :  { %v689_v19 = vmul.f32 %v523_v18, %v207_v44 }
 0x1b0   :  { %v249_v20 = vsel %vm46_vm0, %v689_v19, 0.0 }
 0x1b1   :  { %v525_v21 = vpop.eup %524  ;;  %250 = vadd.xlane.f32.xlu0 %v249_v20 }
 0x1b2   :  { %v693_v22 = vmul.f32 %v525_v21, %v209_v53 }
 0x1b4   :  { %v255_v23 = vsel %vm46_vm0, %v693_v22, 0.0 }
 0x1b5   :  { %256 = vadd.xlane.f32.xlu2 %v255_v23 }
 0x21c   :  { %v248_v24 = vpop.xlane.xlu2 %247 }
 0x21d   :  { %v258_v25 = vmax.f32 %v248_v24, 1e-30  ;;  %v371_v24 = vld [vmem:[%s787_s8] sm:$0xff] }
 0x21e   :  { %390 = vmatpush.msrb.mxu1 %v371_v24 }
 0x21f   :  { %526 = vrcp.f32 %v258_v25  ;;  %v273_v35 = vand.u32 2147483648, %v258_v25  ;;  %v271_v39 = vand.u32 2147483647, %v258_v25  ;;  %vm267_vm10 = vweird.f32 %v258_v25  ;;  %498 = vmatmul.msk.f32.vlgmr.msrb.gmra.mxu1 %vm46_vm0, %v625_v8 }
 0x220   :  { %v254_v26 = vpop.xlane.xlu1 %253 }
 0x221   :  { %v697_v27 = vmax.f32 %v254_v26, 1e-30  ;;  %v274_v48 = vor.u32 1.1754944e-38, %v273_v35  ;;  %vm272_vm12 = vcmp.eq.f32.partialorder %v271_v39, 8.507059e+37  ;;  %v517_v35 = vld [vmem:[%s790_s10] ss:$0 sm:$0xff] }
 0x223   :  { %528 = vrcp.f32 %v697_v27  ;;  %v303_v3 = vand.u32 2147483648, %v697_v27  ;;  %vm297_vm3 = vweird.f32 %v697_v27  ;;  %v301_v5 = vand.u32 2147483647, %v697_v27 }
 0x224   :  { %v251_v28 = vpop.xlane.xlu0 %250 }
 0x225   :  { %v527_v29 = vpop.eup %526  ;;  %v259_v30 = vmax.f32 %v251_v28, 1e-30  ;;  %v304_v12 = vor.u32 1.1754944e-38, %v303_v3  ;;  %vm302_vm5 = vcmp.eq.f32.partialorder %v301_v5, 8.507059e+37 }
 0x226   :  { %v263_v31 = vmul.f32 %v527_v29, %v258_v25  ;;  %vm268_vm9 = vweird.f32 %v527_v29 }
 0x227   :  { %530 = vrcp.f32 %v259_v30  ;;  %vm269_vm11 = vmor %vm267_vm10, %vm268_vm9  ;;  %v286_v56 = vand.u32 2147483647, %v259_v30  ;;  %v288_v57 = vand.u32 2147483648, %v259_v30  ;;  %vm282_vm14 = vweird.f32 %v259_v30  ;;  %499 = vmatmul.msk.f32.gmra.mxu1 %vm46_vm0, %v632_v9 }
 0x228   :  { %v264_v32 = vsub.f32 1.0, %v263_v31  ;;  %v257_v33 = vpop.xlane.xlu2 %256 }
 0x229   :  { %v529_v34 = vpop.eup %528  ;;  %v700_v36 = vmax.f32 %v257_v33, 1e-30  ;;  %vm287_vm1 = vcmp.eq.f32.partialorder %v286_v56, 8.507059e+37  ;;  %v289_v62 = vor.u32 1.1754944e-38, %v288_v57 }
 0x22a   :  { %v265_v37 = vmul.f32 %v527_v29, %v264_v32  ;;  %v293_v38 = vmul.f32 %v529_v34, %v697_v27  ;;  %vm298_vm2 = vweird.f32 %v529_v34 }
 0x22b   :  { %532 = vrcp.f32 %v700_v36  ;;  %vm299_vm4 = vmor %vm297_vm3, %vm298_vm2  ;;  %v318_v15 = vand.u32 2147483648, %v700_v36  ;;  %vm312_vm7 = vweird.f32 %v700_v36  ;;  %v316_v18 = vand.u32 2147483647, %v700_v36 }
 0x22c   :  { %v266_v44 = vadd.f32 %v527_v29, %v265_v37  ;;  %v294_v49 = vsub.f32 1.0, %v293_v38 }
 0x22d   :  { %v531_v47 = vpop.eup %530  ;;  %v319_v20 = vor.u32 1.1754944e-38, %v318_v15  ;;  %vm317_vm9 = vcmp.eq.f32.partialorder %v316_v18, 8.507059e+37 }
 0x22e   :  { %v278_v50 = vmul.f32 %v531_v47, %v259_v30  ;;  %v270_v51 = vsel %vm269_vm11, %v527_v29, %v266_v44  ;;  %vm283_vm13 = vweird.f32 %v531_v47  ;;  %v295_v60 = vmul.f32 %v529_v34, %v294_v49  ;;  %v516_v30 = vld [vmem:[%s789_s9] ss:$0 sm:$0xff] }
 0x22f   :  { %v275_v52 = vsel %vm272_vm12, %v274_v48, %v270_v51  ;;  %vm284_vm15 = vmor %vm282_vm14, %vm283_vm13  ;;  %500 = vmatmul.msk.f32.gmra.mxu1 %vm46_vm0, %v639_v10 }
 0x230   :  { %v279_v53 = vsub.f32 1.0, %v278_v50  ;;  %v276_v54 = vmul.f32 %v275_v52, %v681_v7  ;;  %v296_v1 = vadd.f32 %v529_v34, %v295_v60 }
 0x231   :  { %v533_v55 = vpop.eup %532 }
 0x232   :  { %v308_v58 = vmul.f32 %v533_v55, %v700_v36  ;;  %494 = vmatmul.msk.f32.vlgmr.msrb.gmra.mxu3 %vm46_vm0, %v276_v54  ;;  %v280_v59 = vmul.f32 %v531_v47, %v279_v53  ;;  %v300_v6 = vsel %vm299_vm4, %v529_v34, %v296_v1  ;;  %vm313_vm6 = vweird.f32 %v533_v55 }
 0x233   :  { %v305_v13 = vsel %vm302_vm5, %v304_v12, %v300_v6  ;;  %vm314_vm8 = vmor %vm312_vm7, %vm313_vm6 }
 0x234   :  { %v281_v61 = vadd.f32 %v531_v47, %v280_v59  ;;  %v309_v63 = vsub.f32 1.0, %v308_v58  ;;  %v306_v17 = vmul.f32 %v305_v13, %v685_v16  ;;  %v367_v16 = vld [vmem:[%s788_s7] sm:$0xff] }
 0x235   :  { %431 = vmatpush.msrb.mxu0 %v367_v16 }
 0x236   :  { %v285_v0 = vsel %vm284_vm15, %v531_v47, %v281_v61  ;;  %v310_v7 = vmul.f32 %v533_v55, %v309_v63 }
 0x237   :  { %v290_v2 = vsel %vm287_vm1, %v289_v62, %v285_v0  ;;  %501 = vmatmul.msk.f32.gmra.mxu1 %vm46_vm0, %v646_v11 }
 0x238   :  { %v291_v4 = vmul.f32 %v290_v2, %v689_v19  ;;  %v311_v14 = vadd.f32 %v533_v55, %v310_v7 }
 0x23a   :  { %495 = vmatmul.msk.f32.gmra.mxu3 %vm46_vm0, %v291_v4  ;;  %v315_v19 = vsel %vm314_vm8, %v533_v55, %v311_v14 }
 0x23b   :  { %v320_v21 = vsel %vm317_vm9, %v319_v20, %v315_v19 }
 0x23c   :  { %v321_v23 = vmul.f32 %v320_v21, %v693_v22  ;;  %v515_v22 = vld [vmem:[%s786_s6] ss:$0 sm:$0xff] }
 0x242   :  { %496 = vmatmul.msk.f32.gmra.mxu3 %vm46_vm0, %v306_v17 }
 0x24a   :  { %497 = vmatmul.msk.f32.gmra.mxu3 %vm46_vm0, %v321_v23 }
 0x29c   :  { %v392_v11 = vpop.f32.mrf.mxu1 }
 0x2a4   :  { %v395_v33 = vpop.f32.mrf.mxu1 }
 0x2ac   :  { %v398_v43 = vpop.f32.mrf.mxu1 }
 0x2b4   :  { %v401_v52 = vpop.f32.mrf.mxu1 }
 0x2b5   :  { %v355_v25 = vpop.f32.mrf.mxu3 }
 0x2b6   :  { %v356_v26 = vadd.f32 %v515_v22, %v355_v25 }
 0x2b8   :  { %502 = vmatmul.msk.f32.vlgmr.msrb.gmra.mxu0 %vm46_vm0, %v356_v26 }
 0x2bd   :  { %v358_v27 = vpop.f32.mrf.mxu3 }
 0x2be   :  { %v359_v28 = vadd.f32 %v515_v22, %v358_v27 }
 0x2c0   :  { %503 = vmatmul.msk.f32.gmra.mxu0 %vm46_vm0, %v359_v28 }
 0x2c5   :  { %v361_v8 = vpop.f32.mrf.mxu3 }
 0x2c6   :  { %v362_v9 = vadd.f32 %v515_v22, %v361_v8 }
 0x2c8   :  { %504 = vmatmul.msk.f32.gmra.mxu0 %vm46_vm0, %v362_v9 }
 0x2cd   :  { %v364_v10 = vpop.f32.mrf.mxu3 }
 0x2ce   :  { %v365_v29 = vadd.f32 %v515_v22, %v364_v10 }
 0x2d0   :  { %505 = vmatmul.msk.f32.gmra.mxu0 %vm46_vm0, %v365_v29 }
 0x335   :  { %v433_v31 = vpop.f32.mrf.mxu0 }
 0x336   :  { %v434_v32 = vadd.f32 %v433_v31, %v392_v11 }
 0x338   :  { %v449_v34 = vadd.f32 %v516_v30, %v434_v32 }
 0x33a   :  { %v458_v36 = vmin.f32 %v449_v34, 0.0  ;;  %v453_v37 = vmax.f32 %v449_v34, 0.0 }
 0x33c   :  { %v465_v38 = vmul.f32 %v517_v35, %v458_v36 }
 0x33d   :  { %v436_v39 = vpop.f32.mrf.mxu0 }
 0x33e   :  { %v469_v40 = vadd.f32 %v465_v38, %v453_v37  ;;  %v437_v41 = vadd.f32 %v436_v39, %v395_v33 }
 0x340   :  { %473 = vst.msk [vmem:[%s791_s11] sm:$0xff] %vm46_vm0, %v469_v40  ;;  %v450_v42 = vadd.f32 %v516_v30, %v437_v41 }
 0x342   :  { %v459_v44 = vmin.f32 %v450_v42, 0.0  ;;  %v454_v45 = vmax.f32 %v450_v42, 0.0 }
 0x344   :  { %v466_v46 = vmul.f32 %v517_v35, %v459_v44 }
 0x345   :  { %v439_v47 = vpop.f32.mrf.mxu0 }
 0x346   :  { %v470_v48 = vadd.f32 %v466_v46, %v454_v45  ;;  %v440_v49 = vadd.f32 %v439_v47, %v398_v43 }
 0x348   :  { %474 = vst.msk [vmem:[%s791_s11 + $0x8] sm:$0xff] %vm46_vm0, %v470_v48  ;;  %v451_v50 = vadd.f32 %v516_v30, %v440_v49 }
 0x34a   :  { %v460_v51 = vmin.f32 %v451_v50, 0.0  ;;  %v455_v53 = vmax.f32 %v451_v50, 0.0 }
 0x34c   :  { %v467_v54 = vmul.f32 %v517_v35, %v460_v51 }
 0x34d   :  { %v442_v55 = vpop.f32.mrf.mxu0 }
 0x34e   :  { %v471_v56 = vadd.f32 %v467_v54, %v455_v53  ;;  %v443_v57 = vadd.f32 %v442_v55, %v401_v52 }
 0x350   :  { %475 = vst.msk [vmem:[%s791_s11 + $0x10] sm:$0xff] %vm46_vm0, %v471_v56  ;;  %v452_v58 = vadd.f32 %v516_v30, %v443_v57 }
 0x352   :  { %v461_v59 = vmin.f32 %v452_v58, 0.0  ;;  %v456_v60 = vmax.f32 %v452_v58, 0.0 }
 0x354   :  { %v468_v61 = vmul.f32 %v517_v35, %v461_v59 }
 0x356   :  { %v472_v62 = vadd.f32 %v468_v61, %v456_v60 }
 0x358   :  { %476 = vst.msk [vmem:[%s791_s11 + $0x18] sm:$0xff] %vm46_vm0, %v472_v62 }

// kernel: lander_forward.8
= control target key start
LH: loop header
LB: loop body
LE: loop exit
PB: predicated region body
PF: predicated region fallthrough
CT: control target
= control target key end

     0   :  { %vm46_vm0 = vcmask 261120   ;;  %s781_s3 = inlined_call_operand.vmem [shape: f32[32,32], index: 3, kind: input, shape index: {}]   ;;  %s782_s0 = inlined_call_operand.vmem [shape: f32[32,32], index: 0, kind: input, shape index: {}, may-alias: {0,1}]   ;;  %s783_s1 = inlined_call_operand.vmem [shape: f32[32,32], index: 1, kind: input, shape index: {}, may-alias: {0,1}]   ;;  %s784_s5 = inlined_call_operand.vmem [shape: f32[1,32], index: 5, kind: input, shape index: {}]   ;;  %s785_s4 = inlined_call_operand.vmem [shape: f32[1,32], index: 4, kind: input, shape index: {}]   ;;  %s786_s2 = inlined_call_operand.vmem [shape: f32[32,32], index: 2, kind: input, shape index: {}]   ;;  %s787_s6 = inlined_call_operand.vmem [shape: f32[1,32], index: 6, kind: input, shape index: {}]   ;;  %s788_s8 = inlined_call_operand.vmem [shape: f32[32,16], index: 8, kind: input, shape index: {}]   ;;  %s789_s7 = inlined_call_operand.vmem [shape: f32[32,16], index: 7, kind: input, shape index: {}]   ;;  %s790_s9 = inlined_call_operand.vmem [shape: f32[1,16], index: 9, kind: input, shape index: {}]   ;;  %s791_s10 = inlined_call_operand.vmem [shape: f32[1,16], index: 10, kind: input, shape index: {}]   ;;  %s792_s11 = inlined_call_operand.vmem [shape: f32[32,16], index: 11, kind: output, shape index: {}]  }
   0x1   :  { %v41_v0 = vld [vmem:[%s781_s3 + $0x18] sm:$0xff]  ;;  %v40_v1 = vld [vmem:[%s781_s3 + $0x10] sm:$0xff]  ;;  %v39_v2 = vld [vmem:[%s781_s3 + $0x8] sm:$0xff] }
   0x2   :  { %507 = vmatpush.msra.mxu2 %v41_v0  ;;  %508 = vmatpush.msra.mxu3 %v41_v0  ;;  %v38_v3 = vld [vmem:[%s781_s3] sm:$0xff]  ;;  %v43_v4 = vld [vmem:[%s782_s0 + $0x8] sm:$0xff]  ;;  %v45_v5 = vld [vmem:[%s782_s0 + $0x18] sm:$0xff] }
   0x3   :  { %71 = vmatpush.msra.mxu0 %v41_v0  ;;  %v42_v6 = vld [vmem:[%s782_s0] sm:$0xff]  ;;  %v44_v7 = vld [vmem:[%s782_s0 + $0x10] sm:$0xff]  ;;  %v633_v9 = vld [vmem:[%s783_s1 + $0x8] sm:$0xff] }
   0x4   :  { %509 = vmatpush.msra.mxu2 %v40_v1  ;;  %510 = vmatpush.msra.mxu3 %v40_v1  ;;  %v626_v8 = vld [vmem:[%s783_s1] sm:$0xff]  ;;  %v640_v10 = vld [vmem:[%s783_s1 + $0x10] sm:$0xff]  ;;  %v647_v11 = vld [vmem:[%s783_s1 + $0x18] sm:$0xff] }
   0x5   :  { %72 = vmatpush.msra.mxu0 %v40_v1  ;;  %v515_v16 = vld [vmem:[%s784_s5] ss:$0 sm:$0xff]  ;;  %v208_v39 = vld [vmem:[%s786_s2 + $0x10] sm:$0xff]  ;;  %v207_v44 = vld [vmem:[%s786_s2 + $0x8] sm:$0xff] }
   0x6   :  { %511 = vmatpush.msra.mxu2 %v39_v2  ;;  %512 = vmatpush.msra.mxu3 %v39_v2  ;;  %v88_v19 = vld [vmem:[%s785_s4] sm:$0x1]  ;;  %vm212_vm5 = vcmp.gt.f32.partialorder %v208_v39, 0.0  ;;  %vm211_vm6 = vcmp.gt.f32.partialorder %v207_v44, 0.0  ;;  %v209_v53 = vld [vmem:[%s786_s2 + $0x18] sm:$0xff] }
   0x7   :  { %73 = vmatpush.msra.mxu0 %v39_v2  ;;  %v206_v34 = vld [vmem:[%s786_s2] sm:$0xff]  ;;  %vm213_vm8 = vcmp.gt.f32.partialorder %v209_v53, 0.0 }
   0x8   :  { %513 = vmatpush.msra.mxu2 %v38_v3  ;;  %514 = vmatpush.msra.mxu3 %v38_v3  ;;  %vm210_vm2 = vcmp.gt.f32.partialorder %v206_v34, 0.0 }
   0x9   :  { %483 = vmatmul.msk.f32.vlgmr.msra.gmra.mxu2 %vm46_vm0, %v43_v4  ;;  %485 = vmatmul.msk.f32.vlgmr.msra.gmra.mxu3 %vm46_vm0, %v45_v5 }
   0xa   :  { %152 = vmatpush.msrb.mxu2 %v41_v0  ;;  %74 = vmatpush.msra.mxu0 %v38_v3 }
   0xb   :  { %482 = vmatmul.msk.f32.vlgmr.msra.gmra.mxu0 %vm46_vm0, %v42_v6 }
   0xc   :  { %153 = vmatpush.msrb.mxu2 %v40_v1 }
   0xe   :  { %154 = vmatpush.msrb.mxu2 %v39_v2 }
  0x10   :  { %155 = vmatpush.msrb.mxu2 %v38_v3 }
  0x11   :  { %484 = vmatmul.msk.f32.gmra.mxu2 %vm46_vm0, %v44_v7 }
  0x19   :  { %491 = vmatmul.msk.f32.vlgmr.msrb.gmra.mxu2 %vm46_vm0, %v626_v8 }
  0x21   :  { %492 = vmatmul.msk.f32.gmra.mxu2 %vm46_vm0, %v633_v9 }
  0x29   :  { %493 = vmatmul.msk.f32.gmra.mxu2 %vm46_vm0, %v640_v10 }
  0x31   :  { %494 = vmatmul.msk.f32.gmra.mxu2 %vm46_vm0, %v647_v11 }
  0x88   :  { %v76_v15 = vpop.f32.mrf.mxu0 }
  0x8c   :  { %v79_v12 = vpop.f32.mrf.mxu2  ;;  %v85_v13 = vpop.f32.mrf.mxu3 }
  0x8d   :  { %486 = vmatpush.xpose.msk.msra.mxu1 %vm46_vm0, %v85_v13  ;;  %350 = vmatpush.msrb.mxu3 %v85_v13 }
  0x94   :  { %v82_v14 = vpop.f32.mrf.mxu2 }
  0x95   :  { %487 = vmatpush.xpose.msk.msra.mxu1 %vm46_vm0, %v82_v14  ;;  %351 = vmatpush.msrb.mxu3 %v82_v14 }
  0x97   :  { %352 = vmatpush.msrb.mxu3 %v79_v12 }
  0x99   :  { %488 = vmatpush.xpose.msk.msra.mxu1 %vm46_vm0, %v79_v12  ;;  %353 = vmatpush.msrb.mxu3 %v76_v15 }
  0x9c   :  { %v157_v17 = vpop.f32.mrf.mxu2 }
  0x9d   :  { %v173_v18 = vmul.f32 %v515_v16, %v157_v17  ;;  %489 = vmatpush.xpose.msk.msra.mxu1 %vm46_vm0, %v76_v15 }
  0x9f   :  { %v177_v20 = vsel %vm46_vm0, %v173_v18, 0.0 }
  0xa0   :  { %490 = vmatmul.msk.f32.vlgmr.msra.gmra.mxu1 %vm46_vm0, %v88_v19  ;;  %178 = vadd.xlane.f32.xlu0 %v177_v20 }
  0xa4   :  { %v160_v21 = vpop.f32.mrf.mxu2 }
  0xa5   :  { %v174_v22 = vmul.f32 %v515_v16, %v160_v21 }
  0xa7   :  { %v180_v23 = vsel %vm46_vm0, %v174_v22, 0.0 }
  0xa8   :  { %181 = vadd.xlane.f32.xlu0 %v180_v23 }
  0xac   :  { %v163_v24 = vpop.f32.mrf.mxu2 }
  0xad   :  { %v175_v25 = vmul.f32 %v515_v16, %v163_v24 }
  0xaf   :  { %v183_v26 = vsel %vm46_vm0, %v175_v25, 0.0 }
  0xb0   :  { %184 = vadd.xlane.f32.xlu1 %v183_v26 }
  0xb4   :  { %v166_v27 = vpop.f32.mrf.mxu2 }
  0xb5   :  { %v176_v28 = vmul.f32 %v515_v16, %v166_v27 }
  0xb7   :  { %v186_v29 = vsel %vm46_vm0, %v176_v28, 0.0 }
  0xb8   :  { %187 = vadd.xlane.f32.xlu1 %v186_v29 }
 0x113   :  { %v179_v30 = vpop.xlane.xlu0 %178 }
 0x11b   :  { %v182_v32 = vpop.xlane.xlu0 %181 }
 0x11d   :  { %v121_v31 = vpop.f32.mrf.mxu1 }
 0x11e   :  { %v189_v33 = vperm.slane %v121_v31, 0 }
 0x120   :  { %v191_v35 = vadd.f32 %v189_v33, %v182_v32  ;;  %v190_v36 = vadd.f32 %v189_v33, %v179_v30 }
 0x122   :  { %vm194_vm1 = vcmp.gt.f32.partialorder %v190_v36, 0.0  ;;  %v198_v37 = vmul.f32 0.2, %v190_v36  ;;  %v199_v40 = vmul.f32 0.2, %v191_v35  ;;  %vm195_vm3 = vcmp.gt.f32.partialorder %v191_v35, 0.0 }
 0x123   :  { %v185_v38 = vpop.xlane.xlu1 %184 }
 0x124   :  { %v192_v41 = vadd.f32 %v189_v33, %v185_v38  ;;  %v202_v42 = vsel %vm194_vm1, %v190_v36, %v198_v37  ;;  %v203_v48 = vsel %vm195_vm3, %v191_v35, %v199_v40  ;;  %v374_v40 = vld [vmem:[%s788_s8 + $0x18] sm:$0xff] }
 0x125   :  { %v214_v43 = vsel %vm210_vm2, %v202_v42, -1e+30  ;;  %v215_v52 = vsel %vm211_vm6, %v203_v48, -1e+30  ;;  %v373_v42 = vld [vmem:[%s788_s8 + $0x10] sm:$0xff]  ;;  %387 = vmatpush.msrb.mxu1 %v374_v40 }
 0x126   :  { %v200_v45 = vmul.f32 0.2, %v192_v41  ;;  %v218_v46 = vsel %vm46_vm0, %v214_v43, -inf  ;;  %vm196_vm4 = vcmp.gt.f32.partialorder %v192_v41, 0.0  ;;  %v221_v56 = vsel %vm46_vm0, %v215_v52, -inf }
 0x127   :  { %219 = vmax.xlane.f32.xlu2 %v218_v46  ;;  %v368_v46 = vld [vmem:[%s789_s7 + $0x8] sm:$0xff]  ;;  %388 = vmatpush.msrb.mxu1 %v373_v42 }
 0x128   :  { %v204_v47 = vsel %vm196_vm4, %v192_v41, %v200_v45  ;;  %v370_v41 = vld [vmem:[%s789_s7 + $0x18] sm:$0xff]  ;;  %v372_v45 = vld [vmem:[%s788_s8 + $0x8] sm:$0xff] }
 0x129   :  { %v216_v49 = vsel %vm212_vm5, %v204_v47, -1e+30  ;;  %428 = vmatpush.msrb.mxu0 %v370_v41  ;;  %389 = vmatpush.msrb.mxu1 %v372_v45 }
 0x12a   :  { %v224_v50 = vsel %vm46_vm0, %v216_v49, -inf }
 0x12b   :  { %v188_v51 = vpop.xlane.xlu1 %187  ;;  %225 = vmax.xlane.f32.xlu0 %v224_v50 }
 0x12c   :  { %v193_v54 = vadd.f32 %v189_v33, %v188_v51 }
 0x12e   :  { %v201_v55 = vmul.f32 0.2, %v193_v54  ;;  %vm197_vm7 = vcmp.gt.f32.partialorder %v193_v54, 0.0 }
 0x12f   :  { %222 = vmax.xlane.f32.xlu2 %v221_v56 }
 0x130   :  { %v205_v57 = vsel %vm197_vm7, %v193_v54, %v201_v55 }
 0x131   :  { %v217_v58 = vsel %vm213_vm8, %v205_v57, -1e+30 }
 0x132   :  { %v227_v59 = vsel %vm46_vm0, %v217_v58, -inf }
 0x133   :  { %228 = vmax.xlane.f32.xlu1 %v227_v59 }
 0x19a   :  { %v220_v60 = vpop.xlane.xlu2 %219 }
 0x19b   :  { %v230_v61 = vsub.f32 %v214_v43, %v220_v60  ;;  %v369_v43 = vld [vmem:[%s789_s7 + $0x10] sm:$0xff] }
 0x19c   :  { %429 = vmatpush.msrb.mxu0 %v369_v43 }
 0x19d   :  { %v234_v62 = vmul.f32 1.442695, %v230_v61 }
 0x19e   :  { %v226_v63 = vpop.xlane.xlu0 %225  ;;  %430 = vmatpush.msrb.mxu0 %v368_v46 }
 0x19f   :  { %519 = vpow2.f32 %v234_v62  ;;  %v232_v0 = vsub.f32 %v216_v49, %v226_v63 }
 0x1a1   :  { %v238_v1 = vmul.f32 1.442695, %v232_v0 }
 0x1a2   :  { %v223_v2 = vpop.xlane.xlu2 %222 }
 0x1a3   :  { %521 = vpow2.f32 %v238_v1  ;;  %v231_v3 = vsub.f32 %v215_v52, %v223_v2 }
 0x1a5   :  { %v520_v4 = vpop.eup %519  ;;  %v236_v5 = vmul.f32 1.442695, %v231_v3 }
 0x1a6   :  { %v229_v6 = vpop.xlane.xlu1 %228  ;;  %v682_v7 = vmul.f32 %v520_v4, %v206_v34 }
 0x1a7   :  { %523 = vpow2.f32 %v236_v5  ;;  %v233_v12 = vsub.f32 %v217_v58, %v229_v6 }
 0x1a8   :  { %v246_v13 = vsel %vm46_vm0, %v682_v7, 0.0 }
 0x1a9   :  { %v522_v14 = vpop.eup %521  ;;  %v240_v15 = vmul.f32 1.442695, %v233_v12  ;;  %247 = vadd.xlane.f32.xlu2 %v246_v13 }
 0x1aa   :  { %v686_v16 = vmul.f32 %v522_v14, %v208_v39 }
 0x1ab   :  { %525 = vpow2.f32 %v240_v15 }
 0x1ac   :  { %v252_v17 = vsel %vm46_vm0, %v686_v16, 0.0 }
 0x1ad   :  { %v524_v18 = vpop.eup %523  ;;  %253 = vadd.xlane.f32.xlu1 %v252_v17 }
 0x1ae   :  { %v690_v19 = vmul.f32 %v524_v18, %v207_v44 }
 0x1b0   :  { %v249_v20 = vsel %vm46_vm0, %v690_v19, 0.0 }
 0x1b1   :  { %v526_v21 = vpop.eup %525  ;;  %250 = vadd.xlane.f32.xlu0 %v249_v20 }
 0x1b2   :  { %v694_v22 = vmul.f32 %v526_v21, %v209_v53 }
 0x1b4   :  { %v255_v23 = vsel %vm46_vm0, %v694_v22, 0.0 }
 0x1b5   :  { %256 = vadd.xlane.f32.xlu2 %v255_v23 }
 0x21c   :  { %v248_v24 = vpop.xlane.xlu2 %247 }
 0x21d   :  { %v258_v25 = vmax.f32 %v248_v24, 1e-30  ;;  %v371_v24 = vld [vmem:[%s788_s8] sm:$0xff] }
 0x21e   :  { %390 = vmatpush.msrb.mxu1 %v371_v24 }
 0x21f   :  { %527 = vrcp.f32 %v258_v25  ;;  %v273_v35 = vand.u32 2147483648, %v258_v25  ;;  %v271_v39 = vand.u32 2147483647, %v258_v25  ;;  %vm267_vm10 = vweird.f32 %v258_v25  ;;  %499 = vmatmul.msk.f32.vlgmr.msrb.gmra.mxu1 %vm46_vm0, %v626_v8 }
 0x220   :  { %v254_v26 = vpop.xlane.xlu1 %253 }
 0x221   :  { %v698_v27 = vmax.f32 %v254_v26, 1e-30  ;;  %v274_v48 = vor.u32 1.1754944e-38, %v273_v35  ;;  %vm272_vm12 = vcmp.eq.f32.partialorder %v271_v39, 8.507059e+37  ;;  %v518_v35 = vld [vmem:[%s791_s10] ss:$0 sm:$0xff] }
 0x223   :  { %529 = vrcp.f32 %v698_v27  ;;  %v303_v3 = vand.u32 2147483648, %v698_v27  ;;  %vm297_vm3 = vweird.f32 %v698_v27  ;;  %v301_v5 = vand.u32 2147483647, %v698_v27 }
 0x224   :  { %v251_v28 = vpop.xlane.xlu0 %250 }
 0x225   :  { %v528_v29 = vpop.eup %527  ;;  %v259_v30 = vmax.f32 %v251_v28, 1e-30  ;;  %v304_v12 = vor.u32 1.1754944e-38, %v303_v3  ;;  %vm302_vm5 = vcmp.eq.f32.partialorder %v301_v5, 8.507059e+37 }
 0x226   :  { %v263_v31 = vmul.f32 %v528_v29, %v258_v25  ;;  %vm268_vm9 = vweird.f32 %v528_v29 }
 0x227   :  { %531 = vrcp.f32 %v259_v30  ;;  %vm269_vm11 = vmor %vm267_vm10, %vm268_vm9  ;;  %v286_v56 = vand.u32 2147483647, %v259_v30  ;;  %v288_v57 = vand.u32 2147483648, %v259_v30  ;;  %vm282_vm14 = vweird.f32 %v259_v30  ;;  %500 = vmatmul.msk.f32.gmra.mxu1 %vm46_vm0, %v633_v9 }
 0x228   :  { %v264_v32 = vsub.f32 1.0, %v263_v31  ;;  %v257_v33 = vpop.xlane.xlu2 %256  ;;  %vm473_vm10 = vcmask 130048  }
 0x229   :  { %v530_v34 = vpop.eup %529  ;;  %v701_v36 = vmax.f32 %v257_v33, 1e-30  ;;  %vm287_vm1 = vcmp.eq.f32.partialorder %v286_v56, 8.507059e+37  ;;  %v289_v62 = vor.u32 1.1754944e-38, %v288_v57 }
 0x22a   :  { %v265_v37 = vmul.f32 %v528_v29, %v264_v32  ;;  %v293_v38 = vmul.f32 %v530_v34, %v698_v27  ;;  %vm298_vm2 = vweird.f32 %v530_v34 }
 0x22b   :  { %533 = vrcp.f32 %v701_v36  ;;  %vm299_vm4 = vmor %vm297_vm3, %vm298_vm2  ;;  %v318_v15 = vand.u32 2147483648, %v701_v36  ;;  %vm312_vm7 = vweird.f32 %v701_v36  ;;  %v316_v18 = vand.u32 2147483647, %v701_v36 }
 0x22c   :  { %v266_v44 = vadd.f32 %v528_v29, %v265_v37  ;;  %v294_v49 = vsub.f32 1.0, %v293_v38 }
 0x22d   :  { %v532_v47 = vpop.eup %531  ;;  %v319_v20 = vor.u32 1.1754944e-38, %v318_v15  ;;  %vm317_vm9 = vcmp.eq.f32.partialorder %v316_v18, 8.507059e+37 }
 0x22e   :  { %v278_v50 = vmul.f32 %v532_v47, %v259_v30  ;;  %v270_v51 = vsel %vm269_vm11, %v528_v29, %v266_v44  ;;  %vm283_vm13 = vweird.f32 %v532_v47  ;;  %v295_v60 = vmul.f32 %v530_v34, %v294_v49  ;;  %v517_v30 = vld [vmem:[%s790_s9] ss:$0 sm:$0xff] }
 0x22f   :  { %v275_v52 = vsel %vm272_vm12, %v274_v48, %v270_v51  ;;  %vm284_vm15 = vmor %vm282_vm14, %vm283_vm13  ;;  %501 = vmatmul.msk.f32.gmra.mxu1 %vm46_vm0, %v640_v10 }
 0x230   :  { %v279_v53 = vsub.f32 1.0, %v278_v50  ;;  %v276_v54 = vmul.f32 %v275_v52, %v682_v7  ;;  %v296_v1 = vadd.f32 %v530_v34, %v295_v60 }
 0x231   :  { %v534_v55 = vpop.eup %533 }
 0x232   :  { %v308_v58 = vmul.f32 %v534_v55, %v701_v36  ;;  %495 = vmatmul.msk.f32.vlgmr.msrb.gmra.mxu3 %vm46_vm0, %v276_v54  ;;  %v280_v59 = vmul.f32 %v532_v47, %v279_v53  ;;  %v300_v6 = vsel %vm299_vm4, %v530_v34, %v296_v1  ;;  %vm313_vm6 = vweird.f32 %v534_v55 }
 0x233   :  { %v305_v13 = vsel %vm302_vm5, %v304_v12, %v300_v6  ;;  %vm314_vm8 = vmor %vm312_vm7, %vm313_vm6 }
 0x234   :  { %v281_v61 = vadd.f32 %v532_v47, %v280_v59  ;;  %v309_v63 = vsub.f32 1.0, %v308_v58  ;;  %v306_v17 = vmul.f32 %v305_v13, %v686_v16  ;;  %v367_v16 = vld [vmem:[%s789_s7] sm:$0xff] }
 0x235   :  { %431 = vmatpush.msrb.mxu0 %v367_v16 }
 0x236   :  { %v285_v0 = vsel %vm284_vm15, %v532_v47, %v281_v61  ;;  %v310_v7 = vmul.f32 %v534_v55, %v309_v63 }
 0x237   :  { %v290_v2 = vsel %vm287_vm1, %v289_v62, %v285_v0  ;;  %502 = vmatmul.msk.f32.gmra.mxu1 %vm46_vm0, %v647_v11 }
 0x238   :  { %v291_v4 = vmul.f32 %v290_v2, %v690_v19  ;;  %v311_v14 = vadd.f32 %v534_v55, %v310_v7 }
 0x23a   :  { %496 = vmatmul.msk.f32.gmra.mxu3 %vm46_vm0, %v291_v4  ;;  %v315_v19 = vsel %vm314_vm8, %v534_v55, %v311_v14 }
 0x23b   :  { %v320_v21 = vsel %vm317_vm9, %v319_v20, %v315_v19 }
 0x23c   :  { %v321_v23 = vmul.f32 %v320_v21, %v694_v22  ;;  %v516_v22 = vld [vmem:[%s787_s6] ss:$0 sm:$0xff] }
 0x242   :  { %497 = vmatmul.msk.f32.gmra.mxu3 %vm46_vm0, %v306_v17 }
 0x24a   :  { %498 = vmatmul.msk.f32.gmra.mxu3 %vm46_vm0, %v321_v23 }
 0x29c   :  { %v392_v11 = vpop.f32.mrf.mxu1 }
 0x2a4   :  { %v395_v33 = vpop.f32.mrf.mxu1 }
 0x2ac   :  { %v398_v43 = vpop.f32.mrf.mxu1 }
 0x2b4   :  { %v401_v52 = vpop.f32.mrf.mxu1 }
 0x2b5   :  { %v355_v25 = vpop.f32.mrf.mxu3 }
 0x2b6   :  { %v356_v26 = vadd.f32 %v516_v22, %v355_v25 }
 0x2b8   :  { %503 = vmatmul.msk.f32.vlgmr.msrb.gmra.mxu0 %vm46_vm0, %v356_v26 }
 0x2bd   :  { %v358_v27 = vpop.f32.mrf.mxu3 }
 0x2be   :  { %v359_v28 = vadd.f32 %v516_v22, %v358_v27 }
 0x2c0   :  { %504 = vmatmul.msk.f32.gmra.mxu0 %vm46_vm0, %v359_v28 }
 0x2c5   :  { %v361_v8 = vpop.f32.mrf.mxu3 }
 0x2c6   :  { %v362_v9 = vadd.f32 %v516_v22, %v361_v8 }
 0x2c8   :  { %505 = vmatmul.msk.f32.gmra.mxu0 %vm46_vm0, %v362_v9 }
 0x2cd   :  { %v364_v10 = vpop.f32.mrf.mxu3 }
 0x2ce   :  { %v365_v29 = vadd.f32 %v516_v22, %v364_v10 }
 0x2d0   :  { %506 = vmatmul.msk.f32.gmra.mxu0 %vm46_vm0, %v365_v29 }
 0x335   :  { %v433_v31 = vpop.f32.mrf.mxu0 }
 0x336   :  { %v434_v32 = vadd.f32 %v433_v31, %v392_v11 }
 0x338   :  { %v449_v34 = vadd.f32 %v517_v30, %v434_v32 }
 0x33a   :  { %v458_v36 = vmin.f32 %v449_v34, 0.0  ;;  %v453_v37 = vmax.f32 %v449_v34, 0.0 }
 0x33c   :  { %v465_v38 = vmul.f32 %v518_v35, %v458_v36 }
 0x33d   :  { %v436_v39 = vpop.f32.mrf.mxu0 }
 0x33e   :  { %v469_v40 = vadd.f32 %v465_v38, %v453_v37  ;;  %v437_v41 = vadd.f32 %v436_v39, %v395_v33 }
 0x340   :  { %474 = vst.msk [vmem:[%s792_s11] sm:$0xff] %vm473_vm10, %v469_v40  ;;  %v450_v42 = vadd.f32 %v517_v30, %v437_v41 }
 0x342   :  { %v459_v44 = vmin.f32 %v450_v42, 0.0  ;;  %v454_v45 = vmax.f32 %v450_v42, 0.0 }
 0x344   :  { %v466_v46 = vmul.f32 %v518_v35, %v459_v44 }
 0x345   :  { %v439_v47 = vpop.f32.mrf.mxu0 }
 0x346   :  { %v470_v48 = vadd.f32 %v466_v46, %v454_v45  ;;  %v440_v49 = vadd.f32 %v439_v47, %v398_v43 }
 0x348   :  { %475 = vst.msk [vmem:[%s792_s11 + $0x8] sm:$0xff] %vm473_vm10, %v470_v48  ;;  %v451_v50 = vadd.f32 %v517_v30, %v440_v49 }
 0x34a   :  { %v460_v51 = vmin.f32 %v451_v50, 0.0  ;;  %v455_v53 = vmax.f32 %v451_v50, 0.0 }
 0x34c   :  { %v467_v54 = vmul.f32 %v518_v35, %v460_v51 }
 0x34d   :  { %v442_v55 = vpop.f32.mrf.mxu0 }
 0x34e   :  { %v471_v56 = vadd.f32 %v467_v54, %v455_v53  ;;  %v443_v57 = vadd.f32 %v442_v55, %v401_v52 }
 0x350   :  { %476 = vst.msk [vmem:[%s792_s11 + $0x10] sm:$0xff] %vm473_vm10, %v471_v56  ;;  %v452_v58 = vadd.f32 %v517_v30, %v443_v57 }
 0x352   :  { %v461_v59 = vmin.f32 %v452_v58, 0.0  ;;  %v456_v60 = vmax.f32 %v452_v58, 0.0 }
 0x354   :  { %v468_v61 = vmul.f32 %v518_v35, %v461_v59 }
 0x356   :  { %v472_v62 = vadd.f32 %v468_v61, %v456_v60 }
 0x358   :  { %477 = vst.msk [vmem:[%s792_s11 + $0x18] sm:$0xff] %vm473_vm10, %v472_v62 }

// kernel: lander_forward.11
= control target key start
LH: loop header
LB: loop body
LE: loop exit
PB: predicated region body
PF: predicated region fallthrough
CT: control target
= control target key end

     0   :  { %v3826_v0 = vmov 0   ;;  %vm769_vm0 = vcmask 130048   ;;  %vm2430_vm1 = vcmask 254976   ;;  %vm2848_vm2 = vcmask 253952   ;;  %s6098_s0 = inlined_call_operand.vmem [shape: f32[32,16,1], index: 0, kind: input, shape index: {}]   ;;  %s6099_s4 = inlined_call_operand.vmem [shape: f32[1,16,1], index: 4, kind: input, shape index: {}]   ;;  %s6100_s1 = inlined_call_operand.vmem [shape: f32[1,16,32], index: 1, kind: input, shape index: {}]   ;;  %s6101_s5 = inlined_call_operand.vmem [shape: f32[1,16,16], index: 5, kind: input, shape index: {}]   ;;  %s6102_s6 = inlined_call_operand.vmem [shape: f32[1,16,1], index: 6, kind: input, shape index: {}]   ;;  %s6103_s7 = inlined_call_operand.vmem [shape: f32[1,16,1], index: 7, kind: input, shape index: {}]   ;;  %s6104_s9 = inlined_call_operand.vmem [shape: f32[1,2,1], index: 9, kind: input, shape index: {}]   ;;  %s6105_s8 = inlined_call_operand.vmem [shape: f32[1,2,16], index: 8, kind: input, shape index: {}]   ;;  %s6106_s10 = inlined_call_operand.vmem [shape: f32[32,2,32], index: 10, kind: output, shape index: {0}]   ;;  %s6107_s2 = inlined_call_operand.vmem [shape: f32[32,1,32], index: 2, kind: input, shape index: {}]   ;;  %s6108_s3 = inlined_call_operand.vmem [shape: f32[32,1,1], index: 3, kind: input, shape index: {}]   ;;  %s6109_s11 = inlined_call_operand.vmem [shape: f32[32,1,1], index: 11, kind: output, shape index: {1}]  }
   0x1   :  { %3693 = vset.pattern.permute.xlu2 %v3826_v0  ;;  %3692 = vset.pattern.permute.xlu1 %v3826_v0  ;;  %v42_v1 = vld [vmem:[%s6098_s0 + $0x28] sm:$0xff]  ;;  %v41_v2 = vld [vmem:[%s6098_s0 + $0x20] sm:$0xff]  ;;  %v39_v7 = vld [vmem:[%s6098_s0 + $0x10] sm:$0xff]  ;;  %vm3553_vm15 = vcmask 0  }
   0x2   :  { %v38_v3 = vld [vmem:[%s6098_s0 + $0x8] sm:$0xff]  ;;  %3691 = vset.pattern.permute.xlu0 %v3826_v0  ;;  %130 = vperm.xlu1 %3692, %v42_v1   ;;  %v487_v5 = vld [vmem:[%s6099_s4] sm:$0xff]  ;;  %v44_v8 = vld [vmem:[%s6098_s0 + $0x38] sm:$0xff] }
   0x3   :  { %125 = vperm.xlu2 %3693, %v41_v2   ;;  %110 = vperm.xlu0 %3691, %v38_v3   ;;  %v488_v4 = vld [vmem:[%s6099_s4 + $0x8] sm:$0xff]  ;;  %v37_v6 = vld [vmem:[%s6098_s0] sm:$0xff]  ;;  %v40_v9 = vld [vmem:[%s6098_s0 + $0x18] sm:$0xff] }
   0x4   :  { %v46_v10 = vld [vmem:[%s6098_s0 + $0x48] sm:$0xff]  ;;  %v45_v11 = vld [vmem:[%s6098_s0 + $0x40] sm:$0xff]  ;;  %v43_v12 = vld [vmem:[%s6098_s0 + $0x30] sm:$0xff] }
   0x5   :  { %v49_v13 = vld [vmem:[%s6098_s0 + $0x60] sm:$0xff]  ;;  %v48_v14 = vld [vmem:[%s6098_s0 + $0x58] sm:$0xff]  ;;  %v50_v15 = vld [vmem:[%s6098_s0 + $0x68] sm:$0xff] }
   0x6   :  { %v52_v16 = vld [vmem:[%s6098_s0 + $0x78] sm:$0xff]  ;;  %v51_v17 = vld [vmem:[%s6098_s0 + $0x70] sm:$0xff]  ;;  %v53_v19 = vld [vmem:[%s6098_s0 + $0x80] sm:$0xff] }
   0x7   :  { %v47_v18 = vld [vmem:[%s6098_s0 + $0x50] sm:$0xff]  ;;  %v56_v20 = vld [vmem:[%s6098_s0 + $0x98] sm:$0xff]  ;;  %v54_v21 = vld [vmem:[%s6098_s0 + $0x88] sm:$0xff] }
   0x8   :  { %v58_v22 = vld [vmem:[%s6098_s0 + $0xa8] sm:$0xff]  ;;  %v57_v23 = vld [vmem:[%s6098_s0 + $0xa0] sm:$0xff]  ;;  %v55_v24 = vld [vmem:[%s6098_s0 + $0x90] sm:$0xff] }
   0x9   :  { %v60_v25 = vld [vmem:[%s6098_s0 + $0xb8] sm:$0xff]  ;;  %v61_v26 = vld [vmem:[%s6098_s0 + $0xc0] sm:$0xff]  ;;  %v62_v27 = vld [vmem:[%s6098_s0 + $0xc8] sm:$0xff] }
   0xa   :  { %624 = vperm.xlu1 %3692, %v488_v4   ;;  %v64_v28 = vld [vmem:[%s6098_s0 + $0xd8] sm:$0xff]  ;;  %v63_v29 = vld [vmem:[%s6098_s0 + $0xd0] sm:$0xff]  ;;  %v65_v31 = vld [vmem:[%s6098_s0 + $0xe0] sm:$0xff] }
   0xb   :  { %619 = vperm.xlu2 %3693, %v487_v5   ;;  %105 = vperm.xlu0 %3691, %v37_v6   ;;  %v59_v30 = vld [vmem:[%s6098_s0 + $0xb0] sm:$0xff]  ;;  %v70_v32 = vld [vmem:[%s6098_s0 + $0x108] sm:$0xff]  ;;  %v69_v34 = vld [vmem:[%s6098_s0 + $0x100] sm:$0xff] }
   0xc   :  { %v66_v33 = vld [vmem:[%s6098_s0 + $0xe8] sm:$0xff]  ;;  %v67_v35 = vld [vmem:[%s6098_s0 + $0xf0] sm:$0xff]  ;;  %v68_v36 = vld [vmem:[%s6098_s0 + $0xf8] sm:$0xff] }
   0xd   :  { %v71_v38 = vld [vmem:[%s6098_s0 + $0x110] sm:$0xff]  ;;  %v74_v39 = vld [vmem:[%s6098_s0 + $0x128] sm:$0xff]  ;;  %v72_v40 = vld [vmem:[%s6098_s0 + $0x118] sm:$0xff] }
   0xe   :  { %v78_v42 = vld [vmem:[%s6098_s0 + $0x148] sm:$0xff]  ;;  %v76_v43 = vld [vmem:[%s6098_s0 + $0x138] sm:$0xff]  ;;  %v73_v44 = vld [vmem:[%s6098_s0 + $0x120] sm:$0xff] }
   0xf   :  { %v75_v46 = vld [vmem:[%s6098_s0 + $0x130] sm:$0xff]  ;;  %v80_v47 = vld [vmem:[%s6098_s0 + $0x158] sm:$0xff]  ;;  %v77_v48 = vld [vmem:[%s6098_s0 + $0x140] sm:$0xff] }
  0x10   :  { %v4027_v49 = vld [vmem:[%s6100_s1] sm:$0xff]  ;;  %v4032_v50 = vld [vmem:[%s6100_s1 + $0x8] sm:$0xff]  ;;  %v79_v60 = vld [vmem:[%s6098_s0 + $0x150] sm:$0xff] }
  0x11   :  { %v82_v58 = vld [vmem:[%s6098_s0 + $0x168] sm:$0xff]  ;;  %v81_v59 = vld [vmem:[%s6098_s0 + $0x160] sm:$0xff] }
  0x12   :  { %115 = vperm.xlu1 %3692, %v39_v7  }
  0x13   :  { %140 = vperm.xlu2 %3693, %v44_v8   ;;  %120 = vperm.xlu0 %3691, %v40_v9  }
  0x1a   :  { %150 = vperm.xlu1 %3692, %v46_v10  }
  0x1b   :  { %145 = vperm.xlu2 %3693, %v45_v11   ;;  %135 = vperm.xlu0 %3691, %v43_v12  }
  0x22   :  { %165 = vperm.xlu1 %3692, %v49_v13  }
  0x23   :  { %160 = vperm.xlu2 %3693, %v48_v14   ;;  %170 = vperm.xlu0 %3691, %v50_v15  }
  0x2a   :  { %180 = vperm.xlu1 %3692, %v52_v16   ;;  %v84_v16 = vld [vmem:[%s6098_s0 + $0x178] sm:$0xff] }
  0x2b   :  { %175 = vperm.xlu2 %3693, %v51_v17   ;;  %155 = vperm.xlu0 %3691, %v47_v18   ;;  %v85_v18 = vld [vmem:[%s6098_s0 + $0x180] sm:$0xff] }
  0x32   :  { %185 = vperm.xlu1 %3692, %v53_v19   ;;  %v86_v19 = vld [vmem:[%s6098_s0 + $0x188] sm:$0xff] }
  0x33   :  { %200 = vperm.xlu2 %3693, %v56_v20   ;;  %190 = vperm.xlu0 %3691, %v54_v21  }
  0x3a   :  { %210 = vperm.xlu1 %3692, %v58_v22  }
  0x3b   :  { %205 = vperm.xlu2 %3693, %v57_v23   ;;  %195 = vperm.xlu0 %3691, %v55_v24  }
  0x42   :  { %220 = vperm.xlu1 %3692, %v60_v25  }
  0x43   :  { %225 = vperm.xlu2 %3693, %v61_v26   ;;  %230 = vperm.xlu0 %3691, %v62_v27   ;;  %v4068_v26 = vld [vmem:[%s6101_s5] sm:$0xff] }
  0x4a   :  { %240 = vperm.xlu1 %3692, %v64_v28  }
  0x4b   :  { %235 = vperm.xlu2 %3693, %v63_v29   ;;  %215 = vperm.xlu0 %3691, %v59_v30  }
  0x52   :  { %245 = vperm.xlu1 %3692, %v65_v31  }
  0x53   :  { %270 = vperm.xlu2 %3693, %v70_v32   ;;  %250 = vperm.xlu0 %3691, %v66_v33   ;;  %v88_v33 = vld [vmem:[%s6098_s0 + $0x198] sm:$0xff] }
  0x5a   :  { %265 = vperm.xlu1 %3692, %v69_v34  }
  0x5b   :  { %255 = vperm.xlu2 %3693, %v67_v35   ;;  %260 = vperm.xlu0 %3691, %v68_v36   ;;  %v87_v35 = vld [vmem:[%s6098_s0 + $0x190] sm:$0xff] }
  0x5c   :  { %v83_v36 = vld [vmem:[%s6098_s0 + $0x170] sm:$0xff] }
  0x5d   :  { %v126_v37 = vpop.permute.xlu2 %125 }
  0x5e   :  { %v427_v56 = vadd.f32 %v126_v37, %v4027_v49 }
  0x60   :  { %v557_v63 = vmin.f32 %v427_v56, 0.0  ;;  %v493_v10 = vmax.f32 %v427_v56, 0.0 }
  0x62   :  { %275 = vperm.xlu1 %3692, %v71_v38  }
  0x63   :  { %290 = vperm.xlu2 %3693, %v74_v39   ;;  %280 = vperm.xlu0 %3691, %v72_v40  }
  0x65   :  { %v4004_v41 = vpop.permute.xlu2 %619 }
  0x66   :  { %v631_v12 = vmul.f32 %v4004_v41, %v557_v63 }
  0x68   :  { %v695_v21 = vadd.f32 %v631_v12, %v493_v10 }
  0x6a   :  { %310 = vperm.xlu1 %3692, %v78_v42  }
  0x6b   :  { %300 = vperm.xlu2 %3693, %v76_v43   ;;  %285 = vperm.xlu0 %3691, %v73_v44  }
  0x6d   :  { %v141_v45 = vpop.permute.xlu2 %140 }
  0x6e   :  { %v430_v52 = vadd.f32 %v141_v45, %v4032_v50 }
  0x70   :  { %v560_v61 = vmin.f32 %v430_v52, 0.0  ;;  %v496_v2 = vmax.f32 %v430_v52, 0.0 }
  0x72   :  { %295 = vperm.xlu1 %3692, %v75_v46   ;;  %v4094_v46 = vld [vmem:[%s6101_s5 + $0x8] sm:$0xff] }
  0x73   :  { %320 = vperm.xlu2 %3693, %v80_v47   ;;  %305 = vperm.xlu0 %3691, %v77_v48  }
  0x74   :  { %v131_v51 = vpop.permute.xlu1 %130 }
  0x75   :  { %v428_v53 = vadd.f32 %v131_v51, %v4032_v50  ;;  %v146_v54 = vpop.permute.xlu2 %145  ;;  %v111_v55 = vpop.permute.xlu0 %110 }
  0x76   :  { %v424_v57 = vadd.f32 %v111_v55, %v4032_v50  ;;  %v431_v37 = vadd.f32 %v146_v54, %v4027_v49 }
  0x77   :  { %v558_v62 = vmin.f32 %v428_v53, 0.0  ;;  %v494_v1 = vmax.f32 %v428_v53, 0.0 }
  0x78   :  { %v554_v0 = vmin.f32 %v424_v57, 0.0  ;;  %v490_v6 = vmax.f32 %v424_v57, 0.0  ;;  %v561_v47 = vmin.f32 %v431_v37, 0.0 }
  0x7a   :  { %330 = vperm.xlu1 %3692, %v82_v58   ;;  %v89_v58 = vld [vmem:[%s6098_s0 + $0x1a0] sm:$0xff] }
  0x7b   :  { %325 = vperm.xlu2 %3693, %v81_v59   ;;  %315 = vperm.xlu0 %3691, %v79_v60   ;;  %v94_v60 = vld [vmem:[%s6098_s0 + $0x1c8] sm:$0xff] }
  0x7c   :  { %v4047_v3 = vpop.permute.xlu1 %624 }
  0x7d   :  { %v161_v4 = vpop.permute.xlu2 %160  ;;  %v106_v5 = vpop.permute.xlu0 %105  ;;  %v628_v7 = vmul.f32 %v4047_v3, %v554_v0  ;;  %v632_v8 = vmul.f32 %v4047_v3, %v558_v62  ;;  %v634_v9 = vmul.f32 %v4047_v3, %v560_v61  ;;  %v90_v61 = vld [vmem:[%s6098_s0 + $0x1a8] sm:$0xff]  ;;  %v497_v62 = vmax.f32 %v431_v37, 0.0 }
  0x7e   :  { %v423_v11 = vadd.f32 %v106_v5, %v4027_v49  ;;  %v434_v23 = vadd.f32 %v161_v4, %v4032_v50  ;;  %v98_v37 = vld [vmem:[%s6098_s0 + $0x1e8] sm:$0xff] }
  0x7f   :  { %v692_v13 = vadd.f32 %v628_v7, %v490_v6  ;;  %v696_v14 = vadd.f32 %v632_v8, %v494_v1  ;;  %v698_v15 = vadd.f32 %v634_v9, %v496_v2  ;;  %v635_v1 = vmul.f32 %v4004_v41, %v561_v47 }
  0x80   :  { %v553_v17 = vmin.f32 %v423_v11, 0.0  ;;  %v489_v20 = vmax.f32 %v423_v11, 0.0  ;;  %v564_v31 = vmin.f32 %v434_v23, 0.0  ;;  %v500_v48 = vmax.f32 %v434_v23, 0.0 }
  0x81   :  { %790 = vmatpush.msra.mxu0 %v692_v13  ;;  %836 = vmatpush.msra.mxu2 %v696_v14  ;;  %v699_v11 = vadd.f32 %v635_v1, %v497_v62  ;;  %v93_v14 = vld [vmem:[%s6098_s0 + $0x1c0] sm:$0xff] }
  0x82   :  { %859 = vmatpush.msra.mxu3 %v698_v15  ;;  %340 = vperm.xlu1 %3692, %v84_v16   ;;  %v627_v22 = vmul.f32 %v4004_v41, %v553_v17  ;;  %v638_v42 = vmul.f32 %v4047_v3, %v564_v31  ;;  %v91_v16 = vld [vmem:[%s6098_s0 + $0x1b0] sm:$0xff]  ;;  %v92_v17 = vld [vmem:[%s6098_s0 + $0x1b8] sm:$0xff] }
  0x83   :  { %345 = vperm.xlu2 %3693, %v85_v18   ;;  %350 = vperm.xlu0 %3691, %v86_v19  }
  0x84   :  { %837 = vmatpush.msra.mxu2 %v695_v21  ;;  %v116_v24 = vpop.permute.xlu1 %115  ;;  %v691_v25 = vadd.f32 %v627_v22, %v489_v20  ;;  %v702_v57 = vadd.f32 %v638_v42, %v500_v48 }
  0x85   :  { %v4070_v27 = vpop.permute.xlu2 %175  ;;  %v425_v28 = vadd.f32 %v116_v24, %v4027_v49  ;;  %v121_v29 = vpop.permute.xlu0 %120  ;;  %3598 = vmatmul.msk.f32.vlgmr.msra.gmra.mxu2 %vm769_vm0, %v4068_v26 }
  0x86   :  { %v426_v30 = vadd.f32 %v121_v29, %v4032_v50  ;;  %791 = vmatpush.msra.mxu0 %v691_v25  ;;  %v437_v18 = vadd.f32 %v4070_v27, %v4027_v49 }
  0x87   :  { %v555_v32 = vmin.f32 %v425_v28, 0.0  ;;  %3594 = vmatmul.msk.f32.vlgmr.msra.gmra.mxu0 %vm769_vm0, %v4068_v26  ;;  %v491_v43 = vmax.f32 %v425_v28, 0.0 }
  0x88   :  { %v556_v34 = vmin.f32 %v426_v30, 0.0  ;;  %v492_v38 = vmax.f32 %v426_v30, 0.0  ;;  %v567_v28 = vmin.f32 %v437_v18, 0.0  ;;  %v503_v47 = vmax.f32 %v437_v18, 0.0  ;;  %v1513_v18 = vld [vmem:[%s6103_s7 + $0x8] sm:$0xff] }
  0x89   :  { %v629_v40 = vmul.f32 %v4004_v41, %v555_v32 }
  0x8a   :  { %360 = vperm.xlu1 %3692, %v88_v33   ;;  %v630_v39 = vmul.f32 %v4047_v3, %v556_v34  ;;  %v641_v42 = vmul.f32 %v4004_v41, %v567_v28 }
  0x8b   :  { %355 = vperm.xlu2 %3693, %v87_v35   ;;  %335 = vperm.xlu0 %3691, %v83_v36   ;;  %v693_v55 = vadd.f32 %v629_v40, %v491_v43  ;;  %v95_v35 = vld [vmem:[%s6098_s0 + $0x1d0] sm:$0xff] }
  0x8c   :  { %v151_v44 = vpop.permute.xlu1 %150  ;;  %v694_v45 = vadd.f32 %v630_v39, %v492_v38  ;;  %v96_v38 = vld [vmem:[%s6098_s0 + $0x1d8] sm:$0xff] }
  0x8d   :  { %v201_v51 = vpop.permute.xlu2 %200  ;;  %v432_v52 = vadd.f32 %v151_v44, %v4032_v50  ;;  %v136_v53 = vpop.permute.xlu0 %135  ;;  %3599 = vmatmul.msk.f32.gmra.mxu2 %vm769_vm0, %v4094_v46 }
  0x8e   :  { %v429_v54 = vadd.f32 %v136_v53, %v4027_v49  ;;  %813 = vmatpush.msra.mxu1 %v694_v45  ;;  %v442_v19 = vadd.f32 %v201_v51, %v4032_v50 }
  0x8f   :  { %v562_v56 = vmin.f32 %v432_v52, 0.0  ;;  %3595 = vmatmul.msk.f32.gmra.mxu0 %vm769_vm0, %v4094_v46  ;;  %v498_v63 = vmax.f32 %v432_v52, 0.0 }
  0x90   :  { %v559_v59 = vmin.f32 %v429_v54, 0.0  ;;  %814 = vmatpush.msra.mxu1 %v693_v55  ;;  %v495_v2 = vmax.f32 %v429_v54, 0.0  ;;  %v572_v31 = vmin.f32 %v442_v19, 0.0  ;;  %v508_v51 = vmax.f32 %v442_v19, 0.0  ;;  %v757_v19 = vld [vmem:[%s6102_s6] sm:$0xff] }
  0x91   :  { %v636_v0 = vmul.f32 %v4047_v3, %v562_v56  ;;  %3596 = vmatmul.msk.f32.vlgmr.msra.gmra.mxu1 %vm769_vm0, %v4068_v26 }
  0x92   :  { %905 = vmatpush.msrb.mxu1 %v702_v57  ;;  %365 = vperm.xlu1 %3692, %v89_v58   ;;  %v633_v4 = vmul.f32 %v4004_v41, %v559_v59  ;;  %v646_v43 = vmul.f32 %v4047_v3, %v572_v31  ;;  %v705_v57 = vadd.f32 %v641_v42, %v503_v47 }
  0x93   :  { %390 = vperm.xlu2 %3693, %v94_v60   ;;  %370 = vperm.xlu0 %3691, %v90_v61   ;;  %v700_v5 = vadd.f32 %v636_v0, %v498_v63  ;;  %v758_v61 = vld [vmem:[%s6102_s6 + $0x8] sm:$0xff]  ;;  %v100_v63 = vld [vmem:[%s6098_s0 + $0x1f8] sm:$0xff]  ;;  %v97_v0 = vld [vmem:[%s6098_s0 + $0x1e0] sm:$0xff] }
  0x94   :  { %v166_v6 = vpop.permute.xlu1 %165  ;;  %v697_v7 = vadd.f32 %v633_v4, %v495_v2  ;;  %v710_v58 = vadd.f32 %v646_v43, %v508_v51  ;;  %v1512_v43 = vld [vmem:[%s6103_s7] sm:$0xff] }
  0x95   :  { %v4116_v8 = vpop.permute.xlu2 %205  ;;  %v435_v9 = vadd.f32 %v166_v6, %v4027_v49  ;;  %v171_v10 = vpop.permute.xlu0 %170  ;;  %882 = vmatpush.msrb.mxu0 %v700_v5 }
  0x96   :  { %v436_v12 = vadd.f32 %v171_v10, %v4032_v50  ;;  %860 = vmatpush.msra.mxu3 %v697_v7  ;;  %v443_v1 = vadd.f32 %v4116_v8, %v4027_v49 }
  0x97   :  { %v565_v13 = vmin.f32 %v435_v9, 0.0  ;;  %3600 = vmatmul.msk.f32.vlgmr.msra.gmra.mxu3 %vm769_vm0, %v4068_v26  ;;  %883 = vmatpush.msrb.mxu0 %v699_v11  ;;  %v501_v23 = vmax.f32 %v435_v9, 0.0 }
  0x98   :  { %v566_v15 = vmin.f32 %v436_v12, 0.0  ;;  %3602 = vmatmul.msk.f32.vlgmr.msrb.gmra.mxu0 %vm769_vm0, %v4068_v26  ;;  %v502_v20 = vmax.f32 %v436_v12, 0.0  ;;  %v573_v10 = vmin.f32 %v443_v1, 0.0  ;;  %v509_v28 = vmax.f32 %v443_v1, 0.0 }
  0x99   :  { %3597 = vmatmul.msk.f32.gmra.mxu1 %vm769_vm0, %v4094_v46  ;;  %v639_v22 = vmul.f32 %v4004_v41, %v565_v13 }
  0x9a   :  { %385 = vperm.xlu1 %3692, %v93_v14   ;;  %v640_v21 = vmul.f32 %v4047_v3, %v566_v15 }
  0x9b   :  { %375 = vperm.xlu2 %3693, %v91_v16   ;;  %380 = vperm.xlu0 %3691, %v92_v17   ;;  %v703_v33 = vadd.f32 %v639_v22, %v501_v23  ;;  %v99_v16 = vld [vmem:[%s6098_s0 + $0x1f0] sm:$0xff] }
  0x9c   :  { %v181_v24 = vpop.permute.xlu1 %180  ;;  %v704_v25 = vadd.f32 %v640_v21, %v502_v20  ;;  %v647_v20 = vmul.f32 %v4004_v41, %v573_v10 }
  0x9d   :  { %v4140_v29 = vpop.permute.xlu2 %225  ;;  %v438_v27 = vadd.f32 %v181_v24, %v4032_v50  ;;  %v156_v30 = vpop.permute.xlu0 %155 }
  0x9e   :  { %v433_v32 = vadd.f32 %v156_v30, %v4027_v49  ;;  %928 = vmatpush.msrb.mxu2 %v704_v25  ;;  %v447_v23 = vadd.f32 %v4140_v29, %v4027_v49 }
  0x9f   :  { %v568_v34 = vmin.f32 %v438_v27, 0.0  ;;  %3601 = vmatmul.msk.f32.gmra.mxu3 %vm769_vm0, %v4094_v46  ;;  %v504_v39 = vmax.f32 %v438_v27, 0.0 }
  0xa0   :  { %v563_v36 = vmin.f32 %v433_v32, 0.0  ;;  %929 = vmatpush.msrb.mxu2 %v703_v33  ;;  %3603 = vmatmul.msk.f32.gmra.mxu0 %vm769_vm0, %v4094_v46  ;;  %v499_v44 = vmax.f32 %v433_v32, 0.0  ;;  %v577_v29 = vmin.f32 %v447_v23, 0.0 }
  0xa1   :  { %3606 = vmatmul.msk.f32.vlgmr.msrb.gmra.mxu2 %vm769_vm0, %v4068_v26  ;;  %v642_v40 = vmul.f32 %v4047_v3, %v568_v34 }
  0xa2   :  { %395 = vperm.xlu1 %3692, %v95_v35   ;;  %v637_v45 = vmul.f32 %v4004_v41, %v563_v36  ;;  %v711_v36 = vadd.f32 %v647_v20, %v509_v28 }
  0xa3   :  { %410 = vperm.xlu2 %3693, %v98_v37   ;;  %400 = vperm.xlu0 %3691, %v96_v38   ;;  %v706_v48 = vadd.f32 %v642_v40, %v504_v39  ;;  %v1781_v39 = vld [vmem:[%s6104_s9] sm:$0x3] }
  0xa4   :  { %v186_v52 = vpop.permute.xlu1 %185  ;;  %v701_v53 = vadd.f32 %v637_v45, %v499_v44 }
  0xa5   :  { %v4163_v54 = vpop.permute.xlu2 %235  ;;  %v439_v55 = vadd.f32 %v186_v52, %v4027_v49  ;;  %v191_v56 = vpop.permute.xlu0 %190  ;;  %951 = vmatpush.msrb.mxu3 %v706_v48  ;;  %v651_v48 = vmul.f32 %v4004_v41, %v577_v29 }
  0xa6   :  { %v440_v59 = vadd.f32 %v191_v56, %v4032_v50  ;;  %906 = vmatpush.msrb.mxu1 %v701_v53  ;;  %v449_v44 = vadd.f32 %v4163_v54, %v4027_v49 }
  0xa7   :  { %v569_v60 = vmin.f32 %v439_v55, 0.0  ;;  %3604 = vmatmul.msk.f32.vlgmr.msrb.gmra.mxu1 %vm769_vm0, %v4068_v26  ;;  %952 = vmatpush.msrb.mxu3 %v705_v57  ;;  %v505_v6 = vmax.f32 %v439_v55, 0.0  ;;  %v513_v55 = vmax.f32 %v447_v23, 0.0 }
  0xa8   :  { %v570_v62 = vmin.f32 %v440_v59, 0.0  ;;  %997 = vmatpush.msra.mxu1 %v710_v58  ;;  %3608 = vmatmul.msk.f32.vlgmr.msrb.gmra.mxu3 %vm769_vm0, %v4068_v26  ;;  %v506_v4 = vmax.f32 %v440_v59, 0.0  ;;  %v579_v54 = vmin.f32 %v449_v44, 0.0 }
  0xa9   :  { %3607 = vmatmul.msk.f32.gmra.mxu2 %vm769_vm0, %v4094_v46  ;;  %v643_v2 = vmul.f32 %v4004_v41, %v569_v60 }
  0xaa   :  { %v644_v5 = vmul.f32 %v4047_v3, %v570_v62  ;;  %766 = vperm.xlu1 %3692, %v758_v61  }
  0xab   :  { %420 = vperm.xlu2 %3693, %v100_v63   ;;  %405 = vperm.xlu0 %3691, %v97_v0   ;;  %v707_v14 = vadd.f32 %v643_v2, %v505_v6  ;;  %v715_v0 = vadd.f32 %v651_v48, %v513_v55 }
  0xac   :  { %v708_v7 = vadd.f32 %v644_v5, %v506_v4  ;;  %v211_v9 = vpop.permute.xlu1 %210  ;;  %v653_v5 = vmul.f32 %v4004_v41, %v579_v54 }
  0xad   :  { %v271_v11 = vpop.permute.xlu2 %270  ;;  %v444_v12 = vadd.f32 %v211_v9, %v4032_v50  ;;  %v196_v13 = vpop.permute.xlu0 %195 }
  0xae   :  { %v441_v8 = vadd.f32 %v196_v13, %v4027_v49  ;;  %974 = vmatpush.msra.mxu0 %v708_v7  ;;  %v456_v30 = vadd.f32 %v271_v11, %v4032_v50  ;;  %v515_v11 = vmax.f32 %v449_v44, 0.0 }
  0xaf   :  { %v574_v15 = vmin.f32 %v444_v12, 0.0  ;;  %3605 = vmatmul.msk.f32.gmra.mxu1 %vm769_vm0, %v4094_v46  ;;  %v510_v21 = vmax.f32 %v444_v12, 0.0 }
  0xb0   :  { %v571_v17 = vmin.f32 %v441_v8, 0.0  ;;  %975 = vmatpush.msra.mxu0 %v707_v14  ;;  %3609 = vmatmul.msk.f32.gmra.mxu3 %vm769_vm0, %v4094_v46  ;;  %v507_v24 = vmax.f32 %v441_v8, 0.0  ;;  %v586_v40 = vmin.f32 %v456_v30, 0.0  ;;  %v522_v62 = vmax.f32 %v456_v30, 0.0 }
  0xb1   :  { %v648_v22 = vmul.f32 %v4047_v3, %v574_v15  ;;  %3610 = vmatmul.msk.f32.vlgmr.msra.gmra.mxu0 %vm769_vm0, %v4068_v26 }
  0xb2   :  { %v645_v25 = vmul.f32 %v4004_v41, %v571_v17  ;;  %415 = vperm.xlu1 %3692, %v99_v16   ;;  %v660_v56 = vmul.f32 %v4047_v3, %v586_v40 }
  0xb3   :  { %v712_v27 = vadd.f32 %v648_v22, %v510_v21  ;;  %1649 = vperm.xlu2 %3693, %v1513_v18   ;;  %761 = vperm.xlu0 %3691, %v757_v19   ;;  %v717_v18 = vadd.f32 %v653_v5, %v515_v11 }
  0xb4   :  { %v221_v31 = vpop.permute.xlu1 %220  ;;  %v709_v32 = vadd.f32 %v645_v25, %v507_v24  ;;  %v724_v2 = vadd.f32 %v660_v56, %v522_v62 }
  0xb5   :  { %v4209_v33 = vpop.permute.xlu2 %255  ;;  %v446_v34 = vadd.f32 %v221_v31, %v4032_v50  ;;  %v231_v35 = vpop.permute.xlu0 %230  ;;  %1020 = vmatpush.msra.mxu2 %v712_v27 }
  0xb6   :  { %v448_v37 = vadd.f32 %v231_v35, %v4032_v50  ;;  %998 = vmatpush.msra.mxu1 %v709_v32  ;;  %v453_v23 = vadd.f32 %v4209_v33, %v4027_v49 }
  0xb7   :  { %v576_v38 = vmin.f32 %v446_v34, 0.0  ;;  %3612 = vmatmul.msk.f32.vlgmr.msra.gmra.mxu1 %vm769_vm0, %v4068_v26  ;;  %1021 = vmatpush.msra.mxu2 %v711_v36  ;;  %v512_v45 = vmax.f32 %v446_v34, 0.0 }
  0xb8   :  { %v578_v42 = vmin.f32 %v448_v37, 0.0  ;;  %3614 = vmatmul.msk.f32.vlgmr.msra.gmra.mxu2 %vm769_vm0, %v4068_v26  ;;  %v514_v51 = vmax.f32 %v448_v37, 0.0  ;;  %v583_v37 = vmin.f32 %v453_v23, 0.0  ;;  %v519_v55 = vmax.f32 %v453_v23, 0.0 }
  0xb9   :  { %v650_v47 = vmul.f32 %v4047_v3, %v576_v38  ;;  %3611 = vmatmul.msk.f32.gmra.mxu0 %vm769_vm0, %v4094_v46 }
  0xba   :  { %v652_v52 = vmul.f32 %v4047_v3, %v578_v42  ;;  %1784 = vperm.xlu1 %3692, %v1781_v39   ;;  %v657_v48 = vmul.f32 %v4004_v41, %v583_v37 }
  0xbb   :  { %v714_v53 = vadd.f32 %v650_v47, %v512_v45  ;;  %1644 = vperm.xlu0 %3691, %v1512_v43  }
  0xbc   :  { %v716_v57 = vadd.f32 %v652_v52, %v514_v51  ;;  %v241_v58 = vpop.permute.xlu1 %240 }
  0xbd   :  { %v291_v59 = vpop.permute.xlu2 %290  ;;  %v450_v60 = vadd.f32 %v241_v58, %v4032_v50  ;;  %v216_v61 = vpop.permute.xlu0 %215  ;;  %1043 = vmatpush.msra.mxu3 %v714_v53 }
  0xbe   :  { %v445_v63 = vadd.f32 %v216_v61, %v4027_v49  ;;  %1066 = vmatpush.msrb.mxu0 %v716_v57  ;;  %v460_v13 = vadd.f32 %v291_v59, %v4032_v50 }
  0xbf   :  { %v580_v1 = vmin.f32 %v450_v60, 0.0  ;;  %3613 = vmatmul.msk.f32.gmra.mxu1 %vm769_vm0, %v4094_v46  ;;  %v516_v6 = vmax.f32 %v450_v60, 0.0 }
  0xc0   :  { %v575_v4 = vmin.f32 %v445_v63, 0.0  ;;  %1067 = vmatpush.msrb.mxu0 %v715_v0  ;;  %3615 = vmatmul.msk.f32.gmra.mxu2 %vm769_vm0, %v4094_v46  ;;  %v511_v9 = vmax.f32 %v445_v63, 0.0  ;;  %v590_v21 = vmin.f32 %v460_v13, 0.0  ;;  %v526_v38 = vmax.f32 %v460_v13, 0.0 }
  0xc1   :  { %v654_v7 = vmul.f32 %v4047_v3, %v580_v1  ;;  %3618 = vmatmul.msk.f32.vlgmr.msrb.gmra.mxu0 %vm769_vm0, %v4068_v26  ;;  %v721_v0 = vadd.f32 %v657_v48, %v519_v55 }
  0xc2   :  { %v649_v10 = vmul.f32 %v4004_v41, %v575_v4  ;;  %1158 = vmatpush.msra.mxu0 %v724_v2  ;;  %v664_v27 = vmul.f32 %v4047_v3, %v590_v21 }
  0xc3   :  { %v718_v12 = vadd.f32 %v654_v7, %v516_v6 }
  0xc4   :  { %v246_v8 = vpop.permute.xlu1 %245  ;;  %v713_v14 = vadd.f32 %v649_v10, %v511_v9  ;;  %v728_v42 = vadd.f32 %v664_v27, %v526_v38 }
  0xc5   :  { %v301_v15 = vpop.permute.xlu2 %300  ;;  %v451_v16 = vadd.f32 %v246_v8, %v4027_v49  ;;  %v251_v17 = vpop.permute.xlu0 %250  ;;  %1089 = vmatpush.msrb.mxu1 %v718_v12 }
  0xc6   :  { %v452_v19 = vadd.f32 %v251_v17, %v4032_v50  ;;  %1044 = vmatpush.msra.mxu3 %v713_v14  ;;  %v462_v30 = vadd.f32 %v301_v15, %v4032_v50 }
  0xc7   :  { %v581_v20 = vmin.f32 %v451_v16, 0.0  ;;  %3616 = vmatmul.msk.f32.vlgmr.msra.gmra.mxu3 %vm769_vm0, %v4068_v26  ;;  %1090 = vmatpush.msrb.mxu1 %v717_v18  ;;  %v517_v31 = vmax.f32 %v451_v16, 0.0 }
  0xc8   :  { %v582_v22 = vmin.f32 %v452_v19, 0.0  ;;  %3620 = vmatmul.msk.f32.vlgmr.msrb.gmra.mxu1 %vm769_vm0, %v4068_v26  ;;  %v518_v25 = vmax.f32 %v452_v19, 0.0  ;;  %v592_v43 = vmin.f32 %v462_v30, 0.0  ;;  %v528_v62 = vmax.f32 %v462_v30, 0.0 }
  0xc9   :  { %3619 = vmatmul.msk.f32.gmra.mxu0 %vm769_vm0, %v4094_v46  ;;  %v655_v24 = vmul.f32 %v4004_v41, %v581_v20 }
  0xca   :  { %v656_v28 = vmul.f32 %v4047_v3, %v582_v22  ;;  %v666_v56 = vmul.f32 %v4047_v3, %v592_v43 }
  0xcb   :  { %v719_v39 = vadd.f32 %v655_v24, %v517_v31 }
  0xcc   :  { %v720_v32 = vadd.f32 %v656_v28, %v518_v25  ;;  %v266_v34 = vpop.permute.xlu1 %265  ;;  %v730_v2 = vadd.f32 %v666_v56, %v528_v62 }
  0xcd   :  { %v321_v35 = vpop.permute.xlu2 %320  ;;  %v455_v36 = vadd.f32 %v266_v34, %v4027_v49  ;;  %v261_v29 = vpop.permute.xlu0 %260 }
  0xce   :  { %v454_v33 = vadd.f32 %v261_v29, %v4032_v50  ;;  %1112 = vmatpush.msrb.mxu2 %v720_v32  ;;  %v466_v57 = vadd.f32 %v321_v35, %v4032_v50 }
  0xcf   :  { %v585_v40 = vmin.f32 %v455_v36, 0.0  ;;  %3617 = vmatmul.msk.f32.gmra.mxu3 %vm769_vm0, %v4094_v46  ;;  %v521_v45 = vmax.f32 %v455_v36, 0.0 }
  0xd0   :  { %v584_v44 = vmin.f32 %v454_v33, 0.0  ;;  %1113 = vmatpush.msrb.mxu2 %v719_v39  ;;  %3621 = vmatmul.msk.f32.gmra.mxu1 %vm769_vm0, %v4094_v46  ;;  %v520_v51 = vmax.f32 %v454_v33, 0.0  ;;  %v596_v4 = vmin.f32 %v466_v57, 0.0  ;;  %v532_v16 = vmax.f32 %v466_v57, 0.0 }
  0xd1   :  { %v659_v47 = vmul.f32 %v4004_v41, %v585_v40  ;;  %3622 = vmatmul.msk.f32.vlgmr.msrb.gmra.mxu2 %vm769_vm0, %v4068_v26 }
  0xd2   :  { %v658_v52 = vmul.f32 %v4047_v3, %v584_v44  ;;  %1204 = vmatpush.msra.mxu2 %v728_v42  ;;  %v670_v10 = vmul.f32 %v4047_v3, %v596_v4 }
  0xd3   :  { %v723_v53 = vadd.f32 %v659_v47, %v521_v45 }
  0xd4   :  { %v722_v58 = vadd.f32 %v658_v52, %v520_v51  ;;  %v276_v54 = vpop.permute.xlu1 %275  ;;  %v734_v20 = vadd.f32 %v670_v10, %v532_v16 }
  0xd5   :  { %v326_v59 = vpop.permute.xlu2 %325  ;;  %v457_v60 = vadd.f32 %v276_v54, %v4027_v49  ;;  %v281_v61 = vpop.permute.xlu0 %280  ;;  %1159 = vmatpush.msra.mxu0 %v723_v53 }
  0xd6   :  { %v458_v63 = vadd.f32 %v281_v61, %v4032_v50  ;;  %1135 = vmatpush.msrb.mxu3 %v722_v58  ;;  %3626 = vmatmul.msk.f32.vlgmr.msra.gmra.mxu0 %vm769_vm0, %v4068_v26  ;;  %v467_v33 = vadd.f32 %v326_v59, %v4027_v49 }
  0xd7   :  { %v587_v1 = vmin.f32 %v457_v60, 0.0  ;;  %v523_v11 = vmax.f32 %v457_v60, 0.0 }
  0xd8   :  { %v588_v5 = vmin.f32 %v458_v63, 0.0  ;;  %1136 = vmatpush.msrb.mxu3 %v721_v0  ;;  %v524_v7 = vmax.f32 %v458_v63, 0.0  ;;  %v597_v51 = vmin.f32 %v467_v33, 0.0  ;;  %v533_v62 = vmax.f32 %v467_v33, 0.0 }
  0xd9   :  { %3623 = vmatmul.msk.f32.gmra.mxu2 %vm769_vm0, %v4094_v46  ;;  %3624 = vmatmul.msk.f32.vlgmr.msrb.gmra.mxu3 %vm769_vm0, %v4068_v26  ;;  %v661_v6 = vmul.f32 %v4004_v41, %v587_v1 }
  0xda   :  { %v662_v9 = vmul.f32 %v4047_v3, %v588_v5  ;;  %1227 = vmatpush.msra.mxu3 %v730_v2  ;;  %v671_v58 = vmul.f32 %v4004_v41, %v597_v51 }
  0xdb   :  { %v725_v18 = vadd.f32 %v661_v6, %v523_v11 }
  0xdc   :  { %v726_v12 = vadd.f32 %v662_v9, %v524_v7  ;;  %v311_v13 = vpop.permute.xlu1 %310  ;;  %v735_v9 = vadd.f32 %v671_v58, %v533_v62 }
  0xdd   :  { %v346_v8 = vpop.permute.xlu2 %345  ;;  %v464_v14 = vadd.f32 %v311_v13, %v4032_v50  ;;  %v286_v15 = vpop.permute.xlu0 %285 }
  0xde   :  { %v459_v17 = vadd.f32 %v286_v15, %v4027_v49  ;;  %1181 = vmatpush.msra.mxu1 %v726_v12  ;;  %3627 = vmatmul.msk.f32.gmra.mxu0 %vm769_vm0, %v4094_v46  ;;  %v471_v54 = vadd.f32 %v346_v8, %v4027_v49 }
  0xdf   :  { %v594_v19 = vmin.f32 %v464_v14, 0.0  ;;  %v530_v22 = vmax.f32 %v464_v14, 0.0 }
  0xe0   :  { %v589_v21 = vmin.f32 %v459_v17, 0.0  ;;  %1182 = vmatpush.msra.mxu1 %v725_v18  ;;  %v525_v24 = vmax.f32 %v459_v17, 0.0  ;;  %v601_v6 = vmin.f32 %v471_v54, 0.0 }
  0xe1   :  { %v668_v23 = vmul.f32 %v4047_v3, %v594_v19  ;;  %3625 = vmatmul.msk.f32.gmra.mxu3 %vm769_vm0, %v4094_v46  ;;  %3628 = vmatmul.msk.f32.vlgmr.msra.gmra.mxu1 %vm769_vm0, %v4068_v26  ;;  %v537_v19 = vmax.f32 %v471_v54, 0.0 }
  0xe2   :  { %v663_v25 = vmul.f32 %v4004_v41, %v589_v21  ;;  %1273 = vmatpush.msrb.mxu1 %v734_v20  ;;  %v675_v15 = vmul.f32 %v4004_v41, %v601_v6 }
  0xe3   :  { %v732_v28 = vadd.f32 %v668_v23, %v530_v22 }
  0xe4   :  { %v296_v27 = vpop.permute.xlu1 %295  ;;  %v727_v30 = vadd.f32 %v663_v25, %v525_v24 }
  0xe5   :  { %v356_v31 = vpop.permute.xlu2 %355  ;;  %v461_v32 = vadd.f32 %v296_v27, %v4027_v49  ;;  %v306_v34 = vpop.permute.xlu0 %305  ;;  %1250 = vmatpush.msrb.mxu0 %v732_v28 }
  0xe6   :  { %v463_v35 = vadd.f32 %v306_v34, %v4027_v49  ;;  %1205 = vmatpush.msra.mxu2 %v727_v30  ;;  %v473_v13 = vadd.f32 %v356_v31, %v4027_v49  ;;  %v739_v30 = vadd.f32 %v675_v15, %v537_v19 }
  0xe7   :  { %v591_v36 = vmin.f32 %v461_v32, 0.0  ;;  %3630 = vmatmul.msk.f32.vlgmr.msra.gmra.mxu2 %vm769_vm0, %v4068_v26  ;;  %v527_v37 = vmax.f32 %v461_v32, 0.0 }
  0xe8   :  { %v593_v29 = vmin.f32 %v463_v35, 0.0  ;;  %v529_v39 = vmax.f32 %v463_v35, 0.0  ;;  %v603_v23 = vmin.f32 %v473_v13, 0.0 }
  0xe9   :  { %v665_v38 = vmul.f32 %v4004_v41, %v591_v36  ;;  %3629 = vmatmul.msk.f32.gmra.mxu1 %vm769_vm0, %v4094_v46 }
  0xea   :  { %v667_v40 = vmul.f32 %v4004_v41, %v593_v29  ;;  %v677_v36 = vmul.f32 %v4004_v41, %v603_v23 }
  0xeb   :  { %v729_v42 = vadd.f32 %v665_v38, %v527_v37 }
  0xec   :  { %v331_v43 = vpop.permute.xlu1 %330  ;;  %v731_v44 = vadd.f32 %v667_v40, %v529_v39  ;;  %v539_v39 = vmax.f32 %v473_v13, 0.0 }
  0xed   :  { %v391_v45 = vpop.permute.xlu2 %390  ;;  %v468_v47 = vadd.f32 %v331_v43, %v4032_v50  ;;  %v316_v48 = vpop.permute.xlu0 %315  ;;  %1228 = vmatpush.msra.mxu3 %v729_v42 }
  0xee   :  { %v465_v52 = vadd.f32 %v316_v48, %v4027_v49  ;;  %1251 = vmatpush.msrb.mxu0 %v731_v44  ;;  %3632 = vmatmul.msk.f32.vlgmr.msra.gmra.mxu3 %vm769_vm0, %v4068_v26  ;;  %v480_v63 = vadd.f32 %v391_v45, %v4032_v50  ;;  %v741_v51 = vadd.f32 %v677_v36, %v539_v39 }
  0xef   :  { %v598_v53 = vmin.f32 %v468_v47, 0.0  ;;  %3631 = vmatmul.msk.f32.gmra.mxu2 %vm769_vm0, %v4094_v46  ;;  %3634 = vmatmul.msk.f32.vlgmr.msrb.gmra.mxu0 %vm769_vm0, %v4068_v26  ;;  %v534_v56 = vmax.f32 %v468_v47, 0.0 }
  0xf0   :  { %v595_v55 = vmin.f32 %v465_v52, 0.0  ;;  %v531_v59 = vmax.f32 %v465_v52, 0.0  ;;  %v610_v11 = vmin.f32 %v480_v63, 0.0  ;;  %v546_v28 = vmax.f32 %v480_v63, 0.0 }
  0xf1   :  { %v672_v57 = vmul.f32 %v4047_v3, %v598_v53 }
  0xf2   :  { %v669_v60 = vmul.f32 %v4004_v41, %v595_v55  ;;  %v684_v20 = vmul.f32 %v4047_v3, %v610_v11 }
  0xf3   :  { %v736_v61 = vadd.f32 %v672_v57, %v534_v56 }
  0xf4   :  { %v341_v0 = vpop.permute.xlu1 %340  ;;  %v733_v1 = vadd.f32 %v669_v60, %v531_v59  ;;  %v748_v34 = vadd.f32 %v684_v20, %v546_v28 }
  0xf5   :  { %v4313_v2 = vpop.permute.xlu2 %375  ;;  %v470_v4 = vadd.f32 %v341_v0, %v4032_v50  ;;  %v351_v5 = vpop.permute.xlu0 %350  ;;  %1296 = vmatpush.msrb.mxu2 %v736_v61 }
  0xf6   :  { %v472_v7 = vadd.f32 %v351_v5, %v4032_v50  ;;  %1274 = vmatpush.msrb.mxu1 %v733_v1  ;;  %3633 = vmatmul.msk.f32.gmra.mxu3 %vm769_vm0, %v4094_v46  ;;  %v477_v58 = vadd.f32 %v4313_v2, %v4027_v49 }
  0xf7   :  { %v600_v10 = vmin.f32 %v470_v4, 0.0  ;;  %3635 = vmatmul.msk.f32.gmra.mxu0 %vm769_vm0, %v4094_v46  ;;  %3636 = vmatmul.msk.f32.vlgmr.msrb.gmra.mxu1 %vm769_vm0, %v4068_v26  ;;  %v536_v8 = vmax.f32 %v470_v4, 0.0 }
  0xf8   :  { %v602_v12 = vmin.f32 %v472_v7, 0.0  ;;  %1297 = vmatpush.msrb.mxu2 %v735_v9  ;;  %v538_v16 = vmax.f32 %v472_v7, 0.0  ;;  %v607_v7 = vmin.f32 %v477_v58, 0.0  ;;  %v543_v20 = vmax.f32 %v477_v58, 0.0 }
  0xf9   :  { %v674_v14 = vmul.f32 %v4047_v3, %v600_v10  ;;  %3638 = vmatmul.msk.f32.vlgmr.msrb.gmra.mxu2 %vm769_vm0, %v4068_v26 }
  0xfa   :  { %v676_v17 = vmul.f32 %v4047_v3, %v602_v12 }
  0xfb   :  { %v738_v18 = vadd.f32 %v674_v14, %v536_v8 }
  0xfc   :  { %v740_v21 = vadd.f32 %v676_v17, %v538_v16  ;;  %v361_v22 = vpop.permute.xlu1 %360  ;;  %v681_v16 = vmul.f32 %v4004_v41, %v607_v7 }
  0xfd   :  { %v474_v24 = vadd.f32 %v361_v22, %v4032_v50  ;;  %v336_v25 = vpop.permute.xlu0 %335  ;;  %1319 = vmatpush.msrb.mxu3 %v738_v18  ;;  %v411_v31 = vpop.permute.xlu2 %410 }
  0xfe   :  { %v469_v27 = vadd.f32 %v336_v25, %v4027_v49  ;;  %1342 = vmatpush.msra.mxu0 %v740_v21  ;;  %v484_v42 = vadd.f32 %v411_v31, %v4032_v50  ;;  %v3823_v31 = vld [vmem:[%s6100_s1 + $0x8] sm:$0xff] }
  0xff   :  { %v604_v32 = vmin.f32 %v474_v24, 0.0  ;;  %3637 = vmatmul.msk.f32.gmra.mxu1 %vm769_vm0, %v4094_v46  ;;  %v540_v29 = vmax.f32 %v474_v24, 0.0  ;;  %v4377_v24 = vld [vmem:[%s6100_s1] sm:$0xff] }
 0x100   :  { %v599_v35 = vmin.f32 %v469_v27, 0.0  ;;  %1343 = vmatpush.msra.mxu0 %v739_v30  ;;  %v535_v38 = vmax.f32 %v469_v27, 0.0  ;;  %v614_v55 = vmin.f32 %v484_v42, 0.0  ;;  %v550_v9 = vmax.f32 %v484_v42, 0.0 }
 0x101   :  { %v678_v37 = vmul.f32 %v4047_v3, %v604_v32  ;;  %3639 = vmatmul.msk.f32.gmra.mxu2 %vm769_vm0, %v4094_v46  ;;  %3642 = vmatmul.msk.f32.vlgmr.msra.gmra.mxu0 %vm769_vm0, %v4068_v26 }
 0x102   :  { %v673_v33 = vmul.f32 %v4004_v41, %v599_v35  ;;  %1434 = vmatpush.msrb.mxu0 %v748_v34  ;;  %v688_v61 = vmul.f32 %v4047_v3, %v614_v55  ;;  %v745_v34 = vadd.f32 %v681_v16, %v543_v20 }
 0x103   :  { %v742_v40 = vadd.f32 %v678_v37, %v540_v29 }
 0x104   :  { %v366_v43 = vpop.permute.xlu1 %365  ;;  %v4342_v44 = vpop.f32.mrf.mxu0  ;;  %v737_v45 = vadd.f32 %v673_v33, %v535_v38  ;;  %v752_v13 = vadd.f32 %v688_v61, %v550_v9 }
 0x105   :  { %v475_v47 = vadd.f32 %v366_v43, %v4027_v49  ;;  %v371_v48 = vpop.permute.xlu0 %370  ;;  %1365 = vmatpush.msra.mxu1 %v742_v40  ;;  %v421_v57 = vpop.permute.xlu2 %420 }
 0x106   :  { %v476_v52 = vadd.f32 %v371_v48, %v4032_v50  ;;  %1320 = vmatpush.msrb.mxu3 %v737_v45  ;;  %v486_v62 = vadd.f32 %v421_v57, %v4032_v50 }
 0x107   :  { %v605_v53 = vmin.f32 %v475_v47, 0.0  ;;  %3640 = vmatmul.msk.f32.vlgmr.msrb.gmra.mxu3 %vm769_vm0, %v4068_v26  ;;  %1366 = vmatpush.msra.mxu1 %v741_v51  ;;  %v541_v63 = vmax.f32 %v475_v47, 0.0 }
 0x108   :  { %v606_v56 = vmin.f32 %v476_v52, 0.0  ;;  %3644 = vmatmul.msk.f32.vlgmr.msra.gmra.mxu1 %vm769_vm0, %v4068_v26  ;;  %v542_v59 = vmax.f32 %v476_v52, 0.0  ;;  %v4362_v12 = vpop.f32.mrf.mxu2  ;;  %v616_v8 = vmin.f32 %v486_v62, 0.0  ;;  %v552_v30 = vmax.f32 %v486_v62, 0.0 }
 0x109   :  { %3643 = vmatmul.msk.f32.gmra.mxu0 %vm769_vm0, %v4094_v46  ;;  %v679_v54 = vmul.f32 %v4004_v41, %v605_v53 }
 0x10a   :  { %v680_v60 = vmul.f32 %v4047_v3, %v606_v56  ;;  %v690_v21 = vmul.f32 %v4047_v3, %v616_v8 }
 0x10b   :  { %v743_v10 = vadd.f32 %v679_v54, %v541_v63  ;;  %v4409_v63 = vld [vmem:[%s6101_s5] sm:$0xff] }
 0x10c   :  { %v744_v0 = vadd.f32 %v680_v60, %v542_v59  ;;  %v386_v1 = vpop.permute.xlu1 %385  ;;  %v796_v4 = vpop.f32.mrf.mxu0  ;;  %v754_v36 = vadd.f32 %v690_v21, %v552_v30 }
 0x10d   :  { %v479_v5 = vadd.f32 %v386_v1, %v4027_v49  ;;  %v381_v6 = vpop.permute.xlu0 %380  ;;  %v4402_v54 = vpop.permute.xlu2 %1649 }
 0x10e   :  { %v478_v2 = vadd.f32 %v381_v6, %v4032_v50  ;;  %1388 = vmatpush.msra.mxu2 %v744_v0  ;;  %v4366_v49 = vpop.f32.mrf.mxu1 }
 0x10f   :  { %v609_v11 = vmin.f32 %v479_v5, 0.0  ;;  %3641 = vmatmul.msk.f32.gmra.mxu3 %vm769_vm0, %v4094_v46  ;;  %v545_v15 = vmax.f32 %v479_v5, 0.0 }
 0x110   :  { %v608_v14 = vmin.f32 %v478_v2, 0.0  ;;  %1389 = vmatpush.msra.mxu2 %v743_v10  ;;  %3645 = vmatmul.msk.f32.gmra.mxu1 %vm769_vm0, %v4094_v46  ;;  %v544_v17 = vmax.f32 %v478_v2, 0.0  ;;  %v842_v37 = vpop.f32.mrf.mxu2 }
 0x111   :  { %v683_v50 = vmul.f32 %v4004_v41, %v609_v11  ;;  %3646 = vmatmul.msk.f32.vlgmr.msra.gmra.mxu2 %vm769_vm0, %v4068_v26 }
 0x112   :  { %v682_v18 = vmul.f32 %v4047_v3, %v608_v14  ;;  %1480 = vmatpush.msrb.mxu2 %v752_v13 }
 0x113   :  { %v747_v19 = vadd.f32 %v683_v50, %v545_v15 }
 0x114   :  { %v746_v22 = vadd.f32 %v682_v18, %v544_v17  ;;  %v396_v23 = vpop.permute.xlu1 %395 }
 0x115   :  { %v481_v25 = vadd.f32 %v4377_v24, %v396_v23  ;;  %v401_v28 = vpop.permute.xlu0 %400  ;;  %v4380_v27 = vpop.f32.mrf.mxu0  ;;  %1435 = vmatpush.msrb.mxu0 %v747_v19 }
 0x116   :  { %v482_v32 = vadd.f32 %v3823_v31, %v401_v28  ;;  %1411 = vmatpush.msra.mxu3 %v746_v22  ;;  %3650 = vmatmul.msk.f32.vlgmr.msrb.gmra.mxu0 %vm769_vm0, %v4068_v26  ;;  %v819_v42 = vpop.f32.mrf.mxu1 }
 0x117   :  { %v611_v35 = vmin.f32 %v481_v25, 0.0  ;;  %v547_v43 = vmax.f32 %v481_v25, 0.0 }
 0x118   :  { %v612_v29 = vmin.f32 %v482_v32, 0.0  ;;  %1412 = vmatpush.msra.mxu3 %v745_v34  ;;  %v548_v33 = vmax.f32 %v482_v32, 0.0 }
 0x119   :  { %3647 = vmatmul.msk.f32.gmra.mxu2 %vm769_vm0, %v4094_v46  ;;  %3648 = vmatmul.msk.f32.vlgmr.msra.gmra.mxu3 %vm769_vm0, %v4068_v26  ;;  %v685_v38 = vmul.f32 %v4004_v41, %v611_v35 }
 0x11a   :  { %v686_v39 = vmul.f32 %v4047_v3, %v612_v29  ;;  %1503 = vmatpush.msrb.mxu3 %v754_v36  ;;  %v862_v40 = vpop.f32.mrf.mxu3 }
 0x11b   :  { %v749_v3 = vadd.f32 %v685_v38, %v547_v43 }
 0x11c   :  { %v750_v45 = vadd.f32 %v686_v39, %v548_v33  ;;  %v4393_v47 = vpop.permute.xlu1 %766 }
 0x11d   :  { %v406_v48 = vpop.permute.xlu0 %405  ;;  %v888_v51 = vpop.f32.mrf.mxu0  ;;  %v797_v52 = vadd.f32 %v796_v4, %v4393_v47  ;;  %v820_v53 = vadd.f32 %v819_v42, %v4393_v47  ;;  %v843_v26 = vadd.f32 %v842_v37, %v4393_v47 }
 0x11e   :  { %v483_v55 = vadd.f32 %v4377_v24, %v406_v48  ;;  %v889_v56 = vadd.f32 %v888_v51, %v4393_v47  ;;  %1457 = vmatpush.msrb.mxu1 %v750_v45  ;;  %3651 = vmatmul.msk.f32.gmra.mxu0 %vm769_vm0, %v4094_v46 }
 0x11f   :  { %v1579_v57 = vmin.f32 %v797_v52, 0.0  ;;  %v1581_v58 = vmin.f32 %v820_v53, 0.0  ;;  %v1515_v60 = vmax.f32 %v797_v52, 0.0  ;;  %v1517_v61 = vmax.f32 %v820_v53, 0.0 }
 0x120   :  { %v613_v59 = vmin.f32 %v483_v55, 0.0  ;;  %1458 = vmatpush.msrb.mxu1 %v749_v3  ;;  %v1587_v62 = vmin.f32 %v889_v56, 0.0  ;;  %v1583_v4 = vmin.f32 %v843_v26, 0.0  ;;  %v549_v5 = vmax.f32 %v483_v55, 0.0 }
 0x121   :  { %3649 = vmatmul.msk.f32.gmra.mxu3 %vm769_vm0, %v4094_v46  ;;  %3652 = vmatmul.msk.f32.vlgmr.msrb.gmra.mxu1 %vm769_vm0, %v4409_v63  ;;  %v1653_v0 = vmul.f32 %v4402_v54, %v1579_v57  ;;  %v1655_v1 = vmul.f32 %v4402_v54, %v1581_v58  ;;  %v1519_v9 = vmax.f32 %v843_v26, 0.0  ;;  %v1523_v21 = vmax.f32 %v889_v56, 0.0 }
 0x122   :  { %v687_v6 = vmul.f32 %v4004_v41, %v613_v59  ;;  %v865_v7 = vpop.f32.mrf.mxu3  ;;  %v1657_v11 = vmul.f32 %v4402_v54, %v1583_v4  ;;  %v1661_v15 = vmul.f32 %v4402_v54, %v1587_v62 }
 0x123   :  { %v866_v46 = vadd.f32 %v865_v7, %v4393_v47  ;;  %v1717_v2 = vadd.f32 %v1653_v0, %v1515_v60  ;;  %v1719_v10 = vadd.f32 %v1655_v1, %v1517_v61 }
 0x124   :  { %v908_v13 = vpop.f32.mrf.mxu1  ;;  %v931_v8 = vpop.f32.mrf.mxu2  ;;  %v751_v14 = vadd.f32 %v687_v6, %v549_v5  ;;  %v1721_v18 = vadd.f32 %v1657_v11, %v1519_v9  ;;  %v1725_v30 = vadd.f32 %v1661_v15, %v1523_v21  ;;  %v4467_v5 = vld [vmem:[%s6105_s8] sm:$0x3] }
 0x125   :  { %v1585_v50 = vmin.f32 %v866_v46, 0.0  ;;  %v416_v16 = vpop.permute.xlu1 %415  ;;  %v4419_v17 = vpop.permute.xlu0 %761  ;;  %1804 = vmatpush.msra.mxu0 %v1717_v2  ;;  %1824 = vmatpush.msra.mxu1 %v1719_v10  ;;  %v1521_v31 = vmax.f32 %v866_v46, 0.0 }
 0x126   :  { %v485_v19 = vadd.f32 %v4377_v24, %v416_v16  ;;  %1481 = vmatpush.msrb.mxu2 %v751_v14  ;;  %v794_v20 = vadd.f32 %v4342_v44, %v4419_v17  ;;  %v817_v23 = vadd.f32 %v4366_v49, %v4419_v17  ;;  %v840_v28 = vadd.f32 %v4362_v12, %v4419_v17  ;;  %v4435_v44 = vld [vmem:[%s6101_s5 + $0x8] sm:$0xff] }
 0x127   :  { %v1659_v22 = vmul.f32 %v4402_v54, %v1585_v50  ;;  %3654 = vmatmul.msk.f32.vlgmr.msrb.gmra.mxu2 %vm769_vm0, %v4409_v63  ;;  %v863_v24 = vadd.f32 %v862_v40, %v4419_v17  ;;  %v4441_v49 = vadd.f32 %v4380_v27, %v4419_v17  ;;  %v4445_v35 = vadd.f32 %v908_v13, %v4419_v17 }
 0x128   :  { %v615_v25 = vmin.f32 %v485_v19, 0.0  ;;  %1844 = vmatpush.msra.mxu2 %v1721_v18  ;;  %v551_v32 = vmax.f32 %v485_v19, 0.0  ;;  %v1514_v12 = vmax.f32 %v794_v20, 0.0  ;;  %v1578_v37 = vmin.f32 %v794_v20, 0.0 }
 0x129   :  { %3653 = vmatmul.msk.f32.gmra.mxu1 %vm769_vm0, %v4435_v44  ;;  %v1723_v36 = vadd.f32 %v1659_v22, %v1521_v31  ;;  %v1516_v38 = vmax.f32 %v817_v23, 0.0  ;;  %v1580_v33 = vmin.f32 %v817_v23, 0.0  ;;  %v1518_v43 = vmax.f32 %v840_v28, 0.0 }
 0x12a   :  { %v689_v34 = vmul.f32 %v4004_v41, %v615_v25  ;;  %v1582_v45 = vmin.f32 %v840_v28, 0.0  ;;  %v1520_v48 = vmax.f32 %v863_v24, 0.0  ;;  %v1584_v52 = vmin.f32 %v863_v24, 0.0 }
 0x12b   :  { %v954_v29 = vpop.f32.mrf.mxu3  ;;  %v1586_v53 = vmin.f32 %v4441_v49, 0.0  ;;  %v1588_v57 = vmin.f32 %v4445_v35, 0.0  ;;  %v932_v61 = vadd.f32 %v931_v8, %v4419_v17  ;;  %v1522_v10 = vmax.f32 %v4441_v49, 0.0 }
 0x12c   :  { %v911_v39 = vpop.f32.mrf.mxu1  ;;  %v934_v40 = vpop.f32.mrf.mxu2  ;;  %v753_v42 = vadd.f32 %v689_v34, %v551_v32  ;;  %v4453_v26 = vadd.f32 %v954_v29, %v4419_v17  ;;  %v1524_v50 = vmax.f32 %v4445_v35, 0.0 }
 0x12d   :  { %v912_v27 = vadd.f32 %v911_v39, %v4393_v47  ;;  %v935_v51 = vadd.f32 %v934_v40, %v4393_v47  ;;  %v4449_v41 = vpop.permute.xlu0 %1644  ;;  %v1590_v21 = vmin.f32 %v932_v61, 0.0  ;;  %v1526_v28 = vmax.f32 %v932_v61, 0.0 }
 0x12e   :  { %v977_v55 = vpop.f32.mrf.mxu0  ;;  %1504 = vmatpush.msrb.mxu3 %v753_v42  ;;  %v1652_v56 = vmul.f32 %v4449_v41, %v1578_v37  ;;  %v1654_v3 = vmul.f32 %v4449_v41, %v1580_v33  ;;  %v1656_v4 = vmul.f32 %v4449_v41, %v1582_v45  ;;  %v1658_v9 = vmul.f32 %v4449_v41, %v1584_v52 }
 0x12f   :  { %v1525_v58 = vmax.f32 %v912_v27, 0.0  ;;  %v1589_v59 = vmin.f32 %v912_v27, 0.0  ;;  %v1591_v60 = vmin.f32 %v935_v51, 0.0  ;;  %3655 = vmatmul.msk.f32.gmra.mxu2 %vm769_vm0, %v4435_v44  ;;  %3656 = vmatmul.msk.f32.vlgmr.msrb.gmra.mxu3 %vm769_vm0, %v4409_v63  ;;  %v1527_v62 = vmax.f32 %v935_v51, 0.0 }
 0x130   :  { %1864 = vmatpush.msra.mxu3 %v1723_v36  ;;  %v1716_v0 = vadd.f32 %v1652_v56, %v1514_v12  ;;  %v1718_v1 = vadd.f32 %v1654_v3, %v1516_v38  ;;  %v1660_v63 = vmul.f32 %v4449_v41, %v1586_v53  ;;  %v4474_v46 = vadd.f32 %v977_v55, %v4419_v17 }
 0x131   :  { %v1663_v6 = vmul.f32 %v4402_v54, %v1589_v59  ;;  %v1665_v7 = vmul.f32 %v4402_v54, %v1591_v60  ;;  %v1720_v2 = vadd.f32 %v1656_v4, %v1518_v43  ;;  %v1662_v11 = vmul.f32 %v4449_v41, %v1588_v57 }
 0x132   :  { %1805 = vmatpush.msra.mxu0 %v1716_v0  ;;  %1825 = vmatpush.msra.mxu1 %v1718_v1  ;;  %v1722_v14 = vadd.f32 %v1658_v9, %v1520_v48  ;;  %v1592_v16 = vmin.f32 %v4453_v26, 0.0  ;;  %v1724_v20 = vadd.f32 %v1660_v63, %v1522_v10  ;;  %v1664_v24 = vmul.f32 %v4449_v41, %v1590_v21 }
 0x133   :  { %v1727_v13 = vadd.f32 %v1663_v6, %v1525_v58  ;;  %v1729_v8 = vadd.f32 %v1665_v7, %v1527_v62  ;;  %3658 = vmatmul.msk.f32.vlgmr.msra.gmra.mxu0 %vm769_vm0, %v4467_v5  ;;  %3659 = vmatmul.msk.f32.vlgmr.msra.gmra.mxu1 %vm769_vm0, %v4467_v5  ;;  %v957_v15 = vpop.f32.mrf.mxu3  ;;  %v1726_v25 = vadd.f32 %v1662_v11, %v1524_v50  ;;  %v1594_v31 = vmin.f32 %v4474_v46, 0.0 }
 0x134   :  { %1845 = vmatpush.msra.mxu2 %v1720_v2  ;;  %1884 = vmatpush.msrb.mxu0 %v1725_v30  ;;  %v958_v18 = vadd.f32 %v957_v15, %v4393_v47  ;;  %v1000_v19 = vpop.f32.mrf.mxu1  ;;  %v1728_v34 = vadd.f32 %v1664_v24, %v1526_v28  ;;  %v1666_v12 = vmul.f32 %v4449_v41, %v1592_v16  ;;  %v1528_v29 = vmax.f32 %v4453_v26, 0.0 }
 0x135   :  { %1865 = vmatpush.msra.mxu3 %v1722_v14  ;;  %1904 = vmatpush.msrb.mxu1 %v1727_v13  ;;  %v1001_v35 = vadd.f32 %v1000_v19, %v4419_v17  ;;  %v1668_v39 = vmul.f32 %v4449_v41, %v1594_v31  ;;  %v1530_v27 = vmax.f32 %v4474_v46, 0.0 }
 0x136   :  { %v1593_v22 = vmin.f32 %v958_v18, 0.0  ;;  %1885 = vmatpush.msrb.mxu0 %v1724_v20  ;;  %1924 = vmatpush.msrb.mxu2 %v1729_v8  ;;  %v980_v23 = vpop.f32.mrf.mxu0  ;;  %v1529_v30 = vmax.f32 %v958_v18, 0.0  ;;  %v1730_v42 = vadd.f32 %v1666_v12, %v1528_v29 }
 0x137   :  { %v981_v49 = vadd.f32 %v980_v23, %v4393_v47  ;;  %3657 = vmatmul.msk.f32.gmra.mxu3 %vm769_vm0, %v4435_v44  ;;  %3660 = vmatmul.msk.f32.vlgmr.msra.gmra.mxu2 %vm769_vm0, %v4467_v5  ;;  %v1596_v43 = vmin.f32 %v1001_v35, 0.0  ;;  %v1732_v26 = vadd.f32 %v1668_v39, %v1530_v27  ;;  %v1532_v57 = vmax.f32 %v1001_v35, 0.0 }
 0x138   :  { %v1667_v32 = vmul.f32 %v4402_v54, %v1593_v22  ;;  %1905 = vmatpush.msrb.mxu1 %v1726_v25  ;;  %1925 = vmatpush.msrb.mxu2 %v1728_v34 }
 0x139   :  { %v1595_v36 = vmin.f32 %v981_v49, 0.0  ;;  %v1531_v38 = vmax.f32 %v981_v49, 0.0  ;;  %v1670_v55 = vmul.f32 %v4449_v41, %v1596_v43 }
 0x13a   :  { %v1731_v37 = vadd.f32 %v1667_v32, %v1529_v30 }
 0x13b   :  { %v1669_v44 = vmul.f32 %v4402_v54, %v1595_v36  ;;  %3662 = vmatmul.msk.f32.vlgmr.msrb.gmra.mxu0 %vm769_vm0, %v4467_v5  ;;  %3663 = vmatmul.msk.f32.vlgmr.msrb.gmra.mxu1 %vm769_vm0, %v4467_v5  ;;  %v1023_v33 = vpop.f32.mrf.mxu2  ;;  %v1734_v1 = vadd.f32 %v1670_v55, %v1532_v57 }
 0x13c   :  { %v1003_v40 = vpop.f32.mrf.mxu1  ;;  %1944 = vmatpush.msrb.mxu3 %v1731_v37  ;;  %v1024_v53 = vadd.f32 %v1023_v33, %v4419_v17 }
 0x13d   :  { %v1733_v45 = vadd.f32 %v1669_v44, %v1531_v38  ;;  %v1004_v48 = vadd.f32 %v1003_v40, %v4393_v47 }
 0x13e   :  { %v1069_v51 = vpop.f32.mrf.mxu0  ;;  %1945 = vmatpush.msrb.mxu3 %v1730_v42  ;;  %v1598_v61 = vmin.f32 %v1024_v53, 0.0  ;;  %v1534_v11 = vmax.f32 %v1024_v53, 0.0 }
 0x13f   :  { %v1597_v52 = vmin.f32 %v1004_v48, 0.0  ;;  %3661 = vmatmul.msk.f32.vlgmr.msra.gmra.mxu3 %vm769_vm0, %v4467_v5  ;;  %3664 = vmatmul.msk.f32.vlgmr.msrb.gmra.mxu2 %vm769_vm0, %v4467_v5  ;;  %v1533_v56 = vmax.f32 %v1004_v48, 0.0  ;;  %v1070_v59 = vadd.f32 %v1069_v51, %v4419_v17 }
 0x140   :  { %1964 = vmatpush.msra.mxu0 %v1733_v45  ;;  %v1672_v63 = vmul.f32 %v4449_v41, %v1598_v61 }
 0x141   :  { %v1671_v3 = vmul.f32 %v4402_v54, %v1597_v52  ;;  %v1602_v7 = vmin.f32 %v1070_v59, 0.0  ;;  %v1538_v19 = vmax.f32 %v1070_v59, 0.0 }
 0x142   :  { %1965 = vmatpush.msra.mxu0 %v1732_v26  ;;  %v1736_v18 = vadd.f32 %v1672_v63, %v1534_v11 }
 0x143   :  { %v1735_v58 = vadd.f32 %v1671_v3, %v1533_v56  ;;  %3666 = vmatmul.msk.f32.vlgmr.msra.gmra.mxu0 %vm769_vm0, %v4467_v5  ;;  %v1026_v60 = vpop.f32.mrf.mxu2  ;;  %v1676_v15 = vmul.f32 %v4449_v41, %v1602_v7 }
 0x144   :  { %v1027_v62 = vadd.f32 %v1026_v60, %v4393_v47 }
 0x145   :  { %1984 = vmatpush.msra.mxu1 %v1735_v58  ;;  %v1092_v0 = vpop.f32.mrf.mxu1  ;;  %v1740_v28 = vadd.f32 %v1676_v15, %v1538_v19 }
 0x146   :  { %v1599_v4 = vmin.f32 %v1027_v62, 0.0  ;;  %v1072_v6 = vpop.f32.mrf.mxu0  ;;  %v1535_v46 = vmax.f32 %v1027_v62, 0.0  ;;  %v1093_v8 = vadd.f32 %v1092_v0, %v4419_v17 }
 0x147   :  { %v1073_v9 = vadd.f32 %v1072_v6, %v4393_v47  ;;  %3665 = vmatmul.msk.f32.vlgmr.msrb.gmra.mxu3 %vm769_vm0, %v4467_v5  ;;  %1985 = vmatpush.msra.mxu1 %v1734_v1 }
 0x148   :  { %v1673_v2 = vmul.f32 %v4402_v54, %v1599_v4  ;;  %3667 = vmatmul.msk.f32.vlgmr.msra.gmra.mxu1 %vm769_vm0, %v4467_v5  ;;  %v1604_v22 = vmin.f32 %v1093_v8, 0.0  ;;  %v1540_v36 = vmax.f32 %v1093_v8, 0.0 }
 0x149   :  { %v1603_v10 = vmin.f32 %v1073_v9, 0.0  ;;  %v1539_v50 = vmax.f32 %v1073_v9, 0.0 }
 0x14a   :  { %v1737_v13 = vadd.f32 %v1673_v2, %v1535_v46  ;;  %v1046_v14 = vpop.f32.mrf.mxu3  ;;  %v1678_v31 = vmul.f32 %v4449_v41, %v1604_v22 }
 0x14b   :  { %v1677_v16 = vmul.f32 %v4402_v54, %v1603_v10  ;;  %v1047_v25 = vadd.f32 %v1046_v14, %v4419_v17 }
 0x14c   :  { %2004 = vmatpush.msra.mxu2 %v1737_v13  ;;  %v1742_v44 = vadd.f32 %v1678_v31, %v1540_v36 }
 0x14d   :  { %v1741_v20 = vadd.f32 %v1677_v16, %v1539_v50  ;;  %v1095_v21 = vpop.f32.mrf.mxu1  ;;  %v1600_v34 = vmin.f32 %v1047_v25, 0.0  ;;  %v1536_v43 = vmax.f32 %v1047_v25, 0.0 }
 0x14e   :  { %v1096_v23 = vadd.f32 %v1095_v21, %v4393_v47  ;;  %2005 = vmatpush.msra.mxu2 %v1736_v18 }
 0x14f   :  { %2044 = vmatpush.msrb.mxu0 %v1741_v20  ;;  %3668 = vmatmul.msk.f32.vlgmr.msra.gmra.mxu2 %vm769_vm0, %v4467_v5  ;;  %v1674_v33 = vmul.f32 %v4449_v41, %v1600_v34 }
 0x150   :  { %v1605_v24 = vmin.f32 %v1096_v23, 0.0  ;;  %v1541_v49 = vmax.f32 %v1096_v23, 0.0 }
 0x151   :  { %2045 = vmatpush.msrb.mxu0 %v1740_v28  ;;  %v1738_v51 = vadd.f32 %v1674_v33, %v1536_v43 }
 0x152   :  { %v1679_v30 = vmul.f32 %v4402_v54, %v1605_v24  ;;  %v1049_v32 = vpop.f32.mrf.mxu3  ;;  %3670 = vmatmul.msk.f32.vlgmr.msrb.gmra.mxu0 %vm769_vm0, %v4467_v5 }
 0x153   :  { %v1050_v12 = vadd.f32 %v1049_v32, %v4393_v47  ;;  %v1161_v35 = vpop.f32.mrf.mxu0 }
 0x154   :  { %v1743_v29 = vadd.f32 %v1679_v30, %v1541_v49  ;;  %v1115_v37 = vpop.f32.mrf.mxu2  ;;  %v1162_v42 = vadd.f32 %v1161_v35, %v4419_v17 }
 0x155   :  { %v1601_v38 = vmin.f32 %v1050_v12, 0.0  ;;  %v1537_v39 = vmax.f32 %v1050_v12, 0.0  ;;  %v1116_v48 = vadd.f32 %v1115_v37, %v4419_v17 }
 0x156   :  { %2064 = vmatpush.msrb.mxu1 %v1743_v29  ;;  %v1610_v52 = vmin.f32 %v1162_v42, 0.0  ;;  %v1546_v7 = vmax.f32 %v1162_v42, 0.0 }
 0x157   :  { %v1675_v40 = vmul.f32 %v4402_v54, %v1601_v38  ;;  %v1606_v56 = vmin.f32 %v1116_v48, 0.0  ;;  %v1542_v63 = vmax.f32 %v1116_v48, 0.0 }
 0x158   :  { %2065 = vmatpush.msrb.mxu1 %v1742_v44  ;;  %v1684_v60 = vmul.f32 %v4449_v41, %v1610_v52 }
 0x159   :  { %v1739_v45 = vadd.f32 %v1675_v40, %v1537_v39  ;;  %3671 = vmatmul.msk.f32.vlgmr.msrb.gmra.mxu1 %vm769_vm0, %v4467_v5  ;;  %v1680_v0 = vmul.f32 %v4449_v41, %v1606_v56 }
 0x15a   :  { %v1748_v11 = vadd.f32 %v1684_v60, %v1546_v7 }
 0x15b   :  { %2024 = vmatpush.msra.mxu3 %v1739_v45  ;;  %v1164_v27 = vpop.f32.mrf.mxu0  ;;  %v1744_v14 = vadd.f32 %v1680_v0, %v1542_v63 }
 0x15c   :  { %v1118_v53 = vpop.f32.mrf.mxu2  ;;  %v1138_v26 = vpop.f32.mrf.mxu3  ;;  %v1165_v55 = vadd.f32 %v1164_v27, %v4393_v47 }
 0x15d   :  { %v1119_v3 = vadd.f32 %v1118_v53, %v4393_v47  ;;  %2025 = vmatpush.msra.mxu3 %v1738_v51  ;;  %v1139_v6 = vadd.f32 %v1138_v26, %v4419_v17 }
 0x15e   :  { %v1611_v57 = vmin.f32 %v1165_v55, 0.0  ;;  %v1184_v58 = vpop.f32.mrf.mxu1  ;;  %3669 = vmatmul.msk.f32.vlgmr.msra.gmra.mxu3 %vm769_vm0, %v4467_v5  ;;  %v1547_v61 = vmax.f32 %v1165_v55, 0.0 }
 0x15f   :  { %v1607_v59 = vmin.f32 %v1119_v3, 0.0  ;;  %v1543_v1 = vmax.f32 %v1119_v3, 0.0  ;;  %v1185_v2 = vadd.f32 %v1184_v58, %v4419_v17  ;;  %v1608_v13 = vmin.f32 %v1139_v6, 0.0 }
 0x160   :  { %v1685_v62 = vmul.f32 %v4402_v54, %v1611_v57  ;;  %v1544_v23 = vmax.f32 %v1139_v6, 0.0 }
 0x161   :  { %v1681_v4 = vmul.f32 %v4402_v54, %v1607_v59  ;;  %v1612_v50 = vmin.f32 %v1185_v2, 0.0  ;;  %v1682_v19 = vmul.f32 %v4449_v41, %v1608_v13  ;;  %v1548_v32 = vmax.f32 %v1185_v2, 0.0 }
 0x162   :  { %v1749_v9 = vadd.f32 %v1685_v62, %v1547_v61 }
 0x163   :  { %v1745_v46 = vadd.f32 %v1681_v4, %v1543_v1  ;;  %v1686_v28 = vmul.f32 %v4449_v41, %v1612_v50  ;;  %v1746_v12 = vadd.f32 %v1682_v19, %v1544_v23 }
 0x164   :  { %v1141_v10 = vpop.f32.mrf.mxu3  ;;  %2124 = vmatpush.msra.mxu0 %v1749_v9 }
 0x165   :  { %v1142_v8 = vadd.f32 %v1141_v10, %v4393_v47  ;;  %2084 = vmatpush.msrb.mxu2 %v1745_v46  ;;  %v1750_v36 = vadd.f32 %v1686_v28, %v1548_v32 }
 0x166   :  { %v1187_v15 = vpop.f32.mrf.mxu1  ;;  %2125 = vmatpush.msra.mxu0 %v1748_v11 }
 0x167   :  { %v1609_v16 = vmin.f32 %v1142_v8, 0.0  ;;  %v1188_v18 = vadd.f32 %v1187_v15, %v4393_v47  ;;  %2085 = vmatpush.msrb.mxu2 %v1744_v14  ;;  %3674 = vmatmul.msk.f32.vlgmr.msra.gmra.mxu0 %vm769_vm0, %v4467_v5  ;;  %v1545_v20 = vmax.f32 %v1142_v8, 0.0 }
 0x168   :  { %3672 = vmatmul.msk.f32.vlgmr.msrb.gmra.mxu2 %vm769_vm0, %v4467_v5 }
 0x169   :  { %v1683_v21 = vmul.f32 %v4402_v54, %v1609_v16  ;;  %v1613_v22 = vmin.f32 %v1188_v18, 0.0  ;;  %v1549_v31 = vmax.f32 %v1188_v18, 0.0 }
 0x16a   :  { %v1207_v25 = vpop.f32.mrf.mxu2 }
 0x16b   :  { %v1747_v24 = vadd.f32 %v1683_v21, %v1545_v20  ;;  %v1687_v49 = vmul.f32 %v4402_v54, %v1613_v22  ;;  %v1208_v35 = vadd.f32 %v1207_v25, %v4419_v17 }
 0x16c   :  { %v1253_v30 = vpop.f32.mrf.mxu0 }
 0x16d   :  { %v1751_v34 = vadd.f32 %v1687_v49, %v1549_v31  ;;  %2104 = vmatpush.msrb.mxu3 %v1747_v24  ;;  %v1254_v29 = vadd.f32 %v1253_v30, %v4419_v17  ;;  %v1614_v44 = vmin.f32 %v1208_v35, 0.0  ;;  %v1550_v26 = vmax.f32 %v1208_v35, 0.0 }
 0x16f   :  { %2105 = vmatpush.msrb.mxu3 %v1746_v12  ;;  %2144 = vmatpush.msra.mxu1 %v1751_v34  ;;  %v1618_v39 = vmin.f32 %v1254_v29, 0.0  ;;  %v1688_v27 = vmul.f32 %v4449_v41, %v1614_v44  ;;  %v1554_v62 = vmax.f32 %v1254_v29, 0.0 }
 0x170   :  { %3673 = vmatmul.msk.f32.vlgmr.msrb.gmra.mxu3 %vm769_vm0, %v4467_v5 }
 0x171   :  { %2145 = vmatpush.msra.mxu1 %v1750_v36  ;;  %v1230_v37 = vpop.f32.mrf.mxu3  ;;  %v1692_v55 = vmul.f32 %v4449_v41, %v1618_v39  ;;  %v1752_v1 = vadd.f32 %v1688_v27, %v1550_v26 }
 0x172   :  { %v1210_v38 = vpop.f32.mrf.mxu2  ;;  %3675 = vmatmul.msk.f32.vlgmr.msra.gmra.mxu1 %vm769_vm0, %v4467_v5  ;;  %v1231_v48 = vadd.f32 %v1230_v37, %v4419_v17 }
 0x173   :  { %v1211_v33 = vadd.f32 %v1210_v38, %v4393_v47  ;;  %v1756_v46 = vadd.f32 %v1692_v55, %v1554_v62 }
 0x174   :  { %v1256_v40 = vpop.f32.mrf.mxu0  ;;  %v1276_v42 = vpop.f32.mrf.mxu1  ;;  %v1616_v60 = vmin.f32 %v1231_v48, 0.0  ;;  %v1552_v14 = vmax.f32 %v1231_v48, 0.0 }
 0x175   :  { %v1615_v43 = vmin.f32 %v1211_v33, 0.0  ;;  %v1257_v45 = vadd.f32 %v1256_v40, %v4393_v47  ;;  %v1551_v51 = vmax.f32 %v1211_v33, 0.0  ;;  %v1277_v58 = vadd.f32 %v1276_v42, %v4419_v17 }
 0x176   :  { %v1690_v2 = vmul.f32 %v4449_v41, %v1616_v60 }
 0x177   :  { %v1689_v52 = vmul.f32 %v4402_v54, %v1615_v43  ;;  %v1619_v53 = vmin.f32 %v1257_v45, 0.0  ;;  %v1555_v3 = vmax.f32 %v1257_v45, 0.0  ;;  %v1620_v9 = vmin.f32 %v1277_v58, 0.0 }
 0x178   :  { %v1754_v20 = vadd.f32 %v1690_v2, %v1552_v14  ;;  %v1556_v21 = vmax.f32 %v1277_v58, 0.0 }
 0x179   :  { %v1753_v56 = vadd.f32 %v1689_v52, %v1551_v51  ;;  %v1693_v57 = vmul.f32 %v4402_v54, %v1619_v53  ;;  %v1233_v59 = vpop.f32.mrf.mxu3  ;;  %v1694_v50 = vmul.f32 %v4449_v41, %v1620_v9 }
 0x17a   :  { %v1234_v61 = vadd.f32 %v1233_v59, %v4393_v47 }
 0x17b   :  { %v1757_v0 = vadd.f32 %v1693_v57, %v1555_v3  ;;  %2164 = vmatpush.msra.mxu2 %v1753_v56  ;;  %v1758_v49 = vadd.f32 %v1694_v50, %v1556_v21 }
 0x17c   :  { %v1617_v4 = vmin.f32 %v1234_v61, 0.0  ;;  %v1279_v6 = vpop.f32.mrf.mxu1  ;;  %v1299_v7 = vpop.f32.mrf.mxu2  ;;  %v1553_v10 = vmax.f32 %v1234_v61, 0.0 }
 0x17d   :  { %v1280_v63 = vadd.f32 %v1279_v6, %v4393_v47  ;;  %2165 = vmatpush.msra.mxu2 %v1752_v1  ;;  %2204 = vmatpush.msrb.mxu0 %v1757_v0  ;;  %v1300_v19 = vadd.f32 %v1299_v7, %v4419_v17 }
 0x17e   :  { %v1691_v11 = vmul.f32 %v4402_v54, %v1617_v4  ;;  %v1345_v13 = vpop.f32.mrf.mxu0  ;;  %3676 = vmatmul.msk.f32.vlgmr.msra.gmra.mxu2 %vm769_vm0, %v4467_v5 }
 0x17f   :  { %v1621_v8 = vmin.f32 %v1280_v63, 0.0  ;;  %2205 = vmatpush.msrb.mxu0 %v1756_v46  ;;  %v1557_v16 = vmax.f32 %v1280_v63, 0.0  ;;  %v1346_v23 = vadd.f32 %v1345_v13, %v4419_v17  ;;  %v1622_v28 = vmin.f32 %v1300_v19, 0.0 }
 0x180   :  { %v1755_v15 = vadd.f32 %v1691_v11, %v1553_v10  ;;  %3678 = vmatmul.msk.f32.vlgmr.msrb.gmra.mxu0 %vm769_vm0, %v4467_v5  ;;  %v1558_v38 = vmax.f32 %v1300_v19, 0.0 }
 0x181   :  { %v1695_v18 = vmul.f32 %v4402_v54, %v1621_v8  ;;  %v1626_v32 = vmin.f32 %v1346_v23, 0.0  ;;  %v1696_v35 = vmul.f32 %v4449_v41, %v1622_v28  ;;  %v1562_v45 = vmax.f32 %v1346_v23, 0.0 }
 0x182   :  { %2184 = vmatpush.msra.mxu3 %v1755_v15 }
 0x183   :  { %v1759_v22 = vadd.f32 %v1695_v18, %v1557_v16  ;;  %v1700_v39 = vmul.f32 %v4449_v41, %v1626_v32  ;;  %v1760_v51 = vadd.f32 %v1696_v35, %v1558_v38 }
 0x184   :  { %v1302_v25 = vpop.f32.mrf.mxu2  ;;  %2185 = vmatpush.msra.mxu3 %v1754_v20 }
 0x185   :  { %v1303_v24 = vadd.f32 %v1302_v25, %v4393_v47  ;;  %2224 = vmatpush.msrb.mxu1 %v1759_v22  ;;  %v1368_v31 = vpop.f32.mrf.mxu1  ;;  %3677 = vmatmul.msk.f32.vlgmr.msra.gmra.mxu3 %vm769_vm0, %v4467_v5  ;;  %v1764_v55 = vadd.f32 %v1700_v39, %v1562_v45 }
 0x186   :  { %v1348_v30 = vpop.f32.mrf.mxu0  ;;  %v1369_v44 = vadd.f32 %v1368_v31, %v4419_v17 }
 0x187   :  { %v1623_v34 = vmin.f32 %v1303_v24, 0.0  ;;  %v1349_v12 = vadd.f32 %v1348_v30, %v4393_v47  ;;  %2225 = vmatpush.msrb.mxu1 %v1758_v49  ;;  %v1559_v36 = vmax.f32 %v1303_v24, 0.0 }
 0x188   :  { %3679 = vmatmul.msk.f32.vlgmr.msrb.gmra.mxu1 %vm769_vm0, %v4467_v5  ;;  %v1628_v52 = vmin.f32 %v1369_v44, 0.0  ;;  %v1564_v0 = vmax.f32 %v1369_v44, 0.0 }
 0x189   :  { %v1697_v29 = vmul.f32 %v4402_v54, %v1623_v34  ;;  %v1627_v37 = vmin.f32 %v1349_v12, 0.0  ;;  %v1563_v42 = vmax.f32 %v1349_v12, 0.0 }
 0x18a   :  { %v1322_v33 = vpop.f32.mrf.mxu3  ;;  %v1702_v3 = vmul.f32 %v4449_v41, %v1628_v52 }
 0x18b   :  { %v1761_v40 = vadd.f32 %v1697_v29, %v1559_v36  ;;  %v1701_v43 = vmul.f32 %v4402_v54, %v1627_v37  ;;  %v1323_v26 = vadd.f32 %v1322_v33, %v4419_v17 }
 0x18c   :  { %v1766_v7 = vadd.f32 %v1702_v3, %v1564_v0 }
 0x18d   :  { %v1765_v48 = vadd.f32 %v1701_v43, %v1563_v42  ;;  %2244 = vmatpush.msrb.mxu2 %v1761_v40  ;;  %v1371_v27 = vpop.f32.mrf.mxu1  ;;  %v1624_v60 = vmin.f32 %v1323_v26, 0.0  ;;  %v1560_v10 = vmax.f32 %v1323_v26, 0.0 }
 0x18e   :  { %v1372_v53 = vadd.f32 %v1371_v27, %v4393_v47 }
 0x18f   :  { %2245 = vmatpush.msrb.mxu2 %v1760_v51  ;;  %2284 = vmatpush.msra.mxu0 %v1765_v48  ;;  %v1698_v9 = vmul.f32 %v4449_v41, %v1624_v60 }
 0x190   :  { %v1629_v56 = vmin.f32 %v1372_v53, 0.0  ;;  %3680 = vmatmul.msk.f32.vlgmr.msrb.gmra.mxu2 %vm769_vm0, %v4467_v5  ;;  %v1565_v57 = vmax.f32 %v1372_v53, 0.0 }
 0x191   :  { %2285 = vmatpush.msra.mxu0 %v1764_v55  ;;  %v1762_v14 = vadd.f32 %v1698_v9, %v1560_v10 }
 0x192   :  { %v1703_v58 = vmul.f32 %v4402_v54, %v1629_v56  ;;  %v1325_v59 = vpop.f32.mrf.mxu3  ;;  %3682 = vmatmul.msk.f32.vlgmr.msra.gmra.mxu0 %vm769_vm0, %v4467_v5 }
 0x193   :  { %v1326_v61 = vadd.f32 %v1325_v59, %v4393_v47  ;;  %v1437_v62 = vpop.f32.mrf.mxu0 }
 0x194   :  { %v1767_v1 = vadd.f32 %v1703_v58, %v1565_v57  ;;  %v1391_v4 = vpop.f32.mrf.mxu2  ;;  %v1438_v2 = vadd.f32 %v1437_v62, %v4419_v17  ;;  %v4633_v62 = vpop.permute.xlu1 %1784 }
 0x195   :  { %v1625_v6 = vmin.f32 %v1326_v61, 0.0  ;;  %v1561_v63 = vmax.f32 %v1326_v61, 0.0  ;;  %v1392_v13 = vadd.f32 %v1391_v4, %v4419_v17 }
 0x196   :  { %2304 = vmatpush.msra.mxu1 %v1767_v1  ;;  %v1634_v15 = vmin.f32 %v1438_v2, 0.0  ;;  %v1570_v34 = vmax.f32 %v1438_v2, 0.0 }
 0x197   :  { %v1699_v46 = vmul.f32 %v4402_v54, %v1625_v6  ;;  %v1630_v19 = vmin.f32 %v1392_v13, 0.0  ;;  %v1566_v35 = vmax.f32 %v1392_v13, 0.0 }
 0x198   :  { %2305 = vmatpush.msra.mxu1 %v1766_v7  ;;  %v1708_v25 = vmul.f32 %v4449_v41, %v1634_v15 }
 0x199   :  { %v1763_v11 = vadd.f32 %v1699_v46, %v1561_v63  ;;  %3683 = vmatmul.msk.f32.vlgmr.msra.gmra.mxu1 %vm769_vm0, %v4467_v5  ;;  %v1704_v31 = vmul.f32 %v4449_v41, %v1630_v19 }
 0x19a   :  { %v1772_v38 = vadd.f32 %v1708_v25, %v1570_v34 }
 0x19b   :  { %2264 = vmatpush.msrb.mxu3 %v1763_v11  ;;  %v1440_v8 = vpop.f32.mrf.mxu0  ;;  %v1768_v39 = vadd.f32 %v1704_v31, %v1566_v35 }
 0x19c   :  { %v1394_v50 = vpop.f32.mrf.mxu2  ;;  %v1414_v16 = vpop.f32.mrf.mxu3  ;;  %v1441_v18 = vadd.f32 %v1440_v8, %v4393_v47 }
 0x19d   :  { %v1395_v20 = vadd.f32 %v1394_v50, %v4393_v47  ;;  %2265 = vmatpush.msrb.mxu3 %v1762_v14  ;;  %v1415_v32 = vadd.f32 %v1414_v16, %v4419_v17 }
 0x19e   :  { %v1635_v21 = vmin.f32 %v1441_v18, 0.0  ;;  %v1460_v22 = vpop.f32.mrf.mxu1  ;;  %3681 = vmatmul.msk.f32.vlgmr.msrb.gmra.mxu3 %vm769_vm0, %v4467_v5  ;;  %v1571_v28 = vmax.f32 %v1441_v18, 0.0 }
 0x19f   :  { %v1631_v23 = vmin.f32 %v1395_v20, 0.0  ;;  %v1567_v49 = vmax.f32 %v1395_v20, 0.0  ;;  %v1461_v29 = vadd.f32 %v1460_v22, %v4419_v17  ;;  %v1632_v44 = vmin.f32 %v1415_v32, 0.0 }
 0x1a0   :  { %v1709_v24 = vmul.f32 %v4402_v54, %v1635_v21  ;;  %v1568_v53 = vmax.f32 %v1415_v32, 0.0 }
 0x1a1   :  { %v1705_v30 = vmul.f32 %v4402_v54, %v1631_v23  ;;  %v1636_v42 = vmin.f32 %v1461_v29, 0.0  ;;  %v1706_v48 = vmul.f32 %v4449_v41, %v1632_v44  ;;  %v1572_v58 = vmax.f32 %v1461_v29, 0.0 }
 0x1a2   :  { %v1773_v12 = vadd.f32 %v1709_v24, %v1571_v28 }
 0x1a3   :  { %v1769_v36 = vadd.f32 %v1705_v30, %v1567_v49  ;;  %v1710_v55 = vmul.f32 %v4449_v41, %v1636_v42  ;;  %v1770_v60 = vadd.f32 %v1706_v48, %v1568_v53 }
 0x1a4   :  { %v1417_v37 = vpop.f32.mrf.mxu3  ;;  %2364 = vmatpush.msrb.mxu0 %v1773_v12 }
 0x1a5   :  { %v1418_v33 = vadd.f32 %v1417_v37, %v4393_v47  ;;  %2324 = vmatpush.msra.mxu2 %v1769_v36  ;;  %v1774_v0 = vadd.f32 %v1710_v55, %v1572_v58 }
 0x1a6   :  { %v1463_v40 = vpop.f32.mrf.mxu1  ;;  %2365 = vmatpush.msrb.mxu0 %v1772_v38 }
 0x1a7   :  { %v1633_v43 = vmin.f32 %v1418_v33, 0.0  ;;  %v1464_v45 = vadd.f32 %v1463_v40, %v4393_v47  ;;  %2325 = vmatpush.msra.mxu2 %v1768_v39  ;;  %3686 = vmatmul.msk.f32.vlgmr.msrb.gmra.mxu0 %vm769_vm0, %v4467_v5  ;;  %v1569_v27 = vmax.f32 %v1418_v33, 0.0 }
 0x1a8   :  { %3684 = vmatmul.msk.f32.vlgmr.msra.gmra.mxu2 %vm769_vm0, %v4467_v5 }
 0x1a9   :  { %v1707_v51 = vmul.f32 %v4402_v54, %v1633_v43  ;;  %v1637_v52 = vmin.f32 %v1464_v45, 0.0  ;;  %v1573_v3 = vmax.f32 %v1464_v45, 0.0 }
 0x1aa   :  { %v1483_v26 = vpop.f32.mrf.mxu2 }
 0x1ab   :  { %v1771_v56 = vadd.f32 %v1707_v51, %v1569_v27  ;;  %v1711_v57 = vmul.f32 %v4402_v54, %v1637_v52  ;;  %v1484_v61 = vadd.f32 %v1483_v26, %v4419_v17  ;;  %v2655_v52 = vld [vmem:[%s6107_s2] sm:$0x1] }
 0x1ad   :  { %v1775_v59 = vadd.f32 %v1711_v57, %v1573_v3  ;;  %2344 = vmatpush.msra.mxu3 %v1771_v56  ;;  %v1638_v9 = vmin.f32 %v1484_v61, 0.0  ;;  %v1574_v19 = vmax.f32 %v1484_v61, 0.0  ;;  %v2656_v61 = vld [vmem:[%s6107_s2 + $0x1] sm:$0x1] }
 0x1af   :  { %2345 = vmatpush.msra.mxu3 %v1770_v60  ;;  %2384 = vmatpush.msrb.mxu1 %v1775_v59  ;;  %v1712_v14 = vmul.f32 %v4449_v41, %v1638_v9 }
 0x1b0   :  { %v1807_v1 = vpop.f32.mrf.mxu0  ;;  %v1827_v4 = vpop.f32.mrf.mxu1  ;;  %3685 = vmatmul.msk.f32.vlgmr.msra.gmra.mxu3 %vm769_vm0, %v4467_v5 }
 0x1b1   :  { %v1808_v6 = vadd.f32 %v1807_v1, %v4633_v62  ;;  %v1828_v7 = vadd.f32 %v1827_v4, %v4633_v62  ;;  %2385 = vmatpush.msrb.mxu1 %v1774_v0  ;;  %v1776_v32 = vadd.f32 %v1712_v14, %v1574_v19 }
 0x1b2   :  { %v1486_v63 = vpop.f32.mrf.mxu2  ;;  %v1506_v46 = vpop.f32.mrf.mxu3  ;;  %3687 = vmatmul.msk.f32.vlgmr.msrb.gmra.mxu1 %vm769_vm0, %v4467_v5 }
 0x1b3   :  { %2431 = vst.msk [vmem:[%s6106_s10] sm:$0x3] %vm2430_vm1, %v1808_v6  ;;  %v2495_v2 = vrot.slane %v1808_v6, 7  ;;  %v1487_v10 = vadd.f32 %v1486_v63, %v4393_v47  ;;  %v2496_v11 = vrot.slane %v1828_v7, 7  ;;  %v1507_v18 = vadd.f32 %v1506_v46, %v4419_v17 }
 0x1b4   :  { %2432 = vst.msk [vmem:[%s6106_s10 + $0x2] sm:$0x3] %vm2430_vm1, %v1828_v7 }
 0x1b5   :  { %v2559_v13 = vsub.f32 %v1808_v6, %v2495_v2  ;;  %v1639_v8 = vmin.f32 %v1487_v10, 0.0  ;;  %v1575_v50 = vmax.f32 %v1487_v10, 0.0  ;;  %v2560_v20 = vsub.f32 %v1828_v7, %v2496_v11 }
 0x1b6   :  { %v1640_v49 = vmin.f32 %v1507_v18, 0.0  ;;  %v1576_v38 = vmax.f32 %v1507_v18, 0.0 }
 0x1b7   :  { %v2591_v15 = vmul.f32 0.5, %v2559_v13  ;;  %v1713_v16 = vmul.f32 %v4402_v54, %v1639_v8  ;;  %v2592_v34 = vmul.f32 0.5, %v2560_v20  ;;  %v2657_v13 = vld [vmem:[%s6107_s2 + $0x2] sm:$0x1] }
 0x1b8   :  { %v1887_v21 = vpop.f32.mrf.mxu0  ;;  %v1907_v22 = vpop.f32.mrf.mxu1  ;;  %v1714_v36 = vmul.f32 %v4449_v41, %v1640_v49 }
 0x1b9   :  { %3694 = vtanh.f32 %v2591_v15  ;;  %v1777_v23 = vadd.f32 %v1713_v16, %v1575_v50  ;;  %v4654_v25 = vadd.f32 %v1887_v21, %v4633_v62  ;;  %v4657_v28 = vadd.f32 %v1907_v22, %v4633_v62  ;;  %v2658_v22 = vld [vmem:[%s6107_s2 + $0x3] sm:$0x1] }
 0x1ba   :  { %v1509_v24 = vpop.f32.mrf.mxu3  ;;  %v1847_v31 = vpop.f32.mrf.mxu2  ;;  %3696 = vtanh.f32 %v2592_v34  ;;  %v1778_v45 = vadd.f32 %v1714_v36, %v1576_v38 }
 0x1bb   :  { %2435 = vst.msk [vmem:[%s6106_s10 + $0x8] sm:$0x3] %vm2430_vm1, %v4654_v25  ;;  %v1510_v17 = vadd.f32 %v1509_v24, %v4393_v47  ;;  %v1848_v30 = vadd.f32 %v1847_v31, %v4633_v62  ;;  %2404 = vmatpush.msrb.mxu2 %v1777_v23  ;;  %v2500_v11 = vrot.slane %v4657_v28, 7 }
 0x1bc   :  { %2436 = vst.msk [vmem:[%s6106_s10 + $0xa] sm:$0x3] %vm2430_vm1, %v4657_v28 }
 0x1bd   :  { %v1641_v12 = vmin.f32 %v1510_v17, 0.0  ;;  %2433 = vst.msk [vmem:[%s6106_s10 + $0x4] sm:$0x3] %vm2430_vm1, %v1848_v30  ;;  %2405 = vmatpush.msrb.mxu2 %v1776_v32  ;;  %v2497_v35 = vrot.slane %v1848_v30, 7  ;;  %v1577_v29 = vmax.f32 %v1510_v17, 0.0  ;;  %v2564_v18 = vsub.f32 %v4657_v28, %v2500_v11 }
 0x1be   :  { %3688 = vmatmul.msk.f32.vlgmr.msrb.gmra.mxu2 %vm769_vm0, %v4467_v5 }
 0x1bf   :  { %v3695_v47 = vpop.eup %3694  ;;  %v1715_v37 = vmul.f32 %v4402_v54, %v1641_v12  ;;  %v2561_v39 = vsub.f32 %v1848_v30, %v2497_v35  ;;  %v2596_v20 = vmul.f32 0.5, %v2564_v18  ;;  %v2659_v35 = vld [vmem:[%s6107_s2 + $0x4] sm:$0x1] }
 0x1c0   :  { %2719 = vst [vmem:[#allocation1] sm:$0xff] %v3695_v47  ;;  %v1967_v44 = vpop.f32.mrf.mxu0  ;;  %v3697_v26 = vpop.eup %3696 }
 0x1c1   :  { %v1779_v33 = vadd.f32 %v1715_v37, %v1577_v29  ;;  %v4680_v40 = vadd.f32 %v1967_v44, %v4633_v62  ;;  %v2593_v48 = vmul.f32 0.5, %v2561_v39 }
 0x1c2   :  { %v1867_v42 = vpop.f32.mrf.mxu3  ;;  %v1927_v43 = vpop.f32.mrf.mxu2 }
 0x1c3   :  { %2439 = vst.msk [vmem:[%s6106_s10 + $0x10] sm:$0x3] %vm2430_vm1, %v4680_v40  ;;  %v1868_v41 = vadd.f32 %v1867_v42, %v4633_v62  ;;  %v4689_v54 = vadd.f32 %v1927_v43, %v4633_v62  ;;  %2424 = vmatpush.msrb.mxu3 %v1779_v33  ;;  %3698 = vtanh.f32 %v2593_v48  ;;  %v2660_v42 = vld [vmem:[%s6107_s2 + $0x5] sm:$0x1]  ;;  %v2503_v43 = vrot.slane %v4680_v40, 7 }
 0x1c5   :  { %2434 = vst.msk [vmem:[%s6106_s10 + $0x6] sm:$0x3] %vm2430_vm1, %v1868_v41  ;;  %v2498_v27 = vrot.slane %v1868_v41, 7  ;;  %v1987_v51 = vpop.f32.mrf.mxu1  ;;  %2425 = vmatpush.msrb.mxu3 %v1778_v45  ;;  %v2501_v21 = vrot.slane %v4689_v54, 7 }
 0x1c6   :  { %2437 = vst.msk [vmem:[%s6106_s10 + $0xc] sm:$0x3] %vm2430_vm1, %v4689_v54  ;;  %v4704_v53 = vadd.f32 %v1987_v51, %v4633_v62  ;;  %3689 = vmatmul.msk.f32.vlgmr.msrb.gmra.mxu3 %vm769_vm0, %v4467_v5  ;;  %v2499_v5 = vrot.slane %v4654_v25, 7  ;;  %v2567_v51 = vsub.f32 %v4680_v40, %v2503_v43 }
 0x1c7   :  { %v2721_v55 = vld [vmem:[#allocation1 + $0x1] ss:$9 sm:$0xff]  ;;  %v2562_v3 = vsub.f32 %v1868_v41, %v2498_v27  ;;  %v2565_v24 = vsub.f32 %v4689_v54, %v2501_v21 }
 0x1c8   :  { %2722 = vst [vmem:[#allocation1] sm:$0xff] %v3697_v26  ;;  %v2816_v56 = vmul.f32 %v2721_v55, %v2655_v52  ;;  %v2563_v9 = vsub.f32 %v4654_v25, %v2499_v5  ;;  %v2504_v40 = vrot.slane %v4704_v53, 7 }
 0x1c9   :  { %2440 = vst.msk [vmem:[%s6106_s10 + $0x12] sm:$0x3] %vm2430_vm1, %v4704_v53  ;;  %v2594_v60 = vmul.f32 0.5, %v2562_v3  ;;  %v3699_v0 = vpop.eup %3698  ;;  %v2597_v32 = vmul.f32 0.5, %v2565_v24  ;;  %v2599_v3 = vmul.f32 0.5, %v2567_v51 }
 0x1ca   :  { %v1947_v57 = vpop.f32.mrf.mxu3  ;;  %v2849_v58 = vsel %vm2848_vm2, %v2816_v56, 0.0  ;;  %v2595_v10 = vmul.f32 0.5, %v2563_v9  ;;  %v2661_v56 = vld [vmem:[%s6107_s2 + $0x6] sm:$0x1]  ;;  %v2568_v5 = vsub.f32 %v4704_v53, %v2504_v40 }
 0x1cb   :  { %v1948_v59 = vadd.f32 %v1947_v57, %v4633_v62  ;;  %2850 = vadd.xlane.f32.xlu2 %v2849_v58  ;;  %3700 = vtanh.f32 %v2594_v60 }
 0x1cc   :  { %3702 = vtanh.f32 %v2595_v10 }
 0x1cd   :  { %2438 = vst.msk [vmem:[%s6106_s10 + $0xe] sm:$0x3] %vm2430_vm1, %v1948_v59  ;;  %3704 = vtanh.f32 %v2596_v20  ;;  %v2502_v34 = vrot.slane %v1948_v59, 7 }
 0x1ce   :  { %3706 = vtanh.f32 %v2597_v32 }
 0x1cf   :  { %v2723_v1 = vld [vmem:[#allocation1 + $0x1] ss:$9 sm:$0xff]  ;;  %v2047_v4 = vpop.f32.mrf.mxu0  ;;  %v2566_v37 = vsub.f32 %v1948_v59, %v2502_v34 }
 0x1d0   :  { %2724 = vst [vmem:[#allocation1] sm:$0xff] %v3699_v0  ;;  %v4724_v6 = vadd.f32 %v2047_v4, %v4633_v62  ;;  %v2817_v7 = vmul.f32 %v2723_v1, %v2656_v61  ;;  %v2662_v0 = vld [vmem:[%s6107_s2 + $0x7] sm:$0x1]  ;;  %v2600_v1 = vmul.f32 0.5, %v2568_v5 }
 0x1d1   :  { %v3701_v14 = vpop.eup %3700  ;;  %v2598_v39 = vmul.f32 0.5, %v2566_v37 }
 0x1d2   :  { %2443 = vst.msk [vmem:[%s6106_s10 + $0x18] sm:$0x3] %vm2430_vm1, %v4724_v6  ;;  %v2007_v63 = vpop.f32.mrf.mxu2  ;;  %v2852_v46 = vsel %vm2848_vm2, %v2817_v7, 0.0  ;;  %v3703_v23 = vpop.eup %3702  ;;  %v2507_v24 = vrot.slane %v4724_v6, 7 }
 0x1d3   :  { %v4734_v2 = vadd.f32 %v2007_v63, %v4633_v62  ;;  %2853 = vadd.xlane.f32.xlu0 %v2852_v46  ;;  %v3705_v47 = vpop.eup %3704  ;;  %3708 = vtanh.f32 %v2598_v39 }
 0x1d4   :  { %v3707_v41 = vpop.eup %3706  ;;  %3710 = vtanh.f32 %v2599_v3 }
 0x1d5   :  { %2441 = vst.msk [vmem:[%s6106_s10 + $0x14] sm:$0x3] %vm2430_vm1, %v4734_v2  ;;  %v2505_v4 = vrot.slane %v4734_v2, 7  ;;  %3712 = vtanh.f32 %v2600_v1 }
 0x1d6   :  { %v2067_v8 = vpop.f32.mrf.mxu1 }
 0x1d7   :  { %v2725_v15 = vld [vmem:[#allocation1 + $0x1] ss:$9 sm:$0xff]  ;;  %v4746_v50 = vadd.f32 %v2067_v8, %v4633_v62  ;;  %v2569_v10 = vsub.f32 %v4734_v2, %v2505_v4  ;;  %v2663_v2 = vld [vmem:[%s6107_s2 + $0x8] sm:$0x1] }
 0x1d8   :  { %2726 = vst [vmem:[#allocation1] sm:$0xff] %v3701_v14  ;;  %v2818_v16 = vmul.f32 %v2725_v15, %v2657_v13 }
 0x1d9   :  { %2444 = vst.msk [vmem:[%s6106_s10 + $0x1a] sm:$0x3] %vm2430_vm1, %v4746_v50  ;;  %v3709_v57 = vpop.eup %3708  ;;  %v2601_v14 = vmul.f32 0.5, %v2569_v10 }
 0x1da   :  { %v2855_v19 = vsel %vm2848_vm2, %v2818_v16, 0.0  ;;  %v3711_v63 = vpop.eup %3710 }
 0x1db   :  { %2856 = vadd.xlane.f32.xlu1 %v2855_v19  ;;  %v3713_v18 = vpop.eup %3712  ;;  %3714 = vtanh.f32 %v2601_v14 }
 0x1df   :  { %v2727_v25 = vld [vmem:[#allocation1 + $0x1] ss:$9 sm:$0xff] }
 0x1e0   :  { %2728 = vst [vmem:[#allocation1] sm:$0xff] %v3703_v23  ;;  %v2819_v28 = vmul.f32 %v2727_v25, %v2658_v22 }
 0x1e1   :  { %v2027_v31 = vpop.f32.mrf.mxu3 }
 0x1e2   :  { %v4761_v49 = vadd.f32 %v2027_v31, %v4633_v62  ;;  %v2858_v17 = vsel %vm2848_vm2, %v2819_v28, 0.0  ;;  %v2664_v28 = vld [vmem:[%s6107_s2 + $0x9] sm:$0x1] }
 0x1e3   :  { %2859 = vadd.xlane.f32.xlu2 %v2858_v17 }
 0x1e4   :  { %2442 = vst.msk [vmem:[%s6106_s10 + $0x16] sm:$0x3] %vm2430_vm1, %v4761_v49  ;;  %v2127_v30 = vpop.f32.mrf.mxu0  ;;  %v2506_v16 = vrot.slane %v4761_v49, 7 }
 0x1e5   :  { %v4770_v12 = vadd.f32 %v2127_v30, %v4633_v62  ;;  %v3715_v30 = vpop.eup %3714 }
 0x1e6   :  { %v2570_v23 = vsub.f32 %v4761_v49, %v2506_v16 }
 0x1e7   :  { %v2729_v36 = vld [vmem:[#allocation1 + $0x1] ss:$9 sm:$0xff]  ;;  %2447 = vst.msk [vmem:[%s6106_s10 + $0x20] sm:$0x3] %vm2430_vm1, %v4770_v12 }
 0x1e8   :  { %2730 = vst [vmem:[#allocation1] sm:$0xff] %v3705_v47  ;;  %v2820_v29 = vmul.f32 %v2729_v36, %v2659_v35  ;;  %v2602_v31 = vmul.f32 0.5, %v2570_v23  ;;  %v2571_v35 = vsub.f32 %v4724_v6, %v2507_v24  ;;  %v4981_v24 = vld [vmem:[%s6108_s3 + $0x3] sm:$0x1] }
 0x1e9   :  { %vm2980_vm6 = vcmp.gt.f32.partialorder %v4981_v24, 0.0 }
 0x1ea   :  { %v2861_v38 = vsel %vm2848_vm2, %v2820_v29, 0.0  ;;  %3716 = vtanh.f32 %v2602_v31  ;;  %v2603_v6 = vmul.f32 0.5, %v2571_v35 }
 0x1eb   :  { %v2087_v44 = vpop.f32.mrf.mxu2  ;;  %2862 = vadd.xlane.f32.xlu2 %v2861_v38  ;;  %v2665_v38 = vld [vmem:[%s6107_s2 + $0xa] sm:$0x1] }
 0x1ec   :  { %v4782_v33 = vadd.f32 %v2087_v44, %v4633_v62  ;;  %v2508_v44 = vrot.slane %v4746_v50, 7  ;;  %3718 = vtanh.f32 %v2603_v6 }
 0x1ee   :  { %2445 = vst.msk [vmem:[%s6106_s10 + $0x1c] sm:$0x3] %vm2430_vm1, %v4782_v33 }
 0x1ef   :  { %v2731_v54 = vld [vmem:[#allocation1 + $0x1] ss:$9 sm:$0xff]  ;;  %v2147_v45 = vpop.f32.mrf.mxu1 }
 0x1f0   :  { %2732 = vst [vmem:[#allocation1] sm:$0xff] %v3707_v41  ;;  %v4794_v48 = vadd.f32 %v2147_v45, %v4633_v62  ;;  %v2821_v27 = vmul.f32 %v2731_v54, %v2660_v42  ;;  %v4893_v42 = vld [vmem:[%s6108_s3] sm:$0x1]  ;;  %v3717_v41 = vpop.eup %3716  ;;  %v2572_v45 = vsub.f32 %v4746_v50, %v2508_v44  ;;  %v2509_v50 = vrot.slane %v4782_v33, 7 }
 0x1f1   :  { %vm2977_vm3 = vcmp.gt.f32.partialorder %v4893_v42, 0.0 }
 0x1f2   :  { %2448 = vst.msk [vmem:[%s6106_s10 + $0x22] sm:$0x3] %vm2430_vm1, %v4794_v48  ;;  %v2864_v52 = vsel %vm2848_vm2, %v2821_v27, 0.0  ;;  %v4906_v51 = vsel %vm2977_vm3, %v4893_v42, 1.0  ;;  %v3719_v3 = vpop.eup %3718  ;;  %v2573_v5 = vsub.f32 %v4782_v33, %v2509_v50 }
 0x1f3   :  { %v2107_v26 = vpop.f32.mrf.mxu3  ;;  %2865 = vadd.xlane.f32.xlu0 %v2864_v52  ;;  %v2604_v52 = vmul.f32 0.5, %v2572_v45  ;;  %3720 = vrcp.f32 %v4906_v51  ;;  %vm3046_vm7 = vweird.f32 %v4906_v51  ;;  %v3052_v6 = vand.u32 2147483648, %v4906_v51 }
 0x1f4   :  { %v4804_v55 = vadd.f32 %v2107_v26, %v4633_v62  ;;  %v2666_v26 = vld [vmem:[%s6107_s2 + $0xb] sm:$0x1]  ;;  %v2512_v45 = vrot.slane %v4794_v48, 7 }
 0x1f5   :  { %3722 = vtanh.f32 %v2604_v52  ;;  %v5026_v52 = vld [vmem:[%s6108_s3 + $0x4] sm:$0x1]  ;;  %v3053_v50 = vor.u32 1.1754944e-38, %v3052_v6 }
 0x1f6   :  { %2446 = vst.msk [vmem:[%s6106_s10 + $0x1e] sm:$0x3] %vm2430_vm1, %v4804_v55  ;;  %v2510_v33 = vrot.slane %v4804_v55, 7  ;;  %vm2981_vm13 = vcmp.gt.f32.partialorder %v5026_v52, 0.0 }
 0x1f7   :  { %v2733_v58 = vld [vmem:[#allocation1 + $0x1] ss:$9 sm:$0xff] }
 0x1f8   :  { %2734 = vst [vmem:[#allocation1] sm:$0xff] %v3709_v57  ;;  %v2822_v59 = vmul.f32 %v2733_v58, %v2661_v56  ;;  %v4914_v56 = vld [vmem:[%s6108_s3 + $0x1] sm:$0x1]  ;;  %v2574_v14 = vsub.f32 %v4804_v55, %v2510_v33  ;;  %v2511_v55 = vrot.slane %v4770_v12, 7 }
 0x1f9   :  { %vm2978_vm4 = vcmp.gt.f32.partialorder %v4914_v56, 0.0  ;;  %v4937_v4 = vpop.eup %3720 }
 0x1fa   :  { %v2867_v60 = vsel %vm2848_vm2, %v2822_v59, 0.0  ;;  %v2606_v23 = vmul.f32 0.5, %v2574_v14  ;;  %vm3047_vm8 = vweird.f32 %v4937_v4 }
 0x1fb   :  { %2868 = vadd.xlane.f32.xlu1 %v2867_v60  ;;  %vm5019_vm9 = vmor %vm3046_vm7, %vm3047_vm8 }
 0x1fd   :  { %v2207_v61 = vpop.f32.mrf.mxu0 }
 0x1fe   :  { %v4822_v7 = vadd.f32 %v2207_v61, %v4633_v62 }
 0x1ff   :  { %v2735_v9 = vld [vmem:[#allocation1 + $0x1] ss:$9 sm:$0xff] }
 0x200   :  { %2451 = vst.msk [vmem:[%s6106_s10 + $0x28] sm:$0x3] %vm2430_vm1, %v4822_v7  ;;  %v2823_v53 = vmul.f32 %v2735_v9, %v2662_v0  ;;  %v4932_v0 = vsel %vm2978_vm4, %v4914_v56, 1.0  ;;  %v2667_v9 = vld [vmem:[%s6107_s2 + $0xc] sm:$0x1] }
 0x201   :  { %v2167_v46 = vpop.f32.mrf.mxu2  ;;  %2736 = vst [vmem:[#allocation1] sm:$0xff] %v3711_v63  ;;  %3724 = vrcp.f32 %v4932_v0  ;;  %v4952_v63 = vld [vmem:[%s6108_s3 + $0x2] sm:$0x1]  ;;  %vm3061_vm11 = vweird.f32 %v4932_v0 }
 0x202   :  { %v4831_v11 = vadd.f32 %v2167_v46, %v4633_v62  ;;  %v2870_v13 = vsel %vm2848_vm2, %v2823_v53, 0.0  ;;  %v2605_v53 = vmul.f32 0.5, %v2573_v5  ;;  %v3723_v46 = vpop.eup %3722  ;;  %vm2979_vm5 = vcmp.gt.f32.partialorder %v4952_v63, 0.0 }
 0x203   :  { %2871 = vadd.xlane.f32.xlu2 %v2870_v13  ;;  %v3042_v13 = vmul.f32 %v4937_v4, %v4906_v51  ;;  %v2576_v5 = vsub.f32 %v4794_v48, %v2512_v45 }
 0x204   :  { %2449 = vst.msk [vmem:[%s6106_s10 + $0x24] sm:$0x3] %vm2430_vm1, %v4831_v11  ;;  %3726 = vtanh.f32 %v2605_v53  ;;  %v3067_v53 = vand.u32 2147483648, %v4932_v0 }
 0x205   :  { %v2227_v8 = vpop.f32.mrf.mxu1  ;;  %v2608_v14 = vmul.f32 0.5, %v2576_v5 }
 0x206   :  { %v4840_v15 = vadd.f32 %v2227_v8, %v4633_v62 }
 0x208   :  { %2452 = vst.msk [vmem:[%s6106_s10 + $0x2a] sm:$0x3] %vm2430_vm1, %v4840_v15  ;;  %v2187_v19 = vpop.f32.mrf.mxu3  ;;  %v2737_v20 = vld [vmem:[#allocation1 + $0x1] ss:$9 sm:$0xff] }
 0x209   :  { %v4852_v21 = vadd.f32 %v2187_v19, %v4633_v62  ;;  %v2824_v22 = vmul.f32 %v2737_v20, %v2663_v2  ;;  %2738 = vst [vmem:[#allocation1] sm:$0xff] %v3713_v18  ;;  %v4962_v19 = vpop.eup %3724  ;;  %v3043_v20 = vsub.f32 1.0, %v3042_v13  ;;  %v5053_v13 = vsel %vm2981_vm13, %v5026_v52, 1.0 }
 0x20a   :  { %vm3062_vm12 = vweird.f32 %v4962_v19 }
 0x20b   :  { %2450 = vst.msk [vmem:[%s6106_s10 + $0x26] sm:$0x3] %vm2430_vm1, %v4852_v21  ;;  %v2873_v25 = vsel %vm2848_vm2, %v2824_v22, 0.0  ;;  %v4967_v22 = vsel %vm2979_vm5, %v4952_v63, 1.0  ;;  %vm5046_vm14 = vmor %vm3061_vm11, %vm3062_vm12 }
 0x20c   :  { %2874 = vadd.xlane.f32.xlu0 %v2873_v25  ;;  %3728 = vrcp.f32 %v4967_v22  ;;  %v3080_v6 = vand.u32 2147483647, %v4967_v22 }
 0x20d   :  { %3730 = vtanh.f32 %v2606_v23 }
 0x20f   :  { %v2287_v17 = vpop.f32.mrf.mxu0 }
 0x210   :  { %v4866_v49 = vadd.f32 %v2287_v17, %v4633_v62  ;;  %v2739_v32 = vld [vmem:[#allocation1 + $0x1] ss:$9 sm:$0xff]  ;;  %v3057_v17 = vmul.f32 %v4962_v19, %v4932_v0 }
 0x211   :  { %v2825_v34 = vmul.f32 %v2739_v32, %v2664_v28  ;;  %2740 = vst [vmem:[#allocation1] sm:$0xff] %v3715_v30  ;;  %v2668_v28 = vld [vmem:[%s6107_s2 + $0xd] sm:$0x1]  ;;  %v3044_v32 = vmul.f32 %v4937_v4, %v3043_v20  ;;  %v5061_v20 = vld [vmem:[%s6108_s3 + $0x5] sm:$0x1] }
 0x212   :  { %2455 = vst.msk [vmem:[%s6106_s10 + $0x30] sm:$0x3] %vm2430_vm1, %v4866_v49  ;;  %v3058_v44 = vsub.f32 1.0, %v3057_v17  ;;  %vm2982_vm7 = vcmp.gt.f32.partialorder %v5061_v20, 0.0 }
 0x213   :  { %v2247_v47 = vpop.f32.mrf.mxu2  ;;  %v2876_v36 = vsel %vm2848_vm2, %v2825_v34, 0.0  ;;  %v3727_v34 = vpop.eup %3726 }
 0x214   :  { %v4876_v29 = vadd.f32 %v2247_v47, %v4633_v62  ;;  %2877 = vadd.xlane.f32.xlu1 %v2876_v36  ;;  %v2575_v47 = vsub.f32 %v4770_v12, %v2511_v55  ;;  %v3050_v12 = vand.u32 2147483647, %v4906_v51  ;;  %v2670_v55 = vld [vmem:[%s6107_s2 + $0xf] sm:$0x1] }
 0x216   :  { %2453 = vst.msk [vmem:[%s6106_s10 + $0x2c] sm:$0x3] %vm2430_vm1, %v4876_v29  ;;  %v2307_v37 = vpop.f32.mrf.mxu1  ;;  %v2607_v51 = vmul.f32 0.5, %v2575_v47  ;;  %vm3051_vm10 = vcmp.eq.f32.partialorder %v3050_v12, 8.507059e+37 }
 0x217   :  { %v4888_v39 = vadd.f32 %v2307_v37, %v4633_v62 }
 0x218   :  { %v2741_v43 = vld [vmem:[#allocation1 + $0x1] ss:$9 sm:$0xff] }
 0x219   :  { %2456 = vst.msk [vmem:[%s6106_s10 + $0x32] sm:$0x3] %vm2430_vm1, %v4888_v39  ;;  %v2826_v54 = vmul.f32 %v2741_v43, %v2665_v38  ;;  %v3045_v43 = vadd.f32 %v4937_v4, %v3044_v32 }
 0x21a   :  { %2742 = vst [vmem:[#allocation1] sm:$0xff] %v3717_v41  ;;  %v5009_v41 = vsel %vm2980_vm6, %v4981_v24, 1.0 }
 0x21b   :  { %v2879_v27 = vsel %vm2848_vm2, %v2826_v54, 0.0  ;;  %v5011_v54 = vpop.eup %3728  ;;  %3732 = vrcp.f32 %v5009_v41  ;;  %vm3091_vm11 = vweird.f32 %v5009_v41 }
 0x21c   :  { %2880 = vadd.xlane.f32.xlu2 %v2879_v27  ;;  %3734 = vtanh.f32 %v2607_v51  ;;  %vm3077_vm8 = vweird.f32 %v5011_v54 }
 0x21d   :  { %3736 = vrcp.f32 %v5053_v13 }
 0x21e   :  { %3738 = vtanh.f32 %v2608_v14  ;;  %v3097_v14 = vand.u32 2147483648, %v5009_v41 }
 0x221   :  { %v2267_v40 = vpop.f32.mrf.mxu3  ;;  %v2743_v57 = vld [vmem:[#allocation1 + $0x1] ss:$9 sm:$0xff] }
 0x222   :  { %v4920_v58 = vadd.f32 %v2267_v40, %v4633_v62  ;;  %v2827_v59 = vmul.f32 %v2743_v57, %v2666_v26  ;;  %2744 = vst [vmem:[#allocation1] sm:$0xff] %v3719_v3  ;;  %v2669_v26 = vld [vmem:[%s6107_s2 + $0xe] sm:$0x1]  ;;  %v3059_v3 = vmul.f32 %v4962_v19, %v3058_v44  ;;  %v3731_v40 = vpop.eup %3730  ;;  %v3049_v57 = vsel %vm5019_vm9, %v4937_v4, %v3045_v43 }
 0x223   :  { %v3054_v33 = vsel %vm3051_vm10, %v3053_v50, %v3049_v57  ;;  %v3065_v4 = vand.u32 2147483647, %v4932_v0  ;;  %v3082_v44 = vand.u32 2147483648, %v4967_v22  ;;  %v2514_v57 = vrot.slane %v4852_v21, 7 }
 0x224   :  { %2454 = vst.msk [vmem:[%s6106_s10 + $0x2e] sm:$0x3] %vm2430_vm1, %v4920_v58  ;;  %v2882_v60 = vsel %vm2848_vm2, %v2827_v59, 0.0  ;;  %v2367_v61 = vpop.f32.mrf.mxu0  ;;  %v3072_v59 = vmul.f32 %v5011_v54, %v4967_v22  ;;  %vm5122_vm10 = vcmp.eq.f32.partialorder %v3080_v6, 8.507059e+37 }
 0x225   :  { %2883 = vadd.xlane.f32.xlu0 %v2882_v60  ;;  %v4935_v1 = vadd.f32 %v2367_v61, %v4633_v62  ;;  %vm5069_vm0 = vcmp.eq.f32.partialorder %v3065_v4, 8.507059e+37 }
 0x227   :  { %2459 = vst.msk [vmem:[%s6106_s10 + $0x38] sm:$0x3] %vm2430_vm1, %v4935_v1 }
 0x229   :  { %v2745_v10 = vld [vmem:[#allocation1 + $0x1] ss:$9 sm:$0xff] }
 0x22a   :  { %v2828_v8 = vmul.f32 %v2745_v10, %v2667_v9  ;;  %2746 = vst [vmem:[#allocation1] sm:$0xff] %v3723_v46  ;;  %v3060_v9 = vadd.f32 %v4962_v19, %v3059_v3  ;;  %v3073_v10 = vsub.f32 1.0, %v3072_v59  ;;  %v5116_v3 = vld [vmem:[%s6108_s3 + $0x6] sm:$0x1]  ;;  %v2671_v59 = vld [vmem:[%s6107_s2 + $0x10] sm:$0x1] }
 0x22b   :  { %v2327_v2 = vpop.f32.mrf.mxu2 }
 0x22c   :  { %v4959_v16 = vadd.f32 %v2327_v2, %v4633_v62  ;;  %v2885_v18 = vsel %vm2848_vm2, %v2828_v8, 0.0  ;;  %v5055_v8 = vpop.eup %3732  ;;  %v3064_v23 = vsel %vm5046_vm14, %v4962_v19, %v3060_v9 }
 0x22d   :  { %2886 = vadd.xlane.f32.xlu1 %v2885_v18  ;;  %v2513_v18 = vrot.slane %v4831_v11, 7  ;;  %v3735_v17 = vpop.eup %3734  ;;  %vm3092_vm12 = vweird.f32 %v5055_v8 }
 0x22e   :  { %2457 = vst.msk [vmem:[%s6106_s10 + $0x34] sm:$0x3] %vm2430_vm1, %v4959_v16  ;;  %v5106_v27 = vpop.eup %3736 }
 0x22f   :  { %v2387_v25 = vpop.f32.mrf.mxu1  ;;  %v2577_v42 = vsub.f32 %v4831_v11, %v2513_v18  ;;  %v5102_v11 = vsel %vm2982_vm7, %v5061_v20, 1.0 }
 0x230   :  { %v4984_v31 = vadd.f32 %v2387_v25, %v4633_v62  ;;  %3740 = vrcp.f32 %v5102_v11 }
 0x231   :  { %v2747_v30 = vld [vmem:[#allocation1 + $0x1] ss:$9 sm:$0xff]  ;;  %v2609_v50 = vmul.f32 0.5, %v2577_v42 }
 0x232   :  { %2460 = vst.msk [vmem:[%s6106_s10 + $0x3a] sm:$0x3] %vm2430_vm1, %v4984_v31  ;;  %v2829_v35 = vmul.f32 %v2747_v30, %v2668_v28  ;;  %v3068_v28 = vor.u32 1.1754944e-38, %v3067_v53  ;;  %v3102_v53 = vmul.f32 %v5106_v27, %v5053_v13 }
 0x233   :  { %v2347_v36 = vpop.f32.mrf.mxu3  ;;  %2748 = vst [vmem:[#allocation1] sm:$0xff] %v3727_v34  ;;  %v3074_v34 = vmul.f32 %v5011_v54, %v3073_v10  ;;  %3742 = vtanh.f32 %v2609_v50  ;;  %v3095_v10 = vand.u32 2147483647, %v5009_v41 }
 0x234   :  { %v5000_v37 = vadd.f32 %v2347_v36, %v4633_v62  ;;  %v2888_v38 = vsel %vm2848_vm2, %v2829_v35, 0.0  ;;  %v3087_v35 = vmul.f32 %v5055_v8, %v5009_v41  ;;  %v2515_v41 = vrot.slane %v4822_v7, 7 }
 0x235   :  { %2889 = vadd.xlane.f32.xlu2 %v2888_v38  ;;  %v3069_v38 = vsel %vm5069_vm0, %v3068_v28, %v3064_v23  ;;  %v3075_v12 = vadd.f32 %v5011_v54, %v3074_v34  ;;  %v3098_v34 = vor.u32 1.1754944e-38, %v3097_v14  ;;  %vm3096_vm14 = vcmp.eq.f32.partialorder %v3095_v10, 8.507059e+37 }
 0x236   :  { %2458 = vst.msk [vmem:[%s6106_s10 + $0x36] sm:$0x3] %vm2430_vm1, %v5000_v37  ;;  %v3088_v45 = vsub.f32 1.0, %v3087_v35  ;;  %v3125_v10 = vand.u32 2147483647, %v5102_v11  ;;  %v3127_v14 = vand.u32 2147483648, %v5102_v11 }
 0x238   :  { %v3089_v4 = vmul.f32 %v5055_v8, %v3088_v45 }
 0x23a   :  { %v2749_v60 = vld [vmem:[#allocation1 + $0x1] ss:$9 sm:$0xff] }
 0x23b   :  { %v2830_v61 = vmul.f32 %v2749_v60, %v2669_v26  ;;  %2750 = vst [vmem:[#allocation1] sm:$0xff] %v3731_v40  ;;  %v3739_v40 = vpop.eup %3738  ;;  %v3083_v60 = vor.u32 1.1754944e-38, %v3082_v44  ;;  %v2579_v44 = vsub.f32 %v4822_v7, %v2515_v41  ;;  %v3110_v26 = vand.u32 2147483647, %v5053_v13 }
 0x23d   :  { %v2891_v46 = vsel %vm2848_vm2, %v2830_v61, 0.0 }
 0x23e   :  { %2892 = vadd.xlane.f32.xlu0 %v2891_v46  ;;  %v2851_v2 = vpop.xlane.xlu2 %2850 }
 0x23f   :  { %v3055_v0 = vmul.f32 %v3054_v33, %v2851_v2  ;;  %v5154_v2 = vpop.eup %3740 }
 0x240   :  { %v3117_v35 = vmul.f32 %v5154_v2, %v5102_v11 }
 0x241   :  { %v3521_v30 = vsel %vm2977_vm3, %v3055_v0, 0.0  ;;  %v2407_v32 = vpop.f32.mrf.mxu2  ;;  %vm3076_vm3 = vweird.f32 %v4967_v22  ;;  %v3090_v0 = vadd.f32 %v5055_v8, %v3089_v4 }
 0x242   :  { %3554 = vst.msk [vmem:[%s6109_s11] sm:$0x1] %vm3553_vm15, %v3521_v30  ;;  %v5085_v19 = vadd.f32 %v2407_v32, %v4633_v62  ;;  %v2751_v47 = vld [vmem:[#allocation1 + $0x1] ss:$9 sm:$0xff]  ;;  %vm5108_vm9 = vmor %vm3076_vm3, %vm3077_vm8  ;;  %v2672_v32 = vld [vmem:[%s6107_s2 + $0x11] sm:$0x1]  ;;  %vm3107_vm3 = vweird.f32 %v5106_v27 }
 0x243   :  { %v2831_v36 = vmul.f32 %v2751_v47, %v2670_v55  ;;  %2752 = vst [vmem:[#allocation1] sm:$0xff] %v3735_v17  ;;  %v3079_v9 = vsel %vm5108_vm9, %v5011_v54, %v3075_v12  ;;  %v2578_v54 = vsub.f32 %v4852_v21, %v2514_v57  ;;  %v3103_v21 = vsub.f32 1.0, %v3102_v53  ;;  %v5171_v17 = vld [vmem:[%s6108_s3 + $0x7] sm:$0x1]  ;;  %v3743_v47 = vpop.eup %3742 }
 0x244   :  { %2461 = vst.msk [vmem:[%s6106_s10 + $0x3c] sm:$0x3] %vm2430_vm1, %v5085_v19  ;;  %vm2984_vm0 = vcmp.gt.f32.partialorder %v5171_v17, 0.0  ;;  %v3118_v12 = vsub.f32 1.0, %v3117_v35  ;;  %v2611_v57 = vmul.f32 0.5, %v2579_v44  ;;  %vm3111_vm9 = vcmp.eq.f32.partialorder %v3110_v26, 8.507059e+37 }
 0x245   :  { %v2894_v43 = vsel %vm2848_vm2, %v2831_v36, 0.0  ;;  %v2610_v30 = vmul.f32 0.5, %v2578_v54  ;;  %v5200_v7 = vsel %vm2984_vm0, %v5171_v17, 1.0  ;;  %v3128_v35 = vor.u32 1.1754944e-38, %v3127_v14 }
 0x246   :  { %2895 = vadd.xlane.f32.xlu1 %v2894_v43  ;;  %v2854_v51 = vpop.xlane.xlu0 %2853 }
 0x247   :  { %v3070_v22 = vmul.f32 %v3069_v38, %v2854_v51  ;;  %v3104_v38 = vmul.f32 %v5106_v27, %v3103_v21 }
 0x249   :  { %v3522_v61 = vsel %vm2978_vm4, %v3070_v22, 0.0  ;;  %v2427_v33 = vpop.f32.mrf.mxu3  ;;  %vm2983_vm4 = vcmp.gt.f32.partialorder %v5116_v3, 0.0  ;;  %v3105_v51 = vadd.f32 %v5106_v27, %v3104_v38 }
 0x24a   :  { %3555 = vst.msk [vmem:[%s6109_s11 + $0x1] sm:$0x1] %vm3553_vm15, %v3522_v61  ;;  %v5139_v46 = vadd.f32 %v2427_v33, %v4633_v62  ;;  %v2753_v56 = vld [vmem:[#allocation1 + $0x1] ss:$9 sm:$0xff]  ;;  %v3084_v62 = vsel %vm5122_vm10, %v3083_v60, %v3079_v9  ;;  %v5161_v55 = vsel %vm2983_vm4, %v5116_v3, 1.0  ;;  %v3119_v61 = vmul.f32 %v5154_v2, %v3118_v12 }
 0x24b   :  { %v2832_v48 = vmul.f32 %v2753_v56, %v2671_v59  ;;  %2754 = vst [vmem:[#allocation1] sm:$0xff] %v3739_v40  ;;  %3744 = vrcp.f32 %v5161_v55  ;;  %v2516_v59 = vrot.slane %v4840_v15, 7  ;;  %v5217_v33 = vld [vmem:[%s6108_s3 + $0x8] sm:$0x1]  ;;  %vm3121_vm10 = vweird.f32 %v5102_v11 }
 0x24c   :  { %2462 = vst.msk [vmem:[%s6106_s10 + $0x3e] sm:$0x3] %vm2430_vm1, %v5139_v46  ;;  %vm5163_vm1 = vmor %vm3091_vm11, %vm3092_vm12  ;;  %3746 = vtanh.f32 %v2610_v30  ;;  %vm3122_vm11 = vweird.f32 %v5154_v2  ;;  %v2674_v30 = vld [vmem:[%s6107_s2 + $0x13] sm:$0x1] }
 0x24d   :  { %v2897_v18 = vsel %vm2848_vm2, %v2832_v48, 0.0  ;;  %v3094_v36 = vsel %vm5163_vm1, %v5055_v8, %v3090_v0  ;;  %v3112_v8 = vand.u32 2147483648, %v5053_v13  ;;  %3748 = vrcp.f32 %v5200_v7  ;;  %vm5238_vm12 = vmor %vm3121_vm10, %vm3122_vm11 }
 0x24e   :  { %2898 = vadd.xlane.f32.xlu2 %v2897_v18  ;;  %v2857_v23 = vpop.xlane.xlu1 %2856  ;;  %v3099_v63 = vsel %vm3096_vm14, %v3098_v34, %v3094_v36  ;;  %3750 = vtanh.f32 %v2611_v57  ;;  %v2580_v24 = vsub.f32 %v4840_v15, %v2516_v59  ;;  %v2517_v15 = vrot.slane %v4876_v29, 7 }
 0x24f   :  { %v3085_v28 = vmul.f32 %v3084_v62, %v2857_v23  ;;  %v3113_v60 = vor.u32 1.1754944e-38, %v3112_v8  ;;  %v3120_v62 = vadd.f32 %v5154_v2, %v3119_v61  ;;  %vm5256_vm1 = vcmp.eq.f32.partialorder %v3125_v10, 8.507059e+37  ;;  %v5307_v61 = vld [vmem:[%s6108_s3 + $0xa] sm:$0x1] }
 0x250   :  { %vm3136_vm14 = vweird.f32 %v5161_v55  ;;  %vm2987_vm10 = vcmp.gt.f32.partialorder %v5307_v61, 0.0  ;;  %v3155_v10 = vand.u32 2147483647, %v5200_v7 }
 0x251   :  { %v3523_v42 = vsel %vm2979_vm5, %v3085_v28, 0.0  ;;  %vm3106_vm5 = vweird.f32 %v5053_v13  ;;  %v5202_v50 = vpop.eup %3744  ;;  %v2673_v13 = vld [vmem:[%s6107_s2 + $0x12] sm:$0x1]  ;;  %v2612_v28 = vmul.f32 0.5, %v2580_v24 }
 0x252   :  { %3556 = vst.msk [vmem:[%s6109_s11 + $0x2] sm:$0x1] %vm3553_vm15, %v3523_v42  ;;  %v2755_v6 = vld [vmem:[#allocation1 + $0x1] ss:$9 sm:$0xff]  ;;  %vm5204_vm8 = vmor %vm3106_vm5, %vm3107_vm3  ;;  %v3132_v53 = vmul.f32 %v5202_v50, %v5161_v55  ;;  %v3747_v56 = vpop.eup %3746 }
 0x253   :  { %v2833_v43 = vmul.f32 %v2755_v6, %v2672_v32  ;;  %2756 = vst [vmem:[#allocation1] sm:$0xff] %v3743_v47  ;;  %v3109_v4 = vsel %vm5204_vm8, %v5106_v27, %v3105_v51  ;;  %v5242_v23 = vpop.eup %3748  ;;  %v3124_v32 = vsel %vm5238_vm12, %v5154_v2, %v3120_v62  ;;  %v5263_v47 = vld [vmem:[%s6108_s3 + $0x9] sm:$0x1]  ;;  %v2581_v2 = vsub.f32 %v4876_v29, %v2517_v15 }
 0x254   :  { %v3114_v27 = vsel %vm3111_vm9, %v3113_v60, %v3109_v4  ;;  %v3133_v21 = vsub.f32 1.0, %v3132_v53  ;;  %v3751_v42 = vpop.eup %3750  ;;  %v3147_v6 = vmul.f32 %v5242_v23, %v5200_v7  ;;  %vm2986_vm5 = vcmp.gt.f32.partialorder %v5263_v47, 0.0 }
 0x255   :  { %v2900_v45 = vsel %vm2848_vm2, %v2833_v43, 0.0  ;;  %v3129_v52 = vsel %vm5256_vm1, %v3128_v35, %v3124_v32  ;;  %v3140_v29 = vand.u32 2147483647, %v5161_v55  ;;  %v2518_v51 = vrot.slane %v4920_v58, 7  ;;  %v5356_v35 = vld [vmem:[%s6108_s3 + $0xb] sm:$0x1] }
 0x256   :  { %2901 = vadd.xlane.f32.xlu0 %v2900_v45  ;;  %v2860_v22 = vpop.xlane.xlu2 %2859  ;;  %v3134_v38 = vmul.f32 %v5202_v50, %v3133_v21  ;;  %v3148_v45 = vsub.f32 1.0, %v3147_v6  ;;  %v5293_v40 = vsel %vm2986_vm5, %v5263_v47, 1.0  ;;  %vm3152_vm9 = vweird.f32 %v5242_v23 }
 0x257   :  { %v3100_v5 = vmul.f32 %v3099_v63, %v2860_v22  ;;  %v3142_v63 = vand.u32 2147483648, %v5161_v55  ;;  %v2613_v55 = vmul.f32 0.5, %v2581_v2  ;;  %vm5300_vm8 = vcmp.eq.f32.partialorder %v3140_v29, 8.507059e+37  ;;  %v2677_v22 = vld [vmem:[%s6107_s2 + $0x16] sm:$0x1] }
 0x258   :  { %v3135_v12 = vadd.f32 %v5202_v50, %v3134_v38  ;;  %v3149_v53 = vmul.f32 %v5242_v23, %v3148_v45  ;;  %v5339_v21 = vsel %vm2987_vm10, %v5307_v61, 1.0  ;;  %vm3156_vm12 = vcmp.eq.f32.partialorder %v3155_v10, 8.507059e+37 }
 0x259   :  { %v3524_v9 = vsel %vm2980_vm6, %v3100_v5, 0.0  ;;  %vm2985_vm6 = vcmp.gt.f32.partialorder %v5217_v33, 0.0  ;;  %v2675_v5 = vld [vmem:[%s6107_s2 + $0x14] sm:$0x1]  ;;  %v3143_v60 = vor.u32 1.1754944e-38, %v3142_v63 }
 0x25a   :  { %3557 = vst.msk [vmem:[%s6109_s11 + $0x3] sm:$0x1] %vm3553_vm15, %v3524_v9  ;;  %v2757_v48 = vld [vmem:[#allocation1 + $0x1] ss:$9 sm:$0xff]  ;;  %v5248_v41 = vsel %vm2985_vm6, %v5217_v33, 1.0  ;;  %v3150_v62 = vadd.f32 %v5242_v23, %v3149_v53 }
 0x25b   :  { %v2834_v54 = vmul.f32 %v2757_v48, %v2673_v13  ;;  %2758 = vst [vmem:[#allocation1] sm:$0xff] %v3747_v56  ;;  %3752 = vrcp.f32 %v5248_v41  ;;  %v2582_v48 = vsub.f32 %v4920_v58, %v2518_v51 }
 0x25c   :  { %3754 = vtanh.f32 %v2612_v28 }
 0x25d   :  { %v2903_v18 = vsel %vm2848_vm2, %v2834_v54, 0.0  ;;  %3756 = vrcp.f32 %v5293_v40  ;;  %v2614_v28 = vmul.f32 0.5, %v2582_v48 }
 0x25e   :  { %2904 = vadd.xlane.f32.xlu1 %v2903_v18  ;;  %v2863_v25 = vpop.xlane.xlu2 %2862  ;;  %3758 = vtanh.f32 %v2613_v55 }
 0x25f   :  { %v3115_v11 = vmul.f32 %v3114_v27, %v2863_v25  ;;  %v2519_v25 = vrot.slane %v4866_v49, 7  ;;  %3760 = vrcp.f32 %v5339_v21 }
 0x260   :  { %3762 = vtanh.f32 %v2614_v28 }
 0x261   :  { %v3525_v36 = vsel %vm2981_vm13, %v3115_v11, 0.0  ;;  %vm3137_vm13 = vweird.f32 %v5202_v50  ;;  %v5295_v57 = vpop.eup %3752  ;;  %v2583_v38 = vsub.f32 %v4866_v49, %v2519_v25 }
 0x262   :  { %3558 = vst.msk [vmem:[%s6109_s11 + $0x4] sm:$0x1] %vm3553_vm15, %v3525_v36  ;;  %v2759_v44 = vld [vmem:[#allocation1 + $0x1] ss:$9 sm:$0xff]  ;;  %vm5286_vm3 = vmor %vm3136_vm14, %vm3137_vm13  ;;  %v3755_v56 = vpop.eup %3754  ;;  %v3162_v20 = vmul.f32 %v5295_v57, %v5248_v41  ;;  %vm3167_vm1 = vweird.f32 %v5295_v57  ;;  %vm2988_vm14 = vcmp.gt.f32.partialorder %v5356_v35, 0.0 }
 0x263   :  { %v2835_v43 = vmul.f32 %v2759_v44, %v2674_v30  ;;  %2760 = vst [vmem:[#allocation1] sm:$0xff] %v3751_v42  ;;  %v3139_v4 = vsel %vm5286_vm3, %v5202_v50, %v3135_v12  ;;  %v3157_v50 = vand.u32 2147483648, %v5200_v7  ;;  %v5341_v15 = vpop.eup %3756  ;;  %v2615_v12 = vmul.f32 0.5, %v2583_v38 }
 0x264   :  { %v3144_v58 = vsel %vm5300_vm8, %v3143_v60, %v3139_v4  ;;  %v3163_v0 = vsub.f32 1.0, %v3162_v20  ;;  %v3759_v42 = vpop.eup %3758  ;;  %v5397_v60 = vld [vmem:[%s6108_s3 + $0xc] sm:$0x1]  ;;  %vm3182_vm8 = vweird.f32 %v5341_v15  ;;  %v3185_v20 = vand.u32 2147483647, %v5293_v40 }
 0x265   :  { %v2906_v8 = vsel %vm2848_vm2, %v2835_v43, 0.0  ;;  %v3158_v30 = vor.u32 1.1754944e-38, %v3157_v50  ;;  %v3170_v43 = vand.u32 2147483647, %v5248_v41  ;;  %v3202_v38 = vand.u32 2147483648, %v5339_v21 }
 0x266   :  { %2907 = vadd.xlane.f32.xlu2 %v2906_v8  ;;  %v2866_v26 = vpop.xlane.xlu0 %2865  ;;  %v3164_v36 = vmul.f32 %v5295_v57, %v3163_v0  ;;  %v5373_v8 = vpop.eup %3760 }
 0x267   :  { %v3130_v59 = vmul.f32 %v3129_v52, %v2866_v26  ;;  %v3172_v52 = vand.u32 2147483648, %v5248_v41  ;;  %v5382_v26 = vsel %vm2988_vm14, %v5356_v35, 1.0  ;;  %v3763_v55 = vpop.eup %3762  ;;  %vm5390_vm3 = vcmp.eq.f32.partialorder %v3170_v43, 8.507059e+37 }
 0x268   :  { %v3165_v49 = vadd.f32 %v5295_v57, %v3164_v36  ;;  %v3192_v53 = vmul.f32 %v5373_v8, %v5339_v21  ;;  %3764 = vrcp.f32 %v5382_v26 }
 0x269   :  { %v3526_v9 = vsel %vm2982_vm7, %v3130_v59, 0.0  ;;  %vm3151_vm7 = vweird.f32 %v5200_v7  ;;  %v2676_v7 = vld [vmem:[%s6107_s2 + $0x15] sm:$0x1]  ;;  %v3173_v13 = vor.u32 1.1754944e-38, %v3172_v52  ;;  %3766 = vtanh.f32 %v2615_v12 }
 0x26a   :  { %3559 = vst.msk [vmem:[%s6109_s11 + $0x5] sm:$0x1] %vm3553_vm15, %v3526_v9  ;;  %v2761_v24 = vld [vmem:[#allocation1 + $0x1] ss:$9 sm:$0xff]  ;;  %vm5332_vm11 = vmor %vm3151_vm7, %vm3152_vm9  ;;  %vm2989_vm7 = vcmp.gt.f32.partialorder %v5397_v60, 0.0  ;;  %v3193_v50 = vsub.f32 1.0, %v3192_v53 }
 0x26b   :  { %v2836_v54 = vmul.f32 %v2761_v24, %v2675_v5  ;;  %2762 = vst [vmem:[#allocation1] sm:$0xff] %v3755_v56  ;;  %v3154_v34 = vsel %vm5332_vm11, %v5242_v23, %v3150_v62  ;;  %v3177_v23 = vmul.f32 %v5341_v15, %v5293_v40  ;;  %v5427_v62 = vsel %vm2989_vm7, %v5397_v60, 1.0 }
 0x26c   :  { %v3159_v2 = vsel %vm3156_vm12, %v3158_v30, %v3154_v34  ;;  %vm5435_vm11 = vcmp.eq.f32.partialorder %v3185_v20, 8.507059e+37  ;;  %3768 = vrcp.f32 %v5427_v62  ;;  %vm3197_vm12 = vweird.f32 %v5373_v8 }
 0x26d   :  { %v2909_v27 = vsel %vm2848_vm2, %v2836_v54, 0.0  ;;  %v3178_v63 = vsub.f32 1.0, %v3177_v23  ;;  %v3187_v54 = vand.u32 2147483648, %v5293_v40  ;;  %v3217_v53 = vand.u32 2147483648, %v5382_v26 }
 0x26e   :  { %2910 = vadd.xlane.f32.xlu0 %v2909_v27  ;;  %v2869_v14 = vpop.xlane.xlu1 %2868  ;;  %v5429_v10 = vpop.eup %3764 }
 0x26f   :  { %v3145_v11 = vmul.f32 %v3144_v58, %v2869_v14  ;;  %v3179_v4 = vmul.f32 %v5341_v15, %v3178_v63  ;;  %v2521_v14 = vrot.slane %v4959_v16, 7  ;;  %v3767_v0 = vpop.eup %3766  ;;  %v3207_v36 = vmul.f32 %v5429_v10, %v5382_v26 }
 0x270   :  { %v2522_v63 = vrot.slane %v5000_v37, 7 }
 0x271   :  { %v3527_v32 = vsel %vm2983_vm4, %v3145_v11, 0.0  ;;  %vm3166_vm4 = vweird.f32 %v5248_v41  ;;  %v2520_v41 = vrot.slane %v4888_v39, 7  ;;  %v3180_v58 = vadd.f32 %v5341_v15, %v3179_v4 }
 0x272   :  { %3560 = vst.msk [vmem:[%s6109_s11 + $0x6] sm:$0x1] %vm3553_vm15, %v3527_v32  ;;  %v2763_v3 = vld [vmem:[#allocation1 + $0x1] ss:$9 sm:$0xff]  ;;  %vm5375_vm13 = vmor %vm3166_vm4, %vm3167_vm1  ;;  %v3188_v11 = vor.u32 1.1754944e-38, %v3187_v54  ;;  %v2585_v33 = vsub.f32 %v4959_v16, %v2521_v14  ;;  %v3208_v43 = vsub.f32 1.0, %v3207_v36  ;;  %v2586_v5 = vsub.f32 %v5000_v37, %v2522_v63 }
 0x273   :  { %v2837_v6 = vmul.f32 %v2763_v3, %v2676_v7  ;;  %2764 = vst [vmem:[#allocation1] sm:$0xff] %v3759_v42  ;;  %v3169_v17 = vsel %vm5375_vm13, %v5295_v57, %v3165_v49  ;;  %v2584_v48 = vsub.f32 %v4888_v39, %v2520_v41  ;;  %v5442_v7 = vld [vmem:[%s6108_s3 + $0xd] sm:$0x1]  ;;  %v3194_v42 = vmul.f32 %v5373_v8, %v3193_v50  ;;  %v2680_v50 = vld [vmem:[%s6107_s2 + $0x19] sm:$0x1] }
 0x274   :  { %v3174_v24 = vsel %vm5390_vm3, %v3173_v13, %v3169_v17  ;;  %vm2990_vm4 = vcmp.gt.f32.partialorder %v5442_v7, 0.0  ;;  %v3200_v16 = vand.u32 2147483647, %v5339_v21  ;;  %v2617_v49 = vmul.f32 0.5, %v2585_v33 }
 0x275   :  { %v2912_v44 = vsel %vm2848_vm2, %v2837_v6, 0.0  ;;  %v2616_v25 = vmul.f32 0.5, %v2584_v48  ;;  %v3195_v6 = vadd.f32 %v5373_v8, %v3194_v42  ;;  %v5474_v52 = vsel %vm2990_vm4, %v5442_v7, 1.0 }
 0x276   :  { %2913 = vadd.xlane.f32.xlu1 %v2912_v44  ;;  %v2872_v29 = vpop.xlane.xlu2 %2871  ;;  %vm3201_vm13 = vcmp.eq.f32.partialorder %v3200_v16, 8.507059e+37  ;;  %vm3212_vm3 = vweird.f32 %v5429_v10  ;;  %v3215_v4 = vand.u32 2147483647, %v5382_v26  ;;  %v3232_v42 = vand.u32 2147483648, %v5427_v62 }
 0x277   :  { %v3160_v45 = vmul.f32 %v3159_v2, %v2872_v29  ;;  %3770 = vtanh.f32 %v2616_v25  ;;  %v5476_v29 = vpop.eup %3768  ;;  %v2524_v16 = vrot.slane %v4984_v31, 7 }
 0x278   :  { %3772 = vrcp.f32 %v5474_v52  ;;  %v3233_v44 = vor.u32 1.1754944e-38, %v3232_v42 }
 0x279   :  { %v3528_v59 = vsel %vm2984_vm0, %v3160_v45, 0.0  ;;  %vm3181_vm0 = vweird.f32 %v5293_v40  ;;  %v2678_v40 = vld [vmem:[%s6107_s2 + $0x17] sm:$0x1]  ;;  %v3203_v45 = vor.u32 1.1754944e-38, %v3202_v38  ;;  %3774 = vtanh.f32 %v2617_v49 }
 0x27a   :  { %3561 = vst.msk [vmem:[%s6109_s11 + $0x7] sm:$0x1] %vm3553_vm15, %v3528_v59  ;;  %v2765_v9 = vld [vmem:[#allocation1 + $0x1] ss:$9 sm:$0xff]  ;;  %vm5420_vm9 = vmor %vm3181_vm0, %vm3182_vm8  ;;  %v3209_v59 = vmul.f32 %v5429_v10, %v3208_v43  ;;  %v5577_v43 = vld [vmem:[%s6108_s3 + $0x10] sm:$0x1]  ;;  %v2588_v35 = vsub.f32 %v4984_v31, %v2524_v16 }
 0x27b   :  { %v2838_v56 = vmul.f32 %v2765_v9, %v2677_v22  ;;  %2766 = vst [vmem:[#allocation1] sm:$0xff] %v3763_v55  ;;  %v3184_v34 = vsel %vm5420_vm9, %v5341_v15, %v3180_v58  ;;  %v5491_v22 = vld [vmem:[%s6108_s3 + $0xe] sm:$0x1]  ;;  %vm5525_vm9 = vcmp.eq.f32.partialorder %v3215_v4, 8.507059e+37 }
 0x27c   :  { %v3189_v23 = vsel %vm5435_vm11, %v3188_v11, %v3184_v34  ;;  %vm2991_vm0 = vcmp.gt.f32.partialorder %v5491_v22, 0.0  ;;  %v3210_v48 = vadd.f32 %v5429_v10, %v3209_v59  ;;  %vm3227_vm11 = vweird.f32 %v5476_v29 }
 0x27d   :  { %v2915_v57 = vsel %vm2848_vm2, %v2838_v56, 0.0  ;;  %v3771_v55 = vpop.eup %3770  ;;  %v5518_v58 = vsel %vm2991_vm0, %v5491_v22, 1.0  ;;  %v3230_v34 = vand.u32 2147483647, %v5427_v62 }
 0x27e   :  { %2916 = vadd.xlane.f32.xlu2 %v2915_v57  ;;  %v5508_v57 = vpop.eup %3772  ;;  %3776 = vrcp.f32 %v5518_v58 }
 0x27f   :  { %v2875_v39 = vpop.xlane.xlu0 %2874  ;;  %v3237_v28 = vmul.f32 %v5508_v57, %v5474_v52 }
 0x280   :  { %v3175_v18 = vmul.f32 %v3174_v24, %v2875_v39  ;;  %v2523_v24 = vrot.slane %v4935_v1, 7  ;;  %v3775_v39 = vpop.eup %3774 }
 0x282   :  { %v3529_v30 = vsel %vm2985_vm6, %v3175_v18, 0.0  ;;  %v2767_v32 = vld [vmem:[#allocation1 + $0x1] ss:$9 sm:$0xff]  ;;  %vm3196_vm6 = vweird.f32 %v5339_v21  ;;  %v2679_v21 = vld [vmem:[%s6107_s2 + $0x18] sm:$0x1]  ;;  %v3218_v18 = vor.u32 1.1754944e-38, %v3217_v53  ;;  %v2587_v11 = vsub.f32 %v4935_v1, %v2523_v24 }
 0x283   :  { %3562 = vst.msk [vmem:[%s6109_s11 + $0x8] sm:$0x1] %vm3553_vm15, %v3529_v30  ;;  %v2839_v3 = vmul.f32 %v2767_v32, %v2678_v40  ;;  %vm5467_vm1 = vmor %vm3196_vm6, %vm3197_vm12  ;;  %v5532_v40 = vld [vmem:[%s6108_s3 + $0xf] sm:$0x1]  ;;  %v5616_v53 = vld [vmem:[%s6108_s3 + $0x11] sm:$0x1] }
 0x284   :  { %2768 = vst [vmem:[#allocation1] sm:$0xff] %v3767_v0  ;;  %v3199_v41 = vsel %vm5467_vm1, %v5373_v8, %v3195_v6  ;;  %v3222_v8 = vmul.f32 %v5476_v29, %v5427_v62  ;;  %vm2992_vm6 = vcmp.gt.f32.partialorder %v5532_v40, 0.0  ;;  %v2619_v38 = vmul.f32 0.5, %v2587_v11 }
 0x285   :  { %v2918_v15 = vsel %vm2848_vm2, %v2839_v3, 0.0  ;;  %v3204_v9 = vsel %vm3201_vm13, %v3203_v45, %v3199_v41  ;;  %v3238_v3 = vsub.f32 1.0, %v3237_v28  ;;  %vm5570_vm1 = vcmp.eq.f32.partialorder %v3230_v34, 8.507059e+37  ;;  %v2683_v34 = vld [vmem:[%s6107_s2 + $0x1c] sm:$0x1] }
 0x286   :  { %2919 = vadd.xlane.f32.xlu0 %v2918_v15  ;;  %v3223_v37 = vsub.f32 1.0, %v3222_v8  ;;  %v5562_v15 = vsel %vm2992_vm6, %v5532_v40, 1.0  ;;  %vm3242_vm13 = vweird.f32 %v5508_v57  ;;  %v3245_v8 = vand.u32 2147483647, %v5474_v52 }
 0x287   :  { %v2878_v2 = vpop.xlane.xlu1 %2877  ;;  %v3239_v45 = vmul.f32 %v5508_v57, %v3238_v3  ;;  %v3260_v28 = vand.u32 2147483647, %v5518_v58 }
 0x288   :  { %v3190_v12 = vmul.f32 %v3189_v23, %v2878_v2  ;;  %v3224_v25 = vmul.f32 %v5476_v29, %v3223_v37  ;;  %v5564_v23 = vpop.eup %3776 }
 0x289   :  { %v3252_v41 = vmul.f32 %v5564_v23, %v5518_v58  ;;  %v3240_v59 = vadd.f32 %v5508_v57, %v3239_v45 }
 0x28a   :  { %v3530_v51 = vsel %vm2986_vm5, %v3190_v12, 0.0  ;;  %vm3211_vm5 = vweird.f32 %v5382_v26  ;;  %v2618_v26 = vmul.f32 0.5, %v2586_v5  ;;  %v3225_v1 = vadd.f32 %v5476_v29, %v3224_v25 }
 0x28b   :  { %3563 = vst.msk [vmem:[%s6109_s11 + $0x9] sm:$0x1] %vm3553_vm15, %v3530_v51  ;;  %v2769_v47 = vld [vmem:[#allocation1 + $0x1] ss:$9 sm:$0xff]  ;;  %vm5511_vm8 = vmor %vm3211_vm5, %vm3212_vm3  ;;  %vm2993_vm5 = vcmp.gt.f32.partialorder %v5577_v43, 0.0 }
 0x28c   :  { %v2840_v13 = vmul.f32 %v2769_v47, %v2679_v21  ;;  %2770 = vst [vmem:[#allocation1] sm:$0xff] %v3771_v55  ;;  %v3214_v61 = vsel %vm5511_vm8, %v5429_v10, %v3210_v48  ;;  %3778 = vtanh.f32 %v2618_v26  ;;  %v3247_v47 = vand.u32 2147483648, %v5474_v52  ;;  %v2682_v48 = vld [vmem:[%s6107_s2 + $0x1b] sm:$0x1] }
 0x28d   :  { %v3219_v32 = vsel %vm5525_vm9, %v3218_v18, %v3214_v61  ;;  %3780 = vrcp.f32 %v5562_v15  ;;  %v5609_v31 = vsel %vm2993_vm5, %v5577_v43, 1.0  ;;  %vm3246_vm8 = vcmp.eq.f32.partialorder %v3245_v8, 8.507059e+37 }
 0x28e   :  { %v2921_v17 = vsel %vm2848_vm2, %v2840_v13, 0.0  ;;  %3782 = vtanh.f32 %v2619_v38  ;;  %v3248_v37 = vor.u32 1.1754944e-38, %v3247_v47  ;;  %vm3256_vm9 = vweird.f32 %v5518_v58 }
 0x28f   :  { %2922 = vadd.xlane.f32.xlu1 %v2921_v17  ;;  %v2881_v56 = vpop.xlane.xlu2 %2880  ;;  %3784 = vrcp.f32 %v5609_v31  ;;  %v3262_v18 = vand.u32 2147483648, %v5518_v58  ;;  %v5662_v58 = vld [vmem:[%s6108_s3 + $0x12] sm:$0x1] }
 0x290   :  { %v3205_v20 = vmul.f32 %v3204_v9, %v2881_v56  ;;  %v3253_v9 = vsub.f32 1.0, %v3252_v41  ;;  %v2525_v56 = vrot.slane %v5085_v19, 7 }
 0x291   :  { %v3263_v3 = vor.u32 1.1754944e-38, %v3262_v18 }
 0x292   :  { %v3531_v27 = vsel %vm2987_vm10, %v3205_v20, 0.0  ;;  %vm3226_vm10 = vweird.f32 %v5427_v62  ;;  %v2681_v62 = vld [vmem:[%s6107_s2 + $0x1a] sm:$0x1]  ;;  %v3779_v49 = vpop.eup %3778 }
 0x293   :  { %3564 = vst.msk [vmem:[%s6109_s11 + $0xa] sm:$0x1] %vm3553_vm15, %v3531_v27  ;;  %v2771_v0 = vld [vmem:[#allocation1 + $0x1] ss:$9 sm:$0xff]  ;;  %vm5555_vm12 = vmor %vm3226_vm10, %vm3227_vm11  ;;  %v5611_v17 = vpop.eup %3780  ;;  %vm3257_vm10 = vweird.f32 %v5564_v23  ;;  %v2589_v27 = vsub.f32 %v5085_v19, %v2525_v56 }
 0x294   :  { %v2841_v30 = vmul.f32 %v2771_v0, %v2680_v50  ;;  %2772 = vst [vmem:[#allocation1] sm:$0xff] %v3775_v39  ;;  %v3229_v21 = vsel %vm5555_vm12, %v5476_v29, %v3225_v1  ;;  %v3783_v24 = vpop.eup %3782  ;;  %v3254_v50 = vmul.f32 %v5564_v23, %v3253_v9  ;;  %v3267_v39 = vmul.f32 %v5611_v17, %v5562_v15  ;;  %vm5650_vm11 = vmor %vm3256_vm9, %vm3257_vm10 }
 0x295   :  { %v3234_v55 = vsel %vm5570_vm1, %v3233_v44, %v3229_v21  ;;  %v2621_v42 = vmul.f32 0.5, %v2589_v27  ;;  %vm3261_vm12 = vcmp.eq.f32.partialorder %v3260_v28, 8.507059e+37  ;;  %vm3271_vm1 = vweird.f32 %v5562_v15 }
 0x296   :  { %v2924_v10 = vsel %vm2848_vm2, %v2841_v30, 0.0  ;;  %v3255_v25 = vadd.f32 %v5564_v23, %v3254_v50  ;;  %v3268_v11 = vsub.f32 1.0, %v3267_v39  ;;  %v5648_v30 = vpop.eup %3784  ;;  %v3277_v44 = vand.u32 2147483648, %v5562_v15  ;;  %v5737_v39 = vld [vmem:[%s6108_s3 + $0x14] sm:$0x1] }
 0x297   :  { %2925 = vadd.xlane.f32.xlu2 %v2924_v10  ;;  %vm3287_vm9 = vweird.f32 %v5648_v30 }
 0x298   :  { %v2884_v36 = vpop.xlane.xlu0 %2883  ;;  %v3259_v38 = vsel %vm5650_vm11, %v5564_v23, %v3255_v25 }
 0x299   :  { %v3220_v6 = vmul.f32 %v3219_v32, %v2884_v36  ;;  %v2526_v32 = vrot.slane %v5139_v46, 7  ;;  %v3264_v23 = vsel %vm3261_vm12, %v3263_v3, %v3259_v38 }
 0x29b   :  { %v3532_v63 = vsel %vm2988_vm14, %v3220_v6, 0.0  ;;  %v2773_v12 = vld [vmem:[#allocation1 + $0x1] ss:$9 sm:$0xff]  ;;  %vm3241_vm14 = vweird.f32 %v5474_v52  ;;  %v2620_v52 = vmul.f32 0.5, %v2588_v35  ;;  %v3269_v6 = vmul.f32 %v5611_v17, %v3268_v11 }
 0x29c   :  { %3565 = vst.msk [vmem:[%s6109_s11 + $0xb] sm:$0x1] %vm3553_vm15, %v3532_v63  ;;  %v2842_v51 = vmul.f32 %v2773_v12, %v2681_v62  ;;  %vm5602_vm3 = vmor %vm3241_vm14, %vm3242_vm13  ;;  %v3282_v62 = vmul.f32 %v5648_v30, %v5609_v31  ;;  %v2590_v16 = vsub.f32 %v5139_v46, %v2526_v32  ;;  %vm3272_vm14 = vweird.f32 %v5611_v17 }
 0x29d   :  { %2774 = vst [vmem:[#allocation1] sm:$0xff] %v3779_v49  ;;  %v3244_v54 = vsel %vm5602_vm3, %v5508_v57, %v3240_v59  ;;  %3786 = vtanh.f32 %v2620_v52  ;;  %v3270_v63 = vadd.f32 %v5611_v17, %v3269_v6  ;;  %v3275_v12 = vand.u32 2147483647, %v5562_v15  ;;  %vm5691_vm13 = vmor %vm3271_vm1, %vm3272_vm14  ;;  %v5701_v15 = vld [vmem:[%s6108_s3 + $0x13] sm:$0x1] }
 0x29e   :  { %v2927_v29 = vsel %vm2848_vm2, %v2842_v51, 0.0  ;;  %v3249_v57 = vsel %vm3246_vm8, %v3248_v37, %v3244_v54  ;;  %v3283_v21 = vsub.f32 1.0, %v3282_v62  ;;  %v2622_v41 = vmul.f32 0.5, %v2590_v16 }
 0x29f   :  { %2928 = vadd.xlane.f32.xlu0 %v2927_v29  ;;  %v2684_v29 = vld [vmem:[%s6107_s2 + $0x1d] sm:$0x1]  ;;  %vm3276_vm3 = vcmp.eq.f32.partialorder %v3275_v12, 8.507059e+37  ;;  %vm2996_vm8 = vcmp.gt.f32.partialorder %v5701_v15, 0.0  ;;  %v3292_v52 = vand.u32 2147483648, %v5609_v31 }
 0x2a0   :  { %v2887_v5 = vpop.xlane.xlu1 %2886  ;;  %v3284_v13 = vmul.f32 %v5648_v30, %v3283_v21  ;;  %v3290_v37 = vand.u32 2147483647, %v5609_v31 }
 0x2a1   :  { %v3235_v4 = vmul.f32 %v3234_v55, %v2887_v5  ;;  %v3278_v55 = vor.u32 1.1754944e-38, %v3277_v44  ;;  %v3274_v5 = vsel %vm5691_vm13, %v5611_v17, %v3270_v63 }
 0x2a2   :  { %vm3291_vm11 = vcmp.eq.f32.partialorder %v3290_v37, 8.507059e+37 }
 0x2a3   :  { %v3533_v20 = vsel %vm2989_vm7, %v3235_v4, 0.0  ;;  %vm2994_vm7 = vcmp.gt.f32.partialorder %v5616_v53, 0.0  ;;  %v3787_v36 = vpop.eup %3786  ;;  %v3279_v17 = vsel %vm3276_vm3, %v3278_v55, %v3274_v5 }
 0x2a4   :  { %3566 = vst.msk [vmem:[%s6109_s11 + $0xc] sm:$0x1] %vm3553_vm15, %v3533_v20  ;;  %v2775_v26 = vld [vmem:[#allocation1 + $0x1] ss:$9 sm:$0xff]  ;;  %v5644_v0 = vsel %vm2994_vm7, %v5616_v53, 1.0 }
 0x2a5   :  { %v2843_v60 = vmul.f32 %v2775_v26, %v2682_v48  ;;  %2776 = vst [vmem:[#allocation1] sm:$0xff] %v3783_v24  ;;  %3788 = vrcp.f32 %v5644_v0  ;;  %v3285_v48 = vadd.f32 %v5648_v30, %v3284_v13  ;;  %v5726_v24 = vsel %vm2996_vm8, %v5701_v15, 1.0 }
 0x2a6   :  { %3790 = vtanh.f32 %v2621_v42  ;;  %vm3301_vm12 = vweird.f32 %v5644_v0  ;;  %v3337_v5 = vand.u32 2147483648, %v5726_v24 }
 0x2a7   :  { %v2930_v14 = vsel %vm2848_vm2, %v2843_v60, 0.0  ;;  %v3293_v60 = vor.u32 1.1754944e-38, %v3292_v52 }
 0x2a8   :  { %2931 = vadd.xlane.f32.xlu1 %v2930_v14  ;;  %v2890_v61 = vpop.xlane.xlu2 %2889  ;;  %v3338_v37 = vor.u32 1.1754944e-38, %v3337_v5 }
 0x2a9   :  { %v3250_v10 = vmul.f32 %v3249_v57, %v2890_v61 }
 0x2ab   :  { %v3534_v1 = vsel %vm2990_vm4, %v3250_v10, 0.0  ;;  %vm2995_vm4 = vcmp.gt.f32.partialorder %v5662_v58, 0.0  ;;  %v5682_v49 = vpop.eup %3788  ;;  %v3307_v10 = vand.u32 2147483648, %v5644_v0 }
 0x2ac   :  { %3567 = vst.msk [vmem:[%s6109_s11 + $0xd] sm:$0x1] %vm3553_vm15, %v3534_v1  ;;  %v2777_v33 = vld [vmem:[#allocation1 + $0x1] ss:$9 sm:$0xff]  ;;  %v5689_v46 = vsel %vm2995_vm4, %v5662_v58, 1.0  ;;  %v3297_v47 = vmul.f32 %v5682_v49, %v5644_v0  ;;  %v3791_v9 = vpop.eup %3790  ;;  %vm3302_vm1 = vweird.f32 %v5682_v49 }
 0x2ad   :  { %v2844_v7 = vmul.f32 %v2777_v33, %v2683_v34  ;;  %2778 = vst [vmem:[#allocation1] sm:$0xff] %v3787_v36  ;;  %3792 = vrcp.f32 %v5689_v46  ;;  %vm5762_vm14 = vmor %vm3301_vm12, %vm3302_vm1  ;;  %v2686_v33 = vld [vmem:[%s6107_s2 + $0x1f] sm:$0x1]  ;;  %v3308_v6 = vor.u32 1.1754944e-38, %v3307_v10  ;;  %v3320_v44 = vand.u32 2147483647, %v5689_v46 }
 0x2ae   :  { %3794 = vtanh.f32 %v2622_v41  ;;  %v3298_v56 = vsub.f32 1.0, %v3297_v47 }
 0x2af   :  { %v2933_v2 = vsel %vm2848_vm2, %v2844_v7, 0.0  ;;  %3796 = vrcp.f32 %v5726_v24 }
 0x2b0   :  { %2934 = vadd.xlane.f32.xlu2 %v2933_v2  ;;  %v3299_v57 = vmul.f32 %v5682_v49, %v3298_v56 }
 0x2b1   :  { %v2893_v45 = vpop.xlane.xlu0 %2892 }
 0x2b2   :  { %v3265_v35 = vmul.f32 %v3264_v23, %v2893_v45  ;;  %v3300_v11 = vadd.f32 %v5682_v49, %v3299_v57 }
 0x2b3   :  { %v5728_v20 = vpop.eup %3792 }
 0x2b4   :  { %v3535_v59 = vsel %vm2991_vm0, %v3265_v35, 0.0  ;;  %v2779_v8 = vld [vmem:[#allocation1 + $0x1] ss:$9 sm:$0xff]  ;;  %vm3286_vm0 = vweird.f32 %v5609_v31  ;;  %v2685_v31 = vld [vmem:[%s6107_s2 + $0x1e] sm:$0x1]  ;;  %v3795_v27 = vpop.eup %3794  ;;  %v3312_v61 = vmul.f32 %v5728_v20, %v5689_v46  ;;  %v3304_v38 = vsel %vm5762_vm14, %v5682_v49, %v3300_v11 }
 0x2b5   :  { %3568 = vst.msk [vmem:[%s6109_s11 + $0xe] sm:$0x1] %vm3553_vm15, %v3535_v59  ;;  %v2845_v4 = vmul.f32 %v2779_v8, %v2684_v29  ;;  %vm5730_vm10 = vmor %vm3286_vm0, %vm3287_vm9  ;;  %v5771_v1 = vpop.eup %3796  ;;  %vm3316_vm0 = vweird.f32 %v5689_v46  ;;  %vm3317_vm9 = vweird.f32 %v5728_v20  ;;  %v3322_v49 = vand.u32 2147483648, %v5689_v46  ;;  %v5812_v46 = vld [vmem:[%s6108_s3 + $0x16] sm:$0x1] }
 0x2b6   :  { %2780 = vst [vmem:[#allocation1] sm:$0xff] %v3791_v9  ;;  %v3289_v18 = vsel %vm5730_vm10, %v5648_v30, %v3285_v48  ;;  %v3305_v30 = vand.u32 2147483647, %v5644_v0  ;;  %v3313_v34 = vsub.f32 1.0, %v3312_v61  ;;  %v5776_v0 = vld [vmem:[%s6108_s3 + $0x15] sm:$0x1]  ;;  %v3327_v16 = vmul.f32 %v5771_v1, %v5726_v24 }
 0x2b7   :  { %v2936_v22 = vsel %vm2848_vm2, %v2845_v4, 0.0  ;;  %v3294_v28 = vsel %vm3291_vm11, %v3293_v60, %v3289_v18  ;;  %vm2998_vm3 = vcmp.gt.f32.partialorder %v5776_v0, 0.0  ;;  %vm3321_vm10 = vcmp.eq.f32.partialorder %v3320_v44, 8.507059e+37  ;;  %v5840_v48 = vld [vmem:[%s6108_s3 + $0x17] sm:$0x1] }
 0x2b8   :  { %2937 = vadd.xlane.f32.xlu0 %v2936_v22  ;;  %vm3306_vm13 = vcmp.eq.f32.partialorder %v3305_v30, 8.507059e+37  ;;  %v3314_v7 = vmul.f32 %v5728_v20, %v3313_v34  ;;  %v5802_v63 = vsel %vm2998_vm3, %v5776_v0, 1.0  ;;  %v3328_v45 = vsub.f32 1.0, %v3327_v16 }
 0x2b9   :  { %v2896_v54 = vpop.xlane.xlu1 %2895  ;;  %v3309_v43 = vsel %vm3306_vm13, %v3308_v6, %v3304_v38  ;;  %v3323_v29 = vor.u32 1.1754944e-38, %v3322_v49  ;;  %vm3331_vm11 = vweird.f32 %v5726_v24  ;;  %vm3332_vm12 = vweird.f32 %v5771_v1 }
 0x2ba   :  { %v3280_v50 = vmul.f32 %v3279_v17, %v2896_v54  ;;  %v3315_v21 = vadd.f32 %v5728_v20, %v3314_v7  ;;  %v3329_v59 = vmul.f32 %v5771_v1, %v3328_v45  ;;  %v3335_v4 = vand.u32 2147483647, %v5726_v24  ;;  %v5900_v7 = vld [vmem:[%s6108_s3 + $0x19] sm:$0x1] }
 0x2bb   :  { %vm3000_vm14 = vcmp.gt.f32.partialorder %v5840_v48, 0.0  ;;  %v3365_v32 = vand.u32 2147483647, %v5802_v63  ;;  %v3367_v34 = vand.u32 2147483648, %v5802_v63 }
 0x2bc   :  { %v3536_v14 = vsel %vm2992_vm6, %v3280_v50, 0.0  ;;  %vm2997_vm6 = vcmp.gt.f32.partialorder %v5737_v39, 0.0  ;;  %v3330_v9 = vadd.f32 %v5771_v1, %v3329_v59  ;;  %vm3336_vm1 = vcmp.eq.f32.partialorder %v3335_v4, 8.507059e+37 }
 0x2bd   :  { %3569 = vst.msk [vmem:[%s6109_s11 + $0xf] sm:$0x1] %vm3553_vm15, %v3536_v14  ;;  %v2781_v25 = vld [vmem:[#allocation1 + $0x1] ss:$9 sm:$0xff]  ;;  %v5769_v42 = vsel %vm2997_vm6, %v5737_v39, 1.0 }
 0x2be   :  { %v2846_v40 = vmul.f32 %v2781_v25, %v2685_v31  ;;  %2782 = vst [vmem:[#allocation1] sm:$0xff] %v3795_v27  ;;  %3798 = vrcp.f32 %v5769_v42  ;;  %vm3346_vm13 = vweird.f32 %v5769_v42  ;;  %v3352_v58 = vand.u32 2147483648, %v5769_v42 }
 0x2bf   :  { %3800 = vrcp.f32 %v5802_v63  ;;  %v3350_v57 = vand.u32 2147483647, %v5769_v42  ;;  %v5862_v27 = vsel %vm3000_vm14, %v5840_v48, 1.0 }
 0x2c0   :  { %v2939_v19 = vsel %vm2848_vm2, %v2846_v40, 0.0  ;;  %v3353_v25 = vor.u32 1.1754944e-38, %v3352_v58 }
 0x2c1   :  { %2940 = vadd.xlane.f32.xlu1 %v2939_v19  ;;  %v2899_v3 = vpop.xlane.xlu2 %2898 }
 0x2c2   :  { %v3295_v36 = vmul.f32 %v3294_v28, %v2899_v3  ;;  %v5869_v28 = vld [vmem:[%s6108_s3 + $0x18] sm:$0x1] }
 0x2c4   :  { %v3537_v62 = vsel %vm2993_vm5, %v3295_v36, 0.0  ;;  %v5806_v51 = vpop.eup %3798  ;;  %vm3318_vm5 = vmor %vm3316_vm0, %vm3317_vm9  ;;  %vm3351_vm9 = vcmp.eq.f32.partialorder %v3350_v57, 8.507059e+37 }
 0x2c5   :  { %3570 = vst.msk [vmem:[%s6109_s11 + $0x10] sm:$0x1] %vm3553_vm15, %v3537_v62  ;;  %v2783_v2 = vld [vmem:[#allocation1 + $0x1] ss:$9 sm:$0xff]  ;;  %v3319_v47 = vsel %vm3318_vm5, %v5728_v20, %v3315_v21  ;;  %v3342_v8 = vmul.f32 %v5806_v51, %v5769_v42  ;;  %v5828_v13 = vpop.eup %3800  ;;  %vm3347_vm0 = vweird.f32 %v5806_v51  ;;  %vm3361_vm5 = vweird.f32 %v5802_v63 }
 0x2c6   :  { %v2847_v23 = vmul.f32 %v2783_v2, %v2686_v33  ;;  %v3324_v53 = vsel %vm3321_vm10, %v3323_v29, %v3319_v47  ;;  %v3357_v20 = vmul.f32 %v5828_v13, %v5802_v63  ;;  %vm3362_vm10 = vweird.f32 %v5828_v13  ;;  %v5926_v29 = vld [vmem:[%s6108_s3 + $0x1a] sm:$0x1] }
 0x2c7   :  { %v3343_v22 = vsub.f32 1.0, %v3342_v8  ;;  %v3368_v62 = vor.u32 1.1754944e-38, %v3367_v34 }
 0x2c8   :  { %v2942_v12 = vsel %vm2848_vm2, %v2847_v23, 0.0  ;;  %vm2999_vm2 = vcmp.gt.f32.partialorder %v5812_v46, 0.0  ;;  %v3358_v31 = vsub.f32 1.0, %v3357_v20 }
 0x2c9   :  { %2943 = vadd.xlane.f32.xlu2 %v2942_v12  ;;  %v2902_v41 = vpop.xlane.xlu0 %2901  ;;  %v5835_v17 = vsel %vm2999_vm2, %v5812_v46, 1.0  ;;  %v3344_v26 = vmul.f32 %v5806_v51, %v3343_v22 }
 0x2ca   :  { %v3310_v35 = vmul.f32 %v3309_v43, %v2902_v41  ;;  %3802 = vrcp.f32 %v5835_v17  ;;  %v3359_v40 = vmul.f32 %v5828_v13, %v3358_v31  ;;  %v3380_v44 = vand.u32 2147483647, %v5835_v17 }
 0x2cb   :  { %v3345_v60 = vadd.f32 %v5806_v51, %v3344_v26  ;;  %3804 = vrcp.f32 %v5862_v27  ;;  %v3382_v39 = vand.u32 2147483648, %v5835_v17 }
 0x2cc   :  { %v3538_v55 = vsel %vm2994_vm7, %v3310_v35, 0.0  ;;  %vm3333_vm7 = vmor %vm3331_vm11, %vm3332_vm12  ;;  %vm3001_vm11 = vcmp.gt.f32.partialorder %v5869_v28, 0.0  ;;  %v3360_v15 = vadd.f32 %v5828_v13, %v3359_v40  ;;  %vm3366_vm12 = vcmp.eq.f32.partialorder %v3365_v32, 8.507059e+37  ;;  %v5974_v40 = vld [vmem:[%s6108_s3 + $0x1c] sm:$0x1] }
 0x2cd   :  { %3571 = vst.msk [vmem:[%s6109_s11 + $0x11] sm:$0x1] %vm3553_vm15, %v3538_v55  ;;  %v3334_v54 = vsel %vm3333_vm7, %v5771_v1, %v3330_v9  ;;  %v5892_v33 = vsel %vm3001_vm11, %v5869_v28, 1.0  ;;  %vm3376_vm7 = vweird.f32 %v5835_v17  ;;  %v3383_v35 = vor.u32 1.1754944e-38, %v3382_v39 }
 0x2ce   :  { %v3339_v50 = vsel %vm3336_vm1, %v3338_v37, %v3334_v54  ;;  %3806 = vrcp.f32 %v5892_v33  ;;  %v3410_v46 = vand.u32 2147483647, %v5892_v33  ;;  %v3412_v58 = vand.u32 2147483648, %v5892_v33 }
 0x2d0   :  { %v3803_v14 = vpop.eup %3802 }
 0x2d1   :  { %v2905_v52 = vpop.xlane.xlu1 %2904  ;;  %v3372_v10 = vmul.f32 %v3803_v14, %v5835_v17  ;;  %v3805_v3 = vpop.eup %3804  ;;  %vm3377_vm1 = vweird.f32 %v3803_v14 }
 0x2d2   :  { %v3325_v56 = vmul.f32 %v3324_v53, %v2905_v52  ;;  %v3387_v23 = vmul.f32 %v3805_v3, %v5862_v27  ;;  %v3397_v53 = vand.u32 2147483648, %v5862_v27 }
 0x2d3   :  { %v3373_v1 = vsub.f32 1.0, %v3372_v10 }
 0x2d4   :  { %v3539_v24 = vsel %vm2995_vm4, %v3325_v56, 0.0  ;;  %vm3348_vm4 = vmor %vm3346_vm13, %vm3347_vm0  ;;  %vm3002_vm13 = vcmp.gt.f32.partialorder %v5900_v7, 0.0  ;;  %v3388_v63 = vsub.f32 1.0, %v3387_v23  ;;  %vm3381_vm0 = vcmp.eq.f32.partialorder %v3380_v44, 8.507059e+37 }
 0x2d5   :  { %3572 = vst.msk [vmem:[%s6109_s11 + $0x12] sm:$0x1] %vm3553_vm15, %v3539_v24  ;;  %v3349_v30 = vsel %vm3348_vm4, %v5806_v51, %v3345_v60  ;;  %v3374_v2 = vmul.f32 %v3803_v14, %v3373_v1  ;;  %v5921_v45 = vsel %vm3002_vm13, %v5900_v7, 1.0  ;;  %v3807_v51 = vpop.eup %3806  ;;  %vm3391_vm4 = vweird.f32 %v5862_v27  ;;  %v5953_v24 = vld [vmem:[%s6108_s3 + $0x1b] sm:$0x1] }
 0x2d6   :  { %v3354_v19 = vsel %vm3351_vm9, %v3353_v25, %v3349_v30  ;;  %v3389_v59 = vmul.f32 %v3805_v3, %v3388_v63  ;;  %3808 = vrcp.f32 %v5921_v45  ;;  %v3402_v8 = vmul.f32 %v3807_v51, %v5892_v33 }
 0x2d7   :  { %v3375_v49 = vadd.f32 %v3803_v14, %v3374_v2  ;;  %vm3392_vm9 = vweird.f32 %v3805_v3  ;;  %v3398_v56 = vor.u32 1.1754944e-38, %v3397_v53  ;;  %v3413_v25 = vor.u32 1.1754944e-38, %v3412_v58 }
 0x2d8   :  { %v3390_v5 = vadd.f32 %v3805_v3, %v3389_v59  ;;  %v3403_v4 = vsub.f32 1.0, %v3402_v8 }
 0x2d9   :  { %v2908_v18 = vpop.xlane.xlu2 %2907 }
 0x2da   :  { %v3340_v61 = vmul.f32 %v3339_v50, %v2908_v18  ;;  %v3404_v54 = vmul.f32 %v3807_v51, %v3403_v4 }
 0x2dc   :  { %v3540_v11 = vsel %vm2996_vm8, %v3340_v61, 0.0  ;;  %vm5885_vm8 = vmor %vm3361_vm5, %vm3362_vm10  ;;  %vm3003_vm5 = vcmp.gt.f32.partialorder %v5926_v29, 0.0  ;;  %v3809_v17 = vpop.eup %3808  ;;  %v3405_v60 = vadd.f32 %v3807_v51, %v3404_v54 }
 0x2dd   :  { %3573 = vst.msk [vmem:[%s6109_s11 + $0x13] sm:$0x1] %vm3553_vm15, %v3540_v11  ;;  %v3364_v6 = vsel %vm5885_vm8, %v5828_v13, %v3360_v15  ;;  %v3395_v13 = vand.u32 2147483647, %v5862_v27  ;;  %v5945_v22 = vsel %vm3003_vm5, %v5926_v29, 1.0  ;;  %v3417_v26 = vmul.f32 %v3809_v17, %v5921_v45 }
 0x2de   :  { %v3369_v43 = vsel %vm3366_vm12, %v3368_v62, %v3364_v6  ;;  %3810 = vrcp.f32 %v5945_v22  ;;  %vm3407_vm8 = vweird.f32 %v3807_v51  ;;  %vm3004_vm12 = vcmp.gt.f32.partialorder %v5953_v24, 0.0  ;;  %v5998_v6 = vld [vmem:[%s6108_s3 + $0x1d] sm:$0x1] }
 0x2df   :  { %vm3396_vm10 = vcmp.eq.f32.partialorder %v3395_v13, 8.507059e+37  ;;  %v3418_v57 = vsub.f32 1.0, %v3417_v26  ;;  %v5967_v18 = vsel %vm3004_vm12, %v5953_v24, 1.0  ;;  %v3427_v15 = vand.u32 2147483648, %v5921_v45 }
 0x2e0   :  { %3812 = vrcp.f32 %v5967_v18  ;;  %v3440_v39 = vand.u32 2147483647, %v5945_v22  ;;  %v3455_v7 = vand.u32 2147483647, %v5967_v18 }
 0x2e1   :  { %v2911_v36 = vpop.xlane.xlu0 %2910  ;;  %v3419_v30 = vmul.f32 %v3809_v17, %v3418_v57 }
 0x2e2   :  { %v3355_v38 = vmul.f32 %v3354_v19, %v2911_v36  ;;  %v3425_v19 = vand.u32 2147483647, %v5921_v45 }
 0x2e3   :  { %v3420_v32 = vadd.f32 %v3809_v17, %v3419_v30 }
 0x2e4   :  { %v3541_v16 = vsel %vm2997_vm6, %v3355_v38, 0.0  ;;  %vm5914_vm6 = vmor %vm3376_vm7, %vm3377_vm1  ;;  %v3811_v27 = vpop.eup %3810  ;;  %vm3411_vm1 = vcmp.eq.f32.partialorder %v3410_v46, 8.507059e+37  ;;  %v3428_v38 = vor.u32 1.1754944e-38, %v3427_v15 }
 0x2e5   :  { %3574 = vst.msk [vmem:[%s6109_s11 + $0x14] sm:$0x1] %vm3553_vm15, %v3541_v16  ;;  %v3379_v47 = vsel %vm5914_vm6, %v3803_v14, %v3375_v49  ;;  %v3432_v10 = vmul.f32 %v3811_v27, %v5945_v22  ;;  %vm3422_vm6 = vweird.f32 %v3809_v17 }
 0x2e6   :  { %v3384_v0 = vsel %vm3381_vm0, %v3383_v35, %v3379_v47  ;;  %vm3005_vm0 = vcmp.gt.f32.partialorder %v5974_v40, 0.0  ;;  %v3813_v36 = vpop.eup %3812 }
 0x2e7   :  { %v3433_v34 = vsub.f32 1.0, %v3432_v10  ;;  %v3447_v23 = vmul.f32 %v3813_v36, %v5967_v18 }
 0x2e9   :  { %v2914_v12 = vpop.xlane.xlu1 %2913  ;;  %v3434_v2 = vmul.f32 %v3811_v27, %v3433_v34  ;;  %v3448_v63 = vsub.f32 1.0, %v3447_v23 }
 0x2ea   :  { %v3370_v41 = vmul.f32 %v3369_v43, %v2914_v12  ;;  %v3442_v43 = vand.u32 2147483648, %v5945_v22 }
 0x2eb   :  { %v3435_v44 = vadd.f32 %v3811_v27, %v3434_v2  ;;  %v3449_v47 = vmul.f32 %v3813_v36, %v3448_v63 }
 0x2ec   :  { %v3542_v55 = vsel %vm2998_vm3, %v3370_v41, 0.0  ;;  %vm3393_vm3 = vmor %vm3391_vm4, %vm3392_vm9  ;;  %vm3426_vm9 = vcmp.eq.f32.partialorder %v3425_v19, 8.507059e+37 }
 0x2ed   :  { %3575 = vst.msk [vmem:[%s6109_s11 + $0x15] sm:$0x1] %vm3553_vm15, %v3542_v55  ;;  %v3394_v20 = vsel %vm3393_vm3, %v3805_v3, %v3390_v5  ;;  %v5993_v3 = vsel %vm3005_vm0, %v5974_v40, 1.0  ;;  %vm3436_vm3 = vweird.f32 %v5945_v22  ;;  %v6025_v55 = vld [vmem:[%s6108_s3 + $0x1e] sm:$0x1]  ;;  %v3450_v5 = vadd.f32 %v3813_v36, %v3449_v47 }
 0x2ee   :  { %v3399_v50 = vsel %vm3396_vm10, %v3398_v56, %v3394_v20  ;;  %3814 = vrcp.f32 %v5993_v3  ;;  %vm3437_vm10 = vweird.f32 %v3811_v27  ;;  %v6046_v56 = vld [vmem:[%s6108_s3 + $0x1f] sm:$0x1]  ;;  %v3470_v26 = vand.u32 2147483647, %v5993_v3 }
 0x2f1   :  { %v2917_v9 = vpop.xlane.xlu2 %2916 }
 0x2f2   :  { %v3385_v52 = vmul.f32 %v3384_v0, %v2917_v9  ;;  %v3457_v0 = vand.u32 2147483648, %v5967_v18 }
 0x2f4   :  { %v3543_v37 = vsel %vm2999_vm2, %v3385_v52, 0.0  ;;  %vm3406_vm2 = vweird.f32 %v5892_v33  ;;  %v3815_v21 = vpop.eup %3814  ;;  %v3458_v52 = vor.u32 1.1754944e-38, %v3457_v0 }
 0x2f5   :  { %3576 = vst.msk [vmem:[%s6109_s11 + $0x16] sm:$0x1] %vm3553_vm15, %v3543_v37  ;;  %vm3408_vm7 = vmor %vm3406_vm2, %vm3407_vm8  ;;  %vm3006_vm2 = vcmp.gt.f32.partialorder %v5998_v6, 0.0  ;;  %vm3441_vm8 = vcmp.eq.f32.partialorder %v3440_v39, 8.507059e+37  ;;  %v3462_v59 = vmul.f32 %v3815_v21, %v5993_v3 }
 0x2f6   :  { %v3409_v11 = vsel %vm3408_vm7, %v3807_v51, %v3405_v60  ;;  %v6017_v12 = vsel %vm3006_vm2, %v5998_v6, 1.0  ;;  %v3443_v51 = vor.u32 1.1754944e-38, %v3442_v43  ;;  %vm3452_vm7 = vweird.f32 %v3813_v36 }
 0x2f7   :  { %v3414_v48 = vsel %vm3411_vm1, %v3413_v25, %v3409_v11  ;;  %3816 = vrcp.f32 %v6017_v12  ;;  %vm3007_vm1 = vcmp.gt.f32.partialorder %v6025_v55, 0.0  ;;  %v3463_v13 = vsub.f32 1.0, %v3462_v59 }
 0x2f8   :  { %v6039_v22 = vsel %vm3007_vm1, %v6025_v55, 1.0  ;;  %v3487_v10 = vand.u32 2147483648, %v6017_v12  ;;  %v3485_v24 = vand.u32 2147483647, %v6017_v12 }
 0x2f9   :  { %v2920_v31 = vpop.xlane.xlu0 %2919  ;;  %v3464_v20 = vmul.f32 %v3815_v21, %v3463_v13  ;;  %3818 = vrcp.f32 %v6039_v22  ;;  %v3500_v40 = vand.u32 2147483647, %v6039_v22 }
 0x2fa   :  { %v3400_v14 = vmul.f32 %v3399_v50, %v2920_v31  ;;  %v3472_v50 = vand.u32 2147483648, %v5993_v3 }
 0x2fb   :  { %v3465_v46 = vadd.f32 %v3815_v21, %v3464_v20 }
 0x2fc   :  { %v3544_v61 = vsel %vm3000_vm14, %v3400_v14, 0.0  ;;  %vm3421_vm14 = vweird.f32 %v5921_v45  ;;  %v3473_v14 = vor.u32 1.1754944e-38, %v3472_v50 }
 0x2fd   :  { %3577 = vst.msk [vmem:[%s6109_s11 + $0x17] sm:$0x1] %vm3553_vm15, %v3544_v61  ;;  %vm5986_vm4 = vmor %vm3421_vm14, %vm3422_vm6  ;;  %v3817_v9 = vpop.eup %3816  ;;  %vm3456_vm6 = vcmp.eq.f32.partialorder %v3455_v7, 8.507059e+37 }
 0x2fe   :  { %v3424_v16 = vsel %vm5986_vm4, %v3809_v17, %v3420_v32  ;;  %v3477_v54 = vmul.f32 %v3817_v9, %v6017_v12  ;;  %vm3467_vm4 = vweird.f32 %v3815_v21 }
 0x2ff   :  { %v3429_v28 = vsel %vm3426_vm9, %v3428_v38, %v3424_v16  ;;  %vm3008_vm9 = vcmp.gt.f32.partialorder %v6046_v56, 0.0  ;;  %v3819_v57 = vpop.eup %3818 }
 0x300   :  { %v3478_v58 = vsub.f32 1.0, %v3477_v54  ;;  %v3040_v60 = vsel %vm3008_vm9, %v6046_v56, 1.0  ;;  %v3492_v11 = vmul.f32 %v3819_v57, %v6039_v22 }
 0x301   :  { %3820 = vrcp.f32 %v3040_v60 }
 0x302   :  { %v2923_v42 = vpop.xlane.xlu1 %2922  ;;  %v3479_v25 = vmul.f32 %v3817_v9, %v3478_v58  ;;  %v3493_v15 = vsub.f32 1.0, %v3492_v11 }
 0x303   :  { %v3415_v33 = vmul.f32 %v3414_v48, %v2923_v42  ;;  %v3488_v42 = vor.u32 1.1754944e-38, %v3487_v10 }
 0x304   :  { %v3480_v48 = vadd.f32 %v3817_v9, %v3479_v25 }
 0x305   :  { %v3545_v62 = vsel %vm3001_vm11, %v3415_v33, 0.0  ;;  %vm3438_vm11 = vmor %vm3436_vm3, %vm3437_vm10  ;;  %vm3471_vm10 = vcmp.eq.f32.partialorder %v3470_v26, 8.507059e+37 }
 0x306   :  { %3578 = vst.msk [vmem:[%s6109_s11 + $0x18] sm:$0x1] %vm3553_vm15, %v3545_v62  ;;  %v3439_v35 = vsel %vm3438_vm11, %v3811_v27, %v3435_v44  ;;  %vm3481_vm11 = vweird.f32 %v6017_v12  ;;  %v3502_v62 = vand.u32 2147483648, %v6039_v22  ;;  %v3517_v12 = vand.u32 2147483648, %v3040_v60 }
 0x307   :  { %v3444_v8 = vsel %vm3441_vm8, %v3443_v51, %v3439_v35  ;;  %vm3482_vm8 = vweird.f32 %v3817_v9  ;;  %v3821_v32 = vpop.eup %3820 }
 0x308   :  { %v3507_v33 = vmul.f32 %v3821_v32, %v3040_v60  ;;  %v3503_v44 = vor.u32 1.1754944e-38, %v3502_v62  ;;  %v3518_v6 = vor.u32 1.1754944e-38, %v3517_v12 }
 0x30a   :  { %v2926_v49 = vpop.xlane.xlu2 %2925  ;;  %v3508_v23 = vsub.f32 1.0, %v3507_v33 }
 0x30b   :  { %v3430_v45 = vmul.f32 %v3429_v28, %v2926_v49 }
 0x30c   :  { %v3509_v49 = vmul.f32 %v3821_v32, %v3508_v23 }
 0x30d   :  { %v3546_v41 = vsel %vm3002_vm13, %v3430_v45, 0.0  ;;  %vm3451_vm13 = vweird.f32 %v5967_v18  ;;  %v3515_v45 = vand.u32 2147483647, %v3040_v60 }
 0x30e   :  { %3579 = vst.msk [vmem:[%s6109_s11 + $0x19] sm:$0x1] %vm3553_vm15, %v3546_v41  ;;  %vm3453_vm14 = vmor %vm3451_vm13, %vm3452_vm7  ;;  %vm3486_vm13 = vcmp.eq.f32.partialorder %v3485_v24, 8.507059e+37  ;;  %vm3496_vm7 = vweird.f32 %v6039_v22 }
 0x30f   :  { %v3454_v37 = vsel %vm3453_vm14, %v3813_v36, %v3450_v5  ;;  %v3494_v36 = vmul.f32 %v3819_v57, %v3493_v15  ;;  %vm3497_vm14 = vweird.f32 %v3819_v57 }
 0x310   :  { %v3459_v29 = vsel %vm3456_vm6, %v3458_v52, %v3454_v37  ;;  %vm3501_vm6 = vcmp.eq.f32.partialorder %v3500_v40, 8.507059e+37 }
 0x311   :  { %v3495_v2 = vadd.f32 %v3819_v57, %v3494_v36 }
 0x312   :  { %v2929_v53 = vpop.xlane.xlu0 %2928 }
 0x313   :  { %v3445_v4 = vmul.f32 %v3444_v8, %v2929_v53 }
 0x315   :  { %v3547_v17 = vsel %vm3003_vm5, %v3445_v4, 0.0  ;;  %vm3466_vm5 = vweird.f32 %v5993_v3 }
 0x316   :  { %3580 = vst.msk [vmem:[%s6109_s11 + $0x1a] sm:$0x1] %vm3553_vm15, %v3547_v17  ;;  %vm3468_vm3 = vmor %vm3466_vm5, %vm3467_vm4  ;;  %vm3511_vm5 = vweird.f32 %v3040_v60  ;;  %vm3512_vm4 = vweird.f32 %v3821_v32 }
 0x317   :  { %v3469_v61 = vsel %vm3468_vm3, %v3815_v21, %v3465_v46  ;;  %v3510_v21 = vadd.f32 %v3821_v32, %v3509_v49  ;;  %vm3513_vm3 = vmor %vm3511_vm5, %vm3512_vm4 }
 0x318   :  { %v3474_v30 = vsel %vm3471_vm10, %v3473_v14, %v3469_v61 }
 0x319   :  { %v3514_v47 = vsel %vm3513_vm3, %v3821_v32, %v3510_v21 }
 0x31b   :  { %v2932_v31 = vpop.xlane.xlu1 %2931 }
 0x31c   :  { %v3460_v27 = vmul.f32 %v3459_v29, %v2932_v31 }
 0x31e   :  { %v3548_v18 = vsel %vm3004_vm12, %v3460_v27, 0.0  ;;  %vm3483_vm12 = vmor %vm3481_vm11, %vm3482_vm8 }
 0x31f   :  { %3581 = vst.msk [vmem:[%s6109_s11 + $0x1b] sm:$0x1] %vm3553_vm15, %v3548_v18  ;;  %v3484_v3 = vsel %vm3483_vm12, %v3817_v9, %v3480_v48 }
 0x320   :  { %v3489_v38 = vsel %vm3486_vm13, %v3488_v42, %v3484_v3 }
 0x323   :  { %v2935_v19 = vpop.xlane.xlu2 %2934 }
 0x324   :  { %v3475_v34 = vmul.f32 %v3474_v30, %v2935_v19 }
 0x326   :  { %v3549_v1 = vsel %vm3005_vm0, %v3475_v34, 0.0  ;;  %vm3498_vm0 = vmor %vm3496_vm7, %vm3497_vm14 }
 0x327   :  { %3582 = vst.msk [vmem:[%s6109_s11 + $0x1c] sm:$0x1] %vm3553_vm15, %v3549_v1  ;;  %v3499_v39 = vsel %vm3498_vm0, %v3819_v57, %v3495_v2 }
 0x328   :  { %v3504_v63 = vsel %vm3501_vm6, %v3503_v44, %v3499_v39 }
 0x32b   :  { %v2938_v16 = vpop.xlane.xlu0 %2937 }
 0x32c   :  { %v3490_v28 = vmul.f32 %v3489_v38, %v2938_v16 }
 0x32e   :  { %v3550_v43 = vsel %vm3006_vm2, %v3490_v28, 0.0  ;;  %vm3516_vm2 = vcmp.eq.f32.partialorder %v3515_v45, 8.507059e+37 }
 0x32f   :  { %3583 = vst.msk [vmem:[%s6109_s11 + $0x1d] sm:$0x1] %vm3553_vm15, %v3550_v43  ;;  %v3519_v59 = vsel %vm3516_vm2, %v3518_v6, %v3514_v47 }
 0x334   :  { %v2941_v51 = vpop.xlane.xlu1 %2940 }
 0x335   :  { %v3505_v41 = vmul.f32 %v3504_v63, %v2941_v51 }
 0x337   :  { %v3551_v35 = vsel %vm3007_vm1, %v3505_v41, 0.0 }
 0x338   :  { %3584 = vst.msk [vmem:[%s6109_s11 + $0x1e] sm:$0x1] %vm3553_vm15, %v3551_v35 }
 0x33c   :  { %v2944_v8 = vpop.xlane.xlu2 %2943 }
 0x33d   :  { %v3520_v7 = vmul.f32 %v3519_v59, %v2944_v8 }
 0x33f   :  { %v3552_v0 = vsel %vm3008_vm9, %v3520_v7, 0.0 }
 0x340   :  { %3585 = vst.msk [vmem:[%s6109_s11 + $0x1f] sm:$0x1] %vm3553_vm15, %v3552_v0 }

</bundles_post_ra>
